<compile_context>
chip_gen: v7x
topology: tpu7x:2x2x1
jax: 0.10.0
libtpu: 0.0.40
codegen_flags: <defaults>
</compile_context>

<pallas_src>
import jax
import jax.numpy as jnp
from jax.experimental import pallas as pl
from jax.experimental.pallas import tpu as pltpu


def _round_up(n, m):
    return ((n + m - 1) // m) * m


def _critic_kernel(x_ref,
                   w1_ref, b1_ref,
                   w2_ref, b2_ref,
                   w3_ref, b3_ref,
                   w4_ref, b4_ref,
                   o_ref):
    f32 = jnp.float32
    bf16 = jnp.bfloat16

    # Layer 1: single merged (tile_r, F) @ (F, 2048) matmul.  K = obs+act is
    # tiny, so keeping it in f32 is ~free and avoids bf16 input quantization.
    h = jnp.dot(x_ref[...], w1_ref[...], preferred_element_type=f32)
    h = jnp.maximum(h + b1_ref[...], 0.0)            # f32 epilogue (v5e-safe)

    # Layer 2: (tile_r, 2048) @ (2048, 1024), bf16 weights, f32 accumulate.
    h = jnp.dot(h.astype(bf16), w2_ref[...], preferred_element_type=f32)
    h = jnp.maximum(h + b2_ref[...], 0.0)

    # Layer 3: (tile_r, 1024) @ (1024, 128), bf16 weights, f32 accumulate.
    h = jnp.dot(h.astype(bf16), w3_ref[...], preferred_element_type=f32)
    h = jnp.maximum(h + b3_ref[...], 0.0)

    # Layer 4: degenerate (128, 1) matmul -> VPU multiply + XLU lane reduce.
    # Padded lanes of h and w4 are exactly zero, so they contribute nothing.
    q = jnp.sum(h * w4_ref[...], axis=-1, keepdims=True)
    o_ref[...] = q + b4_ref[...]


def prepare_critic_params(params):
    """One-time zero-pad / dtype-cast of the nn.Linear parameters."""
    (w1, b1), (w2, b2), (w3, b3), (w4, b4) = params
    h1, h2, h3 = w1.shape[1], w2.shape[1], w3.shape[1]
    h1p, h2p, h3p = _round_up(h1, 128), _round_up(h2, 128), _round_up(h3, 128)

    # Layer 1 kept f32 (tiny K, better numerics for the raw observations).
    w1p = jnp.pad(w1, ((0, 0), (0, h1p - h1))).astype(jnp.float32)
    b1p = jnp.pad(b1, (0, h1p - h1)).reshape(1, h1p).astype(jnp.float32)

    w2p = jnp.pad(w2, ((0, h1p - h1), (0, h2p - h2))).astype(jnp.bfloat16)
    b2p = jnp.pad(b2, (0, h2p - h2)).reshape(1, h2p).astype(jnp.float32)

    w3p = jnp.pad(w3, ((0, h2p - h2), (0, h3p - h3))).astype(jnp.bfloat16)
    b3p = jnp.pad(b3, (0, h3p - h3)).reshape(1, h3p).astype(jnp.float32)

    # Final layer kept f32: it runs on the VPU (mul + lane reduce), not the MXU.
    w4r = jnp.pad(w4[:, 0], (0, h3p - h3)).reshape(1, h3p).astype(jnp.float32)
    b4r = b4.reshape(1, 1).astype(jnp.float32)

    return (w1p, b1p, w2p, b2p, w3p, b3p, w4r, b4r)


# Grid-invariant weights/biases: constant block index keeps them resident in
# VMEM; Buffered(1) single-buffers them (default double-buffering would only
# duplicate ~4.6 MiB of weights and issue a pointless second DMA wave).
_RESIDENT_KW = {"pipeline_mode": pl.Buffered(1)} if hasattr(pl, "Buffered") else {}


def _resident_spec(arr):
    return pl.BlockSpec(arr.shape, lambda i: (0,) * arr.ndim, **_RESIDENT_KW)


def maddpg_critic_forward(state, action, kparams, *, tile_rows=512):
    """state: (B, A, obs), action: (B, A, act) -> Q: (B, A, 1)."""
    w1, b1, w2, b2, w3, b3, w4, b4 = kparams
    B, A, obs = state.shape
    act = action.shape[2]
    F = obs + act
    rows = B * A

    # Concatenate once in the wrapper (merged layer-1 MXU pass); the extra HBM
    # pass over x is only F f32 lanes per row and is negligible vs the weights.
    x2d = jnp.concatenate(
        [state.reshape(rows, obs), action.reshape(rows, act)],
        axis=1).astype(jnp.float32)

    # Row tile: weights are resident so the kernel is MXU-bound -> big M tiles
    # amortise per-grid-step overhead (512 default; 256 also fine on v5e).
    # Guarantee >= 2 grid steps whenever rows >= 16 so the "parallel" axis can
    # be sharded across v7x's 2 TensorCores; tiny problems fall back to one
    # 8-aligned tile.
    if rows >= 16:
        tile_r = min(tile_rows, _round_up(pl.cdiv(rows, 2), 8))
    else:
        tile_r = _round_up(rows, 8)
    rows_p = _round_up(rows, tile_r)
    if rows_p != rows:
        x2d = jnp.pad(x2d, ((0, rows_p - rows), (0, 0)))

    grid = (rows_p // tile_r,)

    out = pl.pallas_call(
        _critic_kernel,
        out_shape=jax.ShapeDtypeStruct((rows_p, 1), jnp.float32),
        grid=grid,
        in_specs=[
            pl.BlockSpec((tile_r, F), lambda i: (i, 0)),
            _resident_spec(w1), _resident_spec(b1),
            _resident_spec(w2), _resident_spec(b2),
            _resident_spec(w3), _resident_spec(b3),
            _resident_spec(w4), _resident_spec(b4),
        ],
        # Q is inherently 1 lane wide; lane-dense writeback only matters at
        # very large batch (low priority per review).
        out_specs=pl.BlockSpec((tile_r, 1), lambda i: (i, 0)),
        compiler_params=pltpu.CompilerParams(
            dimension_semantics=("parallel",),
            # ~15 MiB actual at tile=512; 48 MiB cap stays legal on v7x's
            # 64 MiB physical VMEM and is comfortable on v5e/v6e (128 MiB).
            vmem_limit_bytes=48 << 20,
        ),
    )(x2d, w1, b1, w2, b2, w3, b3, w4, b4)

    return out[:rows].reshape(B, A, 1)


def init_params(key, in_features):
    """Deterministic init mimicking nn.Linear default (U[-1/sqrt(fan_in), +])."""
    sizes = [(in_features, 2000), (2000, 1000), (1000, 100), (100, 1)]
    params = []
    for fan_in, fan_out in sizes:
        key, kw, kb = jax.random.split(key, 3)
        bound = 1.0 / jnp.sqrt(jnp.float32(fan_in))
        w = jax.random.uniform(kw, (fan_in, fan_out), jnp.float32, -bound, bound)
        b = jax.random.uniform(kb, (fan_out,), jnp.float32, -bound, bound)
        params.append((w, b))
    return params


def reference_forward(state, action, params):
    x = jnp.concatenate([state, action], axis=2)
    for i, (w, b) in enumerate(params):
        x = x @ w + b
        if i < len(params) - 1:
            x = jnp.maximum(x, 0.0)
    return x


if __name__ == "__main__":
    key = jax.random.PRNGKey(0)
    full_obs_size = 24
    n_actions_agents = 8
    F = full_obs_size + n_actions_agents

    k1, k2, k3, k4, k5 = jax.random.split(key, 5)
    params = init_params(k3, F)
    kparams = prepare_critic_params(params)

    # Small demo shape (B*A = 8 rows -> single-tile grid).
    B, A = 2, 4
    state = jax.random.normal(k1, (B, A, full_obs_size), jnp.float32)
    action = jax.random.normal(k2, (B, A, n_actions_agents), jnp.float32)
    q = jax.block_until_ready(maddpg_critic_forward(state, action, kparams))
    q_ref = reference_forward(state, action, params)
    assert q.shape == (B, A, 1)
    assert jnp.allclose(q, q_ref, atol=2e-2, rtol=2e-2), \
        float(jnp.max(jnp.abs(q - q_ref)))

    # Larger batch: exercises row padding and a >=2-step "parallel" grid, and
    # adds the scale-normalised max-error check requested by the review.
    B2, A2 = 40, 5
    state2 = jax.random.normal(k4, (B2, A2, full_obs_size), jnp.float32)
    action2 = jax.random.normal(k5, (B2, A2, n_actions_agents), jnp.float32)
    q2 = jax.block_until_ready(maddpg_critic_forward(state2, action2, kparams))
    q2_ref = reference_forward(state2, action2, params)
    assert q2.shape == (B2, A2, 1)
    max_abs_err = float(jnp.max(jnp.abs(q2 - q2_ref)))
    out_scale = float(jnp.max(jnp.abs(q2_ref)))
    assert max_abs_err <= 5e-3 * max(out_scale, 1.0), (max_abs_err, out_scale)

    print("KERNEL_OK")
</pallas_src>

<mosaic_0001>
module attributes {stable_mosaic.version = 11 : i64} {
  func.func @_critic_kernel(%arg0: i32, %arg1: memref<8x32xf32, #tpu.memory_space<vmem>>, %arg2: memref<32x2048xf32, #tpu.memory_space<vmem>>, %arg3: memref<1x2048xf32, #tpu.memory_space<vmem>>, %arg4: memref<2048x1024xbf16, #tpu.memory_space<vmem>>, %arg5: memref<1x1024xf32, #tpu.memory_space<vmem>>, %arg6: memref<1024x128xbf16, #tpu.memory_space<vmem>>, %arg7: memref<1x128xf32, #tpu.memory_space<vmem>>, %arg8: memref<1x128xf32, #tpu.memory_space<vmem>>, %arg9: memref<1x1xf32, #tpu.memory_space<vmem>>, %arg10: memref<8x1xf32, #tpu.memory_space<vmem>>) attributes {dimension_semantics = [#tpu.dimension_semantics<parallel>], iteration_bounds = array<i64: 1>, scalar_prefetch = 0 : i64, scratch_operands = 0 : i64, tpu.core_type = #tpu.core_type<tc>, window_params = [{transform_indices = @transform_0, window_bounds = array<i64: 8, 32>}, {pipeline_mode = #tpu.pipeline_mode<synchronous>, transform_indices = @transform_1, window_bounds = array<i64: 32, 2048>}, {pipeline_mode = #tpu.pipeline_mode<synchronous>, transform_indices = @transform_2, window_bounds = array<i64: 1, 2048>}, {pipeline_mode = #tpu.pipeline_mode<synchronous>, transform_indices = @transform_3, window_bounds = array<i64: 2048, 1024>}, {pipeline_mode = #tpu.pipeline_mode<synchronous>, transform_indices = @transform_4, window_bounds = array<i64: 1, 1024>}, {pipeline_mode = #tpu.pipeline_mode<synchronous>, transform_indices = @transform_5, window_bounds = array<i64: 1024, 128>}, {pipeline_mode = #tpu.pipeline_mode<synchronous>, transform_indices = @transform_6, window_bounds = array<i64: 1, 128>}, {pipeline_mode = #tpu.pipeline_mode<synchronous>, transform_indices = @transform_7, window_bounds = array<i64: 1, 128>}, {pipeline_mode = #tpu.pipeline_mode<synchronous>, transform_indices = @transform_8, window_bounds = array<i64: 1, 1>}, {transform_indices = @transform_9, window_bounds = array<i64: 8, 1>}]} {
    %c0 = arith.constant 0 : index
    %c0_0 = arith.constant 0 : index
    %0 = vector.load %arg1[%c0, %c0_0] : memref<8x32xf32, #tpu.memory_space<vmem>>, vector<8x32xf32>
    %c0_1 = arith.constant 0 : index
    %c0_2 = arith.constant 0 : index
    %1 = vector.load %arg2[%c0_1, %c0_2] : memref<32x2048xf32, #tpu.memory_space<vmem>>, vector<32x2048xf32>
    %cst = arith.constant dense<0.000000e+00> : vector<8x2048xf32>
    %2 = tpu.matmul %0, %1, %cst {dimension_numbers = #tpu.dot_dimension_numbers<[1], [0], [0], [1], [0, 0, 1, 1], [], []>} : vector<8x32xf32>, vector<32x2048xf32>, vector<8x2048xf32> -> vector<8x2048xf32>
    %c0_3 = arith.constant 0 : index
    %c0_4 = arith.constant 0 : index
    %3 = vector.load %arg3[%c0_3, %c0_4] : memref<1x2048xf32, #tpu.memory_space<vmem>>, vector<1x2048xf32>
    %4 = vector.broadcast %3 : vector<1x2048xf32> to vector<8x2048xf32>
    %5 = arith.addf %2, %4 : vector<8x2048xf32>
    %cst_5 = arith.constant 0.000000e+00 : f32
    %6 = vector.broadcast %cst_5 : f32 to vector<8x2048xf32>
    %7 = arith.maximumf %5, %6 : vector<8x2048xf32>
    %8 = arith.truncf %7 : vector<8x2048xf32> to vector<8x2048xbf16>
    %c0_6 = arith.constant 0 : index
    %c0_7 = arith.constant 0 : index
    %9 = vector.load %arg4[%c0_6, %c0_7] : memref<2048x1024xbf16, #tpu.memory_space<vmem>>, vector<2048x1024xbf16>
    %cst_8 = arith.constant dense<0.000000e+00> : vector<8x1024xf32>
    %10 = tpu.matmul %8, %9, %cst_8 {dimension_numbers = #tpu.dot_dimension_numbers<[1], [0], [0], [1], [0, 0, 1, 1], [], []>} : vector<8x2048xbf16>, vector<2048x1024xbf16>, vector<8x1024xf32> -> vector<8x1024xf32>
    %c0_9 = arith.constant 0 : index
    %c0_10 = arith.constant 0 : index
    %11 = vector.load %arg5[%c0_9, %c0_10] : memref<1x1024xf32, #tpu.memory_space<vmem>>, vector<1x1024xf32>
    %12 = vector.broadcast %11 : vector<1x1024xf32> to vector<8x1024xf32>
    %13 = arith.addf %10, %12 : vector<8x1024xf32>
    %cst_11 = arith.constant 0.000000e+00 : f32
    %14 = vector.broadcast %cst_11 : f32 to vector<8x1024xf32>
    %15 = arith.maximumf %13, %14 : vector<8x1024xf32>
    %16 = arith.truncf %15 : vector<8x1024xf32> to vector<8x1024xbf16>
    %c0_12 = arith.constant 0 : index
    %c0_13 = arith.constant 0 : index
    %17 = vector.load %arg6[%c0_12, %c0_13] : memref<1024x128xbf16, #tpu.memory_space<vmem>>, vector<1024x128xbf16>
    %cst_14 = arith.constant dense<0.000000e+00> : vector<8x128xf32>
    %18 = tpu.matmul %16, %17, %cst_14 {dimension_numbers = #tpu.dot_dimension_numbers<[1], [0], [0], [1], [0, 0, 1, 1], [], []>} : vector<8x1024xbf16>, vector<1024x128xbf16>, vector<8x128xf32> -> vector<8x128xf32>
    %c0_15 = arith.constant 0 : index
    %c0_16 = arith.constant 0 : index
    %19 = vector.load %arg7[%c0_15, %c0_16] : memref<1x128xf32, #tpu.memory_space<vmem>>, vector<1x128xf32>
    %20 = vector.broadcast %19 : vector<1x128xf32> to vector<8x128xf32>
    %21 = arith.addf %18, %20 : vector<8x128xf32>
    %cst_17 = arith.constant 0.000000e+00 : f32
    %22 = vector.broadcast %cst_17 : f32 to vector<8x128xf32>
    %23 = arith.maximumf %21, %22 : vector<8x128xf32>
    %c0_18 = arith.constant 0 : index
    %c0_19 = arith.constant 0 : index
    %24 = vector.load %arg8[%c0_18, %c0_19] : memref<1x128xf32, #tpu.memory_space<vmem>>, vector<1x128xf32>
    %25 = vector.broadcast %24 : vector<1x128xf32> to vector<8x128xf32>
    %26 = arith.mulf %23, %25 : vector<8x128xf32>
    %cst_20 = arith.constant dense<0.000000e+00> : vector<8xf32>
    %27 = vector.multi_reduction <add>, %26, %cst_20 [1] : vector<8x128xf32> to vector<8xf32>
    %28 = vector.shape_cast %27 : vector<8xf32> to vector<8x1xf32>
    %c0_21 = arith.constant 0 : index
    %c0_22 = arith.constant 0 : index
    %29 = vector.load %arg9[%c0_21, %c0_22] : memref<1x1xf32, #tpu.memory_space<vmem>>, vector<1x1xf32>
    %30 = vector.broadcast %29 : vector<1x1xf32> to vector<8x1xf32>
    %31 = arith.addf %28, %30 : vector<8x1xf32>
    %c0_23 = arith.constant 0 : index
    %c0_24 = arith.constant 0 : index
    %32 = vector.load %arg10[%c0_23, %c0_24] : memref<8x1xf32, #tpu.memory_space<vmem>>, vector<8x1xf32>
    tpu.vector_store %arg10[%c0_23, %c0_24], %31 {strides = array<i32>} : memref<8x1xf32, #tpu.memory_space<vmem>>, vector<8x1xf32>,
    return
  }
  func.func @transform_0(%arg0: i32) -> (i32, i32) {
    %c0_i32 = arith.constant 0 : i32
    %c0_i32_0 = arith.constant 0 : i32
    return %arg0, %c0_i32 : i32, i32
  }
  func.func @transform_1(%arg0: i32) -> (i32, i32) {
    %c0_i32 = arith.constant 0 : i32
    %c0_i32_0 = arith.constant 0 : i32
    %c0_i32_1 = arith.constant 0 : i32
    return %c0_i32, %c0_i32_0 : i32, i32
  }
  func.func @transform_2(%arg0: i32) -> (i32, i32) {
    %c0_i32 = arith.constant 0 : i32
    %c0_i32_0 = arith.constant 0 : i32
    %c0_i32_1 = arith.constant 0 : i32
    return %c0_i32, %c0_i32_0 : i32, i32
  }
  func.func @transform_3(%arg0: i32) -> (i32, i32) {
    %c0_i32 = arith.constant 0 : i32
    %c0_i32_0 = arith.constant 0 : i32
    %c0_i32_1 = arith.constant 0 : i32
    return %c0_i32, %c0_i32_0 : i32, i32
  }
  func.func @transform_4(%arg0: i32) -> (i32, i32) {
    %c0_i32 = arith.constant 0 : i32
    %c0_i32_0 = arith.constant 0 : i32
    %c0_i32_1 = arith.constant 0 : i32
    return %c0_i32, %c0_i32_0 : i32, i32
  }
  func.func @transform_5(%arg0: i32) -> (i32, i32) {
    %c0_i32 = arith.constant 0 : i32
    %c0_i32_0 = arith.constant 0 : i32
    %c0_i32_1 = arith.constant 0 : i32
    return %c0_i32, %c0_i32_0 : i32, i32
  }
  func.func @transform_6(%arg0: i32) -> (i32, i32) {
    %c0_i32 = arith.constant 0 : i32
    %c0_i32_0 = arith.constant 0 : i32
    %c0_i32_1 = arith.constant 0 : i32
    return %c0_i32, %c0_i32_0 : i32, i32
  }
  func.func @transform_7(%arg0: i32) -> (i32, i32) {
    %c0_i32 = arith.constant 0 : i32
    %c0_i32_0 = arith.constant 0 : i32
    %c0_i32_1 = arith.constant 0 : i32
    return %c0_i32, %c0_i32_0 : i32, i32
  }
  func.func @transform_8(%arg0: i32) -> (i32, i32) {
    %c0_i32 = arith.constant 0 : i32
    %c0_i32_0 = arith.constant 0 : i32
    %c0_i32_1 = arith.constant 0 : i32
    return %c0_i32, %c0_i32_0 : i32, i32
  }
  func.func @transform_9(%arg0: i32) -> (i32, i32) {
    %c0_i32 = arith.constant 0 : i32
    %c0_i32_0 = arith.constant 0 : i32
    return %arg0, %c0_i32 : i32, i32
  }
}

</mosaic_0001>

<bundles_post_ra>
// kernel: tpu_custom_call.1
= control target key start
LH: loop header
LB: loop body
LE: loop exit
PB: predicated region body
PF: predicated region fallthrough
CT: control target
= control target key end

     0   :  { %s11161_s0 = inlined_call_operand.hbm [shape: f32[8,32], index: 0, kind: input, shape index: {}]   ;;  %s11162_s1 = inlined_call_operand.hbm [shape: f32[32,2048], index: 1, kind: input, shape index: {}]   ;;  %s11163_s2 = inlined_call_operand.hbm [shape: f32[1,2048], index: 2, kind: input, shape index: {}]   ;;  %s11164_s3 = inlined_call_operand.hbm [shape: bf16[2048,1024], index: 3, kind: input, shape index: {}]   ;;  %s11165_s4 = inlined_call_operand.hbm [shape: f32[1,1024], index: 4, kind: input, shape index: {}]   ;;  %s11166_s5 = inlined_call_operand.hbm [shape: bf16[1024,128], index: 5, kind: input, shape index: {}]   ;;  %s11167_s6 = inlined_call_operand.hbm [shape: f32[1,128], index: 6, kind: input, shape index: {}]   ;;  %s11168_s7 = inlined_call_operand.hbm [shape: f32[1,128], index: 7, kind: input, shape index: {}]   ;;  %s11169_s8 = inlined_call_operand.<no memory space> [shape: f32[1,1], index: 8, kind: input, shape index: {}]   ;;  %s11170_s9 = inlined_call_operand.vmem [shape: f32[8,1], index: 9, kind: output, shape index: {}]  }
   0x1   :  { %v14_v0 = vstv %s11169_s8 }
   0x2   :  { %15 = vst [vmem:[#allocation2] sm:$0x1] %v14_v0 }
   0x3   :  { %16 = vsyncpa [#allocation4], 0 }
   0x4   :  { %17 = vsyncpa [#allocation6], 0 }
   0x5   :  { %18 = vsyncpa [#allocation9], 0 }
   0x6   :  { %19 = vsyncpa [#allocation12], 0 }
   0x7   :  { %20 = vsyncpa [#allocation15], 0  ;;  %s10748_s11 = smov [#allocation5]   ;;  %s10562_s15 = scalar_lea.hbm %s11162_s1, 8192 }
   0x8   :  { %s36_s12 = sshll.u32 %s10748_s11, 4  ;;  %p10563_p0 = scmp.ne.s32.totalorder %s11162_s1, %s10562_s15  ;;  %s37_s12 = int_to_ptr.vmem [resolvable:$true] %s36_s12 }
   0x9   :  { %p10566_p1 = scmp.lt.u32.totalorder %s10562_s15, %s11162_s1 }
   0xb   :  { %p10568_p2 = pnand %p10566_p1, %p10563_p0 }
   0xd   :  { %10571 = shalt.err (!%p10568_p2)
}
   0xe   :  { %s10572_s8 = scalar_lea.vmem %s37_s12, 8192  ;;  %p10577_p4 = scmp.lt.s32.totalorder %s37_s12, %s37_s12 }
   0xf   :  { %p10573_p3 = scmp.ne.s32.totalorder %s37_s12, %s10572_s8  ;;  %p10578_p5 = scmp.lt.s32.totalorder %s10572_s8, %s10572_s8 }
  0x11   :  { %p10579_p6 = por %p10578_p5, %p10577_p4 }
  0x13   :  { %p10580_p7 = pnand %p10579_p6, %p10573_p3 }
  0x15   :  { %10583 = shalt.err (!%p10580_p7)
}
  0x16   :  { %s10749_s20 = smov 2048   ;;  %s10750_s21 = smov 128  }
  0x17   :  { %42 = dma.hbm_to_vmem [thread:$0]  %s11162_s1, 8192, %s37_s12, [#allocation6], %s10749_s20, %s10749_s20, %s10750_s21  }
  0x18   :  { %s10751_s24 = smov [#allocation8]   ;;  %s10584_s28 = scalar_lea.hbm %s11164_s3, 131072 }
  0x19   :  { %s58_s25 = sshll.u32 %s10751_s24, 4  ;;  %p10585_p8 = scmp.ne.s32.totalorder %s11164_s3, %s10584_s28  ;;  %s59_s25 = int_to_ptr.vmem [resolvable:$true] %s58_s25 }
  0x1a   :  { %p10588_p9 = scmp.lt.u32.totalorder %s10584_s28, %s11164_s3 }
  0x1c   :  { %p10590_p10 = pnand %p10588_p9, %p10585_p8 }
  0x1e   :  { %10593 = shalt.err (!%p10590_p10)
}
  0x1f   :  { %s10594_s13 = scalar_lea.vmem %s59_s25, 131072  ;;  %p10599_p12 = scmp.lt.s32.totalorder %s59_s25, %s59_s25 }
  0x20   :  { %p10595_p11 = scmp.ne.s32.totalorder %s59_s25, %s10594_s13  ;;  %p10600_p13 = scmp.lt.s32.totalorder %s10594_s13, %s10594_s13 }
  0x22   :  { %p10601_p0 = por %p10600_p13, %p10599_p12 }
  0x24   :  { %p10602_p1 = pnand %p10601_p0, %p10595_p11 }
  0x26   :  { %10605 = shalt.err (!%p10602_p1)
}
  0x27   :  { %s10752_s1 = smov 512   ;;  %s10753_s12 = smov 32  }
  0x28   :  { %64 = dma.hbm_to_vmem [thread:$0]  %s11164_s3, 131072, %s59_s25, [#allocation9], %s10752_s1, %s10752_s1, %s10753_s12  }
  0x29   :  { %s10754_s16 = smov [#allocation11]   ;;  %s10606_s8 = scalar_lea.hbm %s11166_s5, 8192 }
  0x2a   :  { %s80_s17 = sshll.u32 %s10754_s16, 4  ;;  %p10607_p2 = scmp.ne.s32.totalorder %s11166_s5, %s10606_s8  ;;  %s81_s17 = int_to_ptr.vmem [resolvable:$true] %s80_s17 }
  0x2b   :  { %p10610_p3 = scmp.lt.u32.totalorder %s10606_s8, %s11166_s5 }
  0x2d   :  { %p10612_p4 = pnand %p10610_p3, %p10607_p2 }
  0x2f   :  { %10615 = shalt.err (!%p10612_p4)
}
  0x30   :  { %s10616_s24 = scalar_lea.vmem %s81_s17, 8192  ;;  %p10621_p6 = scmp.lt.s32.totalorder %s81_s17, %s81_s17 }
  0x31   :  { %p10617_p5 = scmp.ne.s32.totalorder %s81_s17, %s10616_s24  ;;  %p10622_p7 = scmp.lt.s32.totalorder %s10616_s24, %s10616_s24 }
  0x33   :  { %p10623_p8 = por %p10622_p7, %p10621_p6 }
  0x35   :  { %p10624_p9 = pnand %p10623_p8, %p10617_p5 }
  0x37   :  { %10627 = shalt.err (!%p10624_p9)
}
  0x38   :  { %s10755_s3 = smov 64   ;;  %s10756_s25 = smov 4  }
  0x39   :  { %86 = dma.hbm_to_vmem [thread:$0]  %s11166_s5, 8192, %s81_s17, [#allocation12], %s10755_s3, %s10755_s3, %s10756_s25  }
  0x3a   :  { %s10757_s28 = smov [#allocation3]   ;;  %s10758_s30 = smov [#allocation7]  }
  0x3b   :  { %s27_s29 = sshll.u32 %s10757_s28, 4  ;;  %s49_s10 = sshll.u32 %s10758_s30, 4  ;;  %s28_s29 = int_to_ptr.vmem [resolvable:$true] %s27_s29  ;;  %s50_s10 = int_to_ptr.vmem [resolvable:$true] %s49_s10 }
  0x3c   :  { %s10628_s1 = scalar_lea.hbm %s11161_s0, 128 }
  0x3d   :  { %p10629_p10 = scmp.ne.s32.totalorder %s11161_s0, %s10628_s1  ;;  %p10632_p11 = scmp.lt.u32.totalorder %s10628_s1, %s11161_s0 }
  0x3f   :  { %p10634_p12 = pnand %p10632_p11, %p10629_p10 }
  0x41   :  { %10637 = shalt.err (!%p10634_p12)
}
  0x42   :  { %s10638_s5 = scalar_lea.vmem %s28_s29, 128  ;;  %p10643_p0 = scmp.lt.s32.totalorder %s28_s29, %s28_s29 }
  0x43   :  { %p10639_p13 = scmp.ne.s32.totalorder %s28_s29, %s10638_s5  ;;  %p10644_p1 = scmp.lt.s32.totalorder %s10638_s5, %s10638_s5 }
  0x45   :  { %p10645_p2 = por %p10644_p1, %p10643_p0 }
  0x47   :  { %p10646_p3 = pnand %p10645_p2, %p10639_p13 }
  0x49   :  { %10649 = shalt.err (!%p10646_p3)
}
  0x4a   :  { %30 = dma.hbm_to_vmem [thread:$0]  %s11161_s0, 128, %s28_s29, [#allocation4]  }
  0x4b   :  { %s10650_s20 = scalar_lea.hbm %s11163_s2, 256 }
  0x4c   :  { %p10651_p4 = scmp.ne.s32.totalorder %s11163_s2, %s10650_s20  ;;  %p10654_p5 = scmp.lt.u32.totalorder %s10650_s20, %s11163_s2 }
  0x4e   :  { %p10656_p6 = pnand %p10654_p5, %p10651_p4 }
  0x50   :  { %10659 = shalt.err (!%p10656_p6)
}
  0x51   :  { %s10660_s3 = scalar_lea.vmem %s50_s10, 256  ;;  %p10665_p8 = scmp.lt.s32.totalorder %s50_s10, %s50_s10 }
  0x52   :  { %p10661_p7 = scmp.ne.s32.totalorder %s50_s10, %s10660_s3  ;;  %p10666_p9 = scmp.lt.s32.totalorder %s10660_s3, %s10660_s3 }
  0x54   :  { %p10667_p10 = por %p10666_p9, %p10665_p8 }
  0x56   :  { %p10668_p11 = pnand %p10667_p10, %p10661_p7 }
  0x58   :  { %10671 = shalt.err (!%p10668_p11)
}
  0x59   :  { %52 = dma.hbm_to_vmem [thread:$0]  %s11163_s2, 256, %s50_s10, [#allocation6]  }
  0x5a   :  { %s10759_s26 = smov [#allocation10]   ;;  %s10760_s28 = smov [#allocation13]  }
  0x5b   :  { %s71_s27 = sshll.u32 %s10759_s26, 4  ;;  %s93_s29 = sshll.u32 %s10760_s28, 4  ;;  %s72_s27 = int_to_ptr.vmem [resolvable:$true] %s71_s27  ;;  %s94_s29 = int_to_ptr.vmem [resolvable:$true] %s93_s29 }
  0x5c   :  { %s10672_s13 = scalar_lea.hbm %s11165_s4, 128 }
  0x5d   :  { %p10673_p12 = scmp.ne.s32.totalorder %s11165_s4, %s10672_s13  ;;  %p10676_p13 = scmp.lt.u32.totalorder %s10672_s13, %s11165_s4 }
  0x5f   :  { %p10678_p0 = pnand %p10676_p13, %p10673_p12 }
  0x61   :  { %10681 = shalt.err (!%p10678_p0)
}
  0x62   :  { %s10682_s2 = scalar_lea.vmem %s72_s27, 128  ;;  %p10687_p2 = scmp.lt.s32.totalorder %s72_s27, %s72_s27 }
  0x63   :  { %p10683_p1 = scmp.ne.s32.totalorder %s72_s27, %s10682_s2  ;;  %p10688_p3 = scmp.lt.s32.totalorder %s10682_s2, %s10682_s2 }
  0x65   :  { %p10689_p4 = por %p10688_p3, %p10687_p2 }
  0x67   :  { %p10690_p5 = pnand %p10689_p4, %p10683_p1 }
  0x69   :  { %10693 = shalt.err (!%p10690_p5)
}
  0x6a   :  { %74 = dma.hbm_to_vmem [thread:$0]  %s11165_s4, 128, %s72_s27, [#allocation9]  }
  0x6b   :  { %s10694_s18 = scalar_lea.hbm %s11167_s6, 16 }
  0x6c   :  { %p10695_p6 = scmp.ne.s32.totalorder %s11167_s6, %s10694_s18  ;;  %p10698_p7 = scmp.lt.u32.totalorder %s10694_s18, %s11167_s6 }
  0x6e   :  { %p10700_p8 = pnand %p10698_p7, %p10695_p6 }
  0x70   :  { %10703 = shalt.err (!%p10700_p8)
}
  0x71   :  { %s10704_s22 = scalar_lea.vmem %s94_s29, 16  ;;  %s10708_s23 = scalar_lea.vmem %s94_s29, 32 }
  0x72   :  { %p10705_p9 = scmp.ne.s32.totalorder %s94_s29, %s10704_s22  ;;  %p10709_p10 = scmp.lt.s32.totalorder %s94_s29, %s94_s29 }
  0x73   :  { %p10710_p11 = scmp.lt.s32.totalorder %s10708_s23, %s10704_s22 }
  0x75   :  { %p10711_p12 = por %p10710_p11, %p10709_p10 }
  0x77   :  { %p10712_p13 = pnand %p10711_p12, %p10705_p9 }
  0x79   :  { %10715 = shalt.err (!%p10712_p13)
}
  0x7a   :  { %96 = dma.hbm_to_vmem [thread:$0]  %s11167_s6, 16, %s94_s29, [#allocation12]  }
  0x7b   :  { %s10761_s3 = smov [#allocation14]   ;;  %s10716_s27 = scalar_lea.hbm %s11168_s7, 16 }
  0x7c   :  { %s103_s0 = sshll.u32 %s10761_s3, 4  ;;  %p10717_p0 = scmp.ne.s32.totalorder %s11168_s7, %s10716_s27  ;;  %s104_s0 = int_to_ptr.vmem [resolvable:$true] %s103_s0 }
  0x7d   :  { %p10720_p1 = scmp.lt.u32.totalorder %s10716_s27, %s11168_s7 }
  0x7f   :  { %p10722_p2 = pnand %p10720_p1, %p10717_p0 }
  0x81   :  { %10725 = shalt.err (!%p10722_p2)
}
  0x82   :  { %s10726_s1 = scalar_lea.vmem %s104_s0, 16  ;;  %s10730_s6 = scalar_lea.vmem %s104_s0, 32 }
  0x83   :  { %p10727_p3 = scmp.ne.s32.totalorder %s104_s0, %s10726_s1  ;;  %p10731_p4 = scmp.lt.s32.totalorder %s104_s0, %s104_s0 }
  0x84   :  { %p10732_p5 = scmp.lt.s32.totalorder %s10730_s6, %s10726_s1 }
  0x86   :  { %p10733_p6 = por %p10732_p5, %p10731_p4 }
  0x88   :  { %p10734_p7 = pnand %p10733_p6, %p10727_p3 }
  0x8a   :  { %10737 = shalt.err (!%p10734_p7)
}
  0x8b   :  { %106 = dma.hbm_to_vmem [thread:$0]  %s11168_s7, 16, %s104_s0, [#allocation15]  }
  0x8c   :  { %10738 = dma.done.wait [#allocation4], 128  }
  0x8d   :  { %10739 = vsyncadd [#allocation4], 4294967168 }
  0x8e   :  { %10740 = dma.done.wait [#allocation6], 8448  }
  0x8f   :  { %10741 = vsyncadd [#allocation6], 4294958848 }
  0x90   :  { %10742 = dma.done.wait [#allocation9], 131200  }
  0x91   :  { %10743 = vsyncadd [#allocation9], 4294836096 }
  0x92   :  { %10744 = dma.done.wait [#allocation12], 8208  }
  0x93   :  { %10745 = vsyncadd [#allocation12], 4294959088 }
  0x94   :  { %10746 = dma.done.wait [#allocation15], 16  }
  0x95   :  { %10747 = vsyncadd [#allocation15], 4294967280  ;;  %v10762_v1 = vmov 0.0   ;;  %v136_v2 = vld [vmem:[#allocation5 + $0x8] sm:$0xff]  ;;  %v135_v4 = vld [vmem:[#allocation5] sm:$0xff]  ;;  %vm283_vm0 = vcmask 261120  }
  0x96   :  { %351 = vmatprep.mubr.f32.mxu0 %v10762_v1  ;;  %422 = vmatprep.mubr.f32.mxu1 %v10762_v1  ;;  %v152_v3 = vld [vmem:[#allocation5 + $0x88] sm:$0xff]  ;;  %v151_v6 = vld [vmem:[#allocation5 + $0x80] sm:$0xff]  ;;  %v138_v13 = vld [vmem:[#allocation5 + $0x18] sm:$0xff]  ;;  %vm9099_vm1 = vcmask 7168  }
  0x97   :  { %v10297_v5 = vpack.c.bf16 %v152_v3, %v136_v2  ;;  %v168_v7 = vld [vmem:[#allocation5 + $0x108] sm:$0xff]  ;;  %v10299_v9 = vpack.c.bf16 %v151_v6, %v135_v4  ;;  %v167_v11 = vld [vmem:[#allocation5 + $0x100] sm:$0xff]  ;;  %v154_v14 = vld [vmem:[#allocation5 + $0x98] sm:$0xff] }
  0x98   :  { %v184_v8 = vld [vmem:[#allocation5 + $0x188] sm:$0xff]  ;;  %v183_v12 = vld [vmem:[#allocation5 + $0x180] sm:$0xff]  ;;  %v137_v15 = vld [vmem:[#allocation5 + $0x10] sm:$0xff]  ;;  %v10305_v17 = vpack.c.bf16 %v154_v14, %v138_v13 }
  0x99   :  { %v10301_v10 = vpack.c.bf16 %v184_v8, %v168_v7  ;;  %10298 = vmatprep.subr.bf16.mxu0 %v10297_v5  ;;  %v10303_v16 = vpack.c.bf16 %v183_v12, %v167_v11  ;;  %v153_v18 = vld [vmem:[#allocation5 + $0x90] sm:$0xff]  ;;  %v170_v19 = vld [vmem:[#allocation5 + $0x118] sm:$0xff]  ;;  %v140_v25 = vld [vmem:[#allocation5 + $0x28] sm:$0xff] }
  0x9a   :  { %10300 = vmatpush1.bf16.msra.mxu0 %v10299_v9  ;;  %v186_v20 = vld [vmem:[#allocation5 + $0x198] sm:$0xff]  ;;  %v10307_v21 = vpack.c.bf16 %v153_v18, %v137_v15  ;;  %v169_v23 = vld [vmem:[#allocation5 + $0x110] sm:$0xff]  ;;  %10306 = vmatprep.subr.bf16.mxu1 %v10305_v17  ;;  %v156_v27 = vld [vmem:[#allocation5 + $0xa8] sm:$0xff] }
  0x9b   :  { %10302 = vmatprep.subr.bf16.mxu0 %v10301_v10  ;;  %v10309_v22 = vpack.c.bf16 %v186_v20, %v170_v19  ;;  %v185_v24 = vld [vmem:[#allocation5 + $0x190] sm:$0xff]  ;;  %v10914_v26 = vld [vmem:[#allocation3] sm:$0xff]  ;;  %v139_v28 = vld [vmem:[#allocation5 + $0x20] sm:$0xff]  ;;  %v10313_v31 = vpack.c.bf16 %v156_v27, %v140_v25 }
  0x9c   :  { %v155_v29 = vld [vmem:[#allocation5 + $0xa0] sm:$0xff]  ;;  %10308 = vmatpush1.bf16.msra.mxu1 %v10307_v21  ;;  %v10311_v30 = vpack.c.bf16 %v185_v24, %v169_v23  ;;  %v172_v32 = vld [vmem:[#allocation5 + $0x128] sm:$0xff]  ;;  %v142_v37 = vld [vmem:[#allocation5 + $0x38] sm:$0xff] }
  0x9d   :  { %v188_v33 = vld [vmem:[#allocation5 + $0x1a8] sm:$0xff]  ;;  %v171_v34 = vld [vmem:[#allocation5 + $0x120] sm:$0xff]  ;;  %10310 = vmatprep.subr.bf16.mxu1 %v10309_v22  ;;  %v10315_v35 = vpack.c.bf16 %v155_v29, %v139_v28  ;;  %v158_v38 = vld [vmem:[#allocation5 + $0xb8] sm:$0xff] }
  0x9e   :  { %10304 = vmatpush1.bf16.msra.mxu0 %v10303_v16  ;;  %v187_v36 = vld [vmem:[#allocation5 + $0x1a0] sm:$0xff]  ;;  %v10317_v39 = vpack.c.bf16 %v188_v33, %v172_v32  ;;  %v10321_v40 = vpack.c.bf16 %v158_v38, %v142_v37  ;;  %v141_v41 = vld [vmem:[#allocation5 + $0x30] sm:$0xff]  ;;  %v174_v43 = vld [vmem:[#allocation5 + $0x138] sm:$0xff] }
  0x9f   :  { %10314 = vmatprep.subr.bf16.mxu0 %v10313_v31  ;;  %v157_v42 = vld [vmem:[#allocation5 + $0xb0] sm:$0xff]  ;;  %v190_v44 = vld [vmem:[#allocation5 + $0x1b8] sm:$0xff]  ;;  %v144_v46 = vld [vmem:[#allocation5 + $0x48] sm:$0xff]  ;;  %v10319_v48 = vpack.c.bf16 %v187_v36, %v171_v34 }
  0xa0   :  { %10312 = vmatpush1.bf16.msra.mxu1 %v10311_v30  ;;  %v10323_v45 = vpack.c.bf16 %v157_v42, %v141_v41  ;;  %v160_v47 = vld [vmem:[#allocation5 + $0xc8] sm:$0xff]  ;;  %v10325_v49 = vpack.c.bf16 %v190_v44, %v174_v43  ;;  %v173_v50 = vld [vmem:[#allocation5 + $0x130] sm:$0xff]  ;;  %v146_v52 = vld [vmem:[#allocation5 + $0x58] sm:$0xff] }
  0xa1   :  { %9110 = vmatmul.mubr.msk.f32.vlgmr.msra.gmra.mrb[0].mxu0 %vm283_vm0, %v10914_v26  ;;  %v189_v51 = vld [vmem:[#allocation5 + $0x1b0] sm:$0xff]  ;;  %10322 = vmatprep.subr.bf16.mxu1 %v10321_v40  ;;  %v10329_v53 = vpack.c.bf16 %v160_v47, %v144_v46  ;;  %v162_v54 = vld [vmem:[#allocation5 + $0xd8] sm:$0xff]  ;;  %v143_v55 = vld [vmem:[#allocation5 + $0x40] sm:$0xff] }
  0xa2   :  { %10316 = vmatpush1.bf16.msra.mxu0 %v10315_v35  ;;  %493 = vmatprep.mubr.f32.mxu0 %v10762_v1  ;;  %v159_v56 = vld [vmem:[#allocation5 + $0xc0] sm:$0xff]  ;;  %v176_v57 = vld [vmem:[#allocation5 + $0x148] sm:$0xff]  ;;  %v10327_v59 = vpack.c.bf16 %v189_v51, %v173_v50  ;;  %v10337_v60 = vpack.c.bf16 %v162_v54, %v146_v52  ;;  %v145_v62 = vld [vmem:[#allocation5 + $0x50] sm:$0xff] }
  0xa3   :  { %10318 = vmatprep.subr.bf16.mxu0 %v10317_v39  ;;  %9111 = vmatmul.mubr.msk.f32.vlgmr.msra.gmra.mrb[0].mxu1 %vm283_vm0, %v10914_v26  ;;  %v192_v58 = vld [vmem:[#allocation5 + $0x1c8] sm:$0xff]  ;;  %v10331_v61 = vpack.c.bf16 %v159_v56, %v143_v55  ;;  %v161_v63 = vld [vmem:[#allocation5 + $0xd0] sm:$0xff]  ;;  %v178_v0 = vld [vmem:[#allocation5 + $0x158] sm:$0xff] }
  0xa4   :  { %10324 = vmatpush1.bf16.msra.mxu1 %v10323_v45  ;;  %564 = vmatprep.mubr.f32.mxu1 %v10762_v1  ;;  %v10333_v2 = vpack.c.bf16 %v192_v58, %v176_v57  ;;  %v194_v3 = vld [vmem:[#allocation5 + $0x1d8] sm:$0xff]  ;;  %v175_v4 = vld [vmem:[#allocation5 + $0x140] sm:$0xff]  ;;  %v148_v6 = vld [vmem:[#allocation5 + $0x68] sm:$0xff]  ;;  %v10339_v8 = vpack.c.bf16 %v161_v63, %v145_v62 }
  0xa5   :  { %10326 = vmatprep.subr.bf16.mxu1 %v10325_v49  ;;  %v191_v5 = vld [vmem:[#allocation5 + $0x1c0] sm:$0xff]  ;;  %v164_v7 = vld [vmem:[#allocation5 + $0xe8] sm:$0xff]  ;;  %v10341_v9 = vpack.c.bf16 %v194_v3, %v178_v0  ;;  %v177_v11 = vld [vmem:[#allocation5 + $0x150] sm:$0xff] }
  0xa6   :  { %10320 = vmatpush1.bf16.msra.mxu0 %v10319_v48  ;;  %v10335_v10 = vpack.c.bf16 %v191_v5, %v175_v4  ;;  %v193_v12 = vld [vmem:[#allocation5 + $0x1d0] sm:$0xff]  ;;  %v150_v13 = vld [vmem:[#allocation5 + $0x78] sm:$0xff]  ;;  %v10345_v14 = vpack.c.bf16 %v164_v7, %v148_v6  ;;  %v147_v16 = vld [vmem:[#allocation5 + $0x60] sm:$0xff] }
  0xa7   :  { %10330 = vmatprep.subr.bf16.mxu0 %v10329_v53  ;;  %v166_v15 = vld [vmem:[#allocation5 + $0xf8] sm:$0xff]  ;;  %v163_v17 = vld [vmem:[#allocation5 + $0xe0] sm:$0xff]  ;;  %v180_v18 = vld [vmem:[#allocation5 + $0x168] sm:$0xff]  ;;  %v10343_v20 = vpack.c.bf16 %v193_v12, %v177_v11 }
  0xa8   :  { %10328 = vmatpush1.bf16.msra.mxu1 %v10327_v59  ;;  %v196_v19 = vld [vmem:[#allocation5 + $0x1e8] sm:$0xff]  ;;  %v10353_v21 = vpack.c.bf16 %v166_v15, %v150_v13  ;;  %v10347_v22 = vpack.c.bf16 %v163_v17, %v147_v16  ;;  %v149_v23 = vld [vmem:[#allocation5 + $0x70] sm:$0xff]  ;;  %v182_v25 = vld [vmem:[#allocation5 + $0x178] sm:$0xff] }
  0xa9   :  { %9112 = vmatmul.mubr.msk.f32.vlgmr.msra.gmra.mrb[2].mxu0 %vm283_vm0, %v10914_v26  ;;  %10338 = vmatprep.subr.bf16.mxu1 %v10337_v60  ;;  %v165_v24 = vld [vmem:[#allocation5 + $0xf0] sm:$0xff]  ;;  %v10349_v27 = vpack.c.bf16 %v196_v19, %v180_v18  ;;  %v198_v28 = vld [vmem:[#allocation5 + $0x1f8] sm:$0xff]  ;;  %v179_v29 = vld [vmem:[#allocation5 + $0x160] sm:$0xff] }
  0xaa   :  { %10332 = vmatpush1.bf16.msra.mxu0 %v10331_v61  ;;  %635 = vmatprep.mubr.f32.mxu0 %v10762_v1  ;;  %v195_v30 = vld [vmem:[#allocation5 + $0x1e0] sm:$0xff]  ;;  %v887_v31 = vld [vmem:[#allocation8] sm:$0xff]  ;;  %v10355_v33 = vpack.c.bf16 %v165_v24, %v149_v23  ;;  %v10357_v34 = vpack.c.bf16 %v198_v28, %v182_v25  ;;  %v888_v39 = vld [vmem:[#allocation8 + $0x8] sm:$0xff] }
  0xab   :  { %10334 = vmatprep.subr.bf16.mxu0 %v10333_v2  ;;  %9113 = vmatmul.mubr.msk.f32.vlgmr.msra.gmra.mrb[2].mxu1 %vm283_vm0, %v10914_v26  ;;  %v891_v32 = vld [vmem:[#allocation8 + $0x20] sm:$0xff]  ;;  %v10351_v35 = vpack.c.bf16 %v195_v30, %v179_v29  ;;  %v892_v40 = vld [vmem:[#allocation8 + $0x28] sm:$0xff] }
  0xac   :  { %10340 = vmatpush1.bf16.msra.mxu1 %v10339_v8  ;;  %706 = vmatprep.mubr.f32.mxu1 %v10762_v1  ;;  %v181_v36 = vld [vmem:[#allocation5 + $0x170] sm:$0xff]  ;;  %v9119_v38 = vcombine.high %v887_v31, %v891_v32  ;;  %v9118_v44 = vcombine.low %v887_v31, %v891_v32  ;;  %v9121_v45 = vcombine.high %v888_v39, %v892_v40  ;;  %v896_v47 = vld [vmem:[#allocation8 + $0x48] sm:$0xff] }
  0xad   :  { %10342 = vmatprep.subr.bf16.mxu1 %v10341_v9  ;;  %v197_v37 = vld [vmem:[#allocation5 + $0x1f0] sm:$0xff]  ;;  %v900_v48 = vld [vmem:[#allocation8 + $0x68] sm:$0xff]  ;;  %v9120_v51 = vcombine.low %v888_v39, %v892_v40 }
  0xae   :  { %10336 = vmatpush1.bf16.msra.mxu0 %v10335_v10  ;;  %v895_v41 = vld [vmem:[#allocation8 + $0x40] sm:$0xff]  ;;  %v10359_v43 = vpack.c.bf16 %v197_v37, %v181_v36  ;;  %v9129_v53 = vcombine.high %v896_v47, %v900_v48  ;;  %v904_v54 = vld [vmem:[#allocation8 + $0x88] sm:$0xff]  ;;  %v9128_v58 = vcombine.low %v896_v47, %v900_v48 }
  0xaf   :  { %10346 = vmatprep.subr.bf16.mxu0 %v10345_v14  ;;  %v899_v42 = vld [vmem:[#allocation8 + $0x60] sm:$0xff]  ;;  %v908_v55 = vld [vmem:[#allocation8 + $0xa8] sm:$0xff] }
  0xb0   :  { %10344 = vmatpush1.bf16.msra.mxu1 %v10343_v20  ;;  %v9127_v46 = vcombine.high %v895_v41, %v899_v42  ;;  %v903_v49 = vld [vmem:[#allocation8 + $0x80] sm:$0xff]  ;;  %v9126_v52 = vcombine.low %v895_v41, %v899_v42  ;;  %v912_v59 = vld [vmem:[#allocation8 + $0xc8] sm:$0xff]  ;;  %v9137_v62 = vcombine.high %v904_v54, %v908_v55  ;;  %v9136_v3 = vcombine.low %v904_v54, %v908_v55 }
  0xb1   :  { %9114 = vmatmul.mubr.msk.f32.vlgmr.msra.gmra.mrb[4].mxu0 %vm283_vm0, %v10914_v26  ;;  %10354 = vmatprep.subr.bf16.mxu1 %v10353_v21  ;;  %v907_v50 = vld [vmem:[#allocation8 + $0xa0] sm:$0xff]  ;;  %v916_v60 = vld [vmem:[#allocation8 + $0xe8] sm:$0xff] }
  0xb2   :  { %10348 = vmatpush1.bf16.msra.mxu0 %v10347_v22  ;;  %777 = vmatprep.mubr.f32.mxu0 %v10762_v1  ;;  %v911_v56 = vld [vmem:[#allocation8 + $0xc0] sm:$0xff]  ;;  %v9134_v61 = vcombine.low %v903_v49, %v907_v50  ;;  %v920_v4 = vld [vmem:[#allocation8 + $0x108] sm:$0xff]  ;;  %v9145_v6 = vcombine.high %v912_v59, %v916_v60  ;;  %v9144_v10 = vcombine.low %v912_v59, %v916_v60 }
  0xb3   :  { %10350 = vmatprep.subr.bf16.mxu0 %v10349_v27  ;;  %9115 = vmatmul.mubr.msk.f32.vlgmr.msra.gmra.mrb[4].mxu1 %vm283_vm0, %v10914_v26  ;;  %v915_v57 = vld [vmem:[#allocation8 + $0xe0] sm:$0xff]  ;;  %v924_v5 = vld [vmem:[#allocation8 + $0x128] sm:$0xff] }
  0xb4   :  { %10356 = vmatpush1.bf16.msra.mxu1 %v10355_v33  ;;  %848 = vmatprep.mubr.f32.mxu1 %v10762_v1  ;;  %v9135_v1 = vcombine.high %v903_v49, %v907_v50  ;;  %v919_v63 = vld [vmem:[#allocation8 + $0x100] sm:$0xff]  ;;  %v9143_v2 = vcombine.high %v911_v56, %v915_v57  ;;  %v928_v11 = vld [vmem:[#allocation8 + $0x148] sm:$0xff]  ;;  %v9153_v14 = vcombine.high %v920_v4, %v924_v5 }
  0xb5   :  { %10358 = vmatprep.subr.bf16.mxu1 %v10357_v34  ;;  %v923_v0 = vld [vmem:[#allocation8 + $0x120] sm:$0xff]  ;;  %v932_v12 = vld [vmem:[#allocation8 + $0x168] sm:$0xff]  ;;  %v9152_v18 = vcombine.low %v920_v4, %v924_v5 }
  0xb6   :  { %10352 = vmatpush1.bf16.msra.mxu0 %v10351_v35  ;;  %v927_v7 = vld [vmem:[#allocation8 + $0x140] sm:$0xff]  ;;  %v9151_v9 = vcombine.high %v919_v63, %v923_v0  ;;  %v9150_v13 = vcombine.low %v919_v63, %v923_v0  ;;  %v936_v19 = vld [vmem:[#allocation8 + $0x188] sm:$0xff]  ;;  %v9161_v22 = vcombine.high %v928_v11, %v932_v12  ;;  %v9160_v27 = vcombine.low %v928_v11, %v932_v12 }
  0xb7   :  { %7073 = vmatprep.subr.bf16.mxu0 %v9119_v38  ;;  %v931_v8 = vld [vmem:[#allocation8 + $0x160] sm:$0xff]  ;;  %v940_v20 = vld [vmem:[#allocation8 + $0x1a8] sm:$0xff] }
  0xb8   :  { %10360 = vmatpush1.bf16.msra.mxu1 %v10359_v43  ;;  %v935_v15 = vld [vmem:[#allocation8 + $0x180] sm:$0xff]  ;;  %v9159_v17 = vcombine.high %v927_v7, %v931_v8  ;;  %v9158_v21 = vcombine.low %v927_v7, %v931_v8  ;;  %v944_v28 = vld [vmem:[#allocation8 + $0x1c8] sm:$0xff]  ;;  %v9169_v31 = vcombine.high %v936_v19, %v940_v20  ;;  %v9168_v35 = vcombine.low %v936_v19, %v940_v20 }
  0xb9   :  { %9116 = vmatmul.mubr.msk.f32.vlgmr.msra.gmra.mrb[6].mxu0 %vm283_vm0, %v10914_v26  ;;  %7401 = vmatprep.subr.bf16.mxu1 %v9121_v45  ;;  %v939_v16 = vld [vmem:[#allocation8 + $0x1a0] sm:$0xff]  ;;  %v948_v29 = vld [vmem:[#allocation8 + $0x1e8] sm:$0xff] }
  0xba   :  { %7074 = vmatpush1.bf16.msra.mxu0 %v9118_v44  ;;  %v943_v23 = vld [vmem:[#allocation8 + $0x1c0] sm:$0xff]  ;;  %v9167_v25 = vcombine.high %v935_v15, %v939_v16  ;;  %v9166_v30 = vcombine.low %v935_v15, %v939_v16  ;;  %v952_v36 = vld [vmem:[#allocation8 + $0x208] sm:$0xff]  ;;  %v9177_v39 = vcombine.high %v944_v28, %v948_v29  ;;  %v9176_v43 = vcombine.low %v944_v28, %v948_v29 }
  0xbb   :  { %7075 = vmatprep.subr.bf16.mxu0 %v9127_v46  ;;  %9117 = vmatmul.mubr.msk.f32.vlgmr.msra.gmra.mrb[6].mxu1 %vm283_vm0, %v10914_v26  ;;  %v9142_v26 = vcombine.low %v911_v56, %v915_v57  ;;  %v947_v24 = vld [vmem:[#allocation8 + $0x1e0] sm:$0xff]  ;;  %v956_v37 = vld [vmem:[#allocation8 + $0x228] sm:$0xff] }
  0xbc   :  { %7402 = vmatpush1.bf16.msra.mxu1 %v9120_v51  ;;  %v951_v32 = vld [vmem:[#allocation8 + $0x200] sm:$0xff]  ;;  %v9175_v34 = vcombine.high %v943_v23, %v947_v24  ;;  %v9174_v38 = vcombine.low %v943_v23, %v947_v24  ;;  %v960_v44 = vld [vmem:[#allocation8 + $0x248] sm:$0xff]  ;;  %v9185_v47 = vcombine.high %v952_v36, %v956_v37  ;;  %v9184_v51 = vcombine.low %v952_v36, %v956_v37 }
  0xbd   :  { %7403 = vmatprep.subr.bf16.mxu1 %v9129_v53  ;;  %v955_v33 = vld [vmem:[#allocation8 + $0x220] sm:$0xff]  ;;  %v964_v45 = vld [vmem:[#allocation8 + $0x268] sm:$0xff] }
  0xbe   :  { %7076 = vmatpush1.bf16.msra.mxu0 %v9126_v52  ;;  %v959_v40 = vld [vmem:[#allocation8 + $0x240] sm:$0xff]  ;;  %v9183_v42 = vcombine.high %v951_v32, %v955_v33  ;;  %v9182_v46 = vcombine.low %v951_v32, %v955_v33  ;;  %v968_v52 = vld [vmem:[#allocation8 + $0x288] sm:$0xff]  ;;  %v9193_v54 = vcombine.high %v960_v44, %v964_v45 }
  0xbf   :  { %7077 = vmatprep.subr.bf16.mxu0 %v9135_v1  ;;  %v963_v41 = vld [vmem:[#allocation8 + $0x260] sm:$0xff]  ;;  %v972_v53 = vld [vmem:[#allocation8 + $0x2a8] sm:$0xff] }
  0xc0   :  { %7404 = vmatpush1.bf16.msra.mxu1 %v9128_v58  ;;  %v967_v48 = vld [vmem:[#allocation8 + $0x280] sm:$0xff]  ;;  %v9191_v50 = vcombine.high %v959_v40, %v963_v41  ;;  %v9190_v1 = vcombine.low %v959_v40, %v963_v41  ;;  %v9192_v58 = vcombine.low %v960_v44, %v964_v45  ;;  %v976_v59 = vld [vmem:[#allocation8 + $0x2c8] sm:$0xff]  ;;  %v203_v45 = vlaneseq }
  0xc1   :  { %7405 = vmatprep.subr.bf16.mxu1 %v9137_v62  ;;  %v971_v49 = vld [vmem:[#allocation8 + $0x2a0] sm:$0xff]  ;;  %v980_v60 = vld [vmem:[#allocation8 + $0x2e8] sm:$0xff]  ;;  %v9201_v62 = vcombine.high %v968_v52, %v972_v53 }
  0xc2   :  { %7078 = vmatpush1.bf16.msra.mxu0 %v9134_v61  ;;  %v975_v55 = vld [vmem:[#allocation8 + $0x2c0] sm:$0xff]  ;;  %v9199_v57 = vcombine.high %v967_v48, %v971_v49  ;;  %v9198_v61 = vcombine.low %v967_v48, %v971_v49  ;;  %v984_v4 = vld [vmem:[#allocation8 + $0x308] sm:$0xff]  ;;  %v10943_v48 = vld [vmem:[#allocation7] sm:$0xff] }
  0xc3   :  { %7079 = vmatprep.subr.bf16.mxu0 %v9143_v2  ;;  %v979_v56 = vld [vmem:[#allocation8 + $0x2e0] sm:$0xff]  ;;  %v988_v5 = vld [vmem:[#allocation8 + $0x328] sm:$0xff] }
  0xc4   :  { %7406 = vmatpush1.bf16.msra.mxu1 %v9136_v3  ;;  %v983_v63 = vld [vmem:[#allocation8 + $0x300] sm:$0xff]  ;;  %v9207_v2 = vcombine.high %v975_v55, %v979_v56  ;;  %v9200_v3 = vcombine.low %v968_v52, %v972_v53  ;;  %v992_v11 = vld [vmem:[#allocation8 + $0x348] sm:$0xff]  ;;  %v9216_v16 = vcombine.low %v984_v4, %v988_v5 }
  0xc5   :  { %7407 = vmatprep.subr.bf16.mxu1 %v9145_v6  ;;  %v987_v0 = vld [vmem:[#allocation8 + $0x320] sm:$0xff]  ;;  %v9209_v6 = vcombine.high %v976_v59, %v980_v60  ;;  %v996_v12 = vld [vmem:[#allocation8 + $0x368] sm:$0xff] }
  0xc6   :  { %7080 = vmatpush1.bf16.msra.mxu0 %v9142_v26  ;;  %v9206_v26 = vcombine.low %v975_v55, %v979_v56  ;;  %v991_v7 = vld [vmem:[#allocation8 + $0x340] sm:$0xff]  ;;  %v9224_v19 = vcombine.low %v992_v11, %v996_v12  ;;  %v1004_v24 = vld [vmem:[#allocation8 + $0x3a8] sm:$0xff] }
  0xc7   :  { %7081 = vmatprep.subr.bf16.mxu0 %v9151_v9  ;;  %v995_v8 = vld [vmem:[#allocation8 + $0x360] sm:$0xff]  ;;  %v9215_v9 = vcombine.high %v983_v63, %v987_v0  ;;  %v1012_v33 = vld [vmem:[#allocation8 + $0x3e8] sm:$0xff] }
  0xc8   :  { %7408 = vmatpush1.bf16.msra.mxu1 %v9144_v10  ;;  %v9208_v10 = vcombine.low %v976_v59, %v980_v60  ;;  %v9223_v15 = vcombine.high %v991_v7, %v995_v8  ;;  %v999_v20 = vld [vmem:[#allocation8 + $0x380] sm:$0xff]  ;;  %v1020_v41 = vld [vmem:[#allocation8 + $0x428] sm:$0xff] }
  0xc9   :  { %7409 = vmatprep.subr.bf16.mxu1 %v9153_v14  ;;  %v9217_v14 = vcombine.high %v984_v4, %v988_v5  ;;  %v1007_v29 = vld [vmem:[#allocation8 + $0x3c0] sm:$0xff] }
  0xca   :  { %7082 = vmatpush1.bf16.msra.mxu0 %v9150_v13  ;;  %v9214_v13 = vcombine.low %v983_v63, %v987_v0  ;;  %v1015_v37 = vld [vmem:[#allocation8 + $0x400] sm:$0xff]  ;;  %v1028_v63 = vld [vmem:[#allocation8 + $0x468] sm:$0xff] }
  0xcb   :  { %7083 = vmatprep.subr.bf16.mxu0 %v9159_v17  ;;  %v9222_v17 = vcombine.low %v991_v7, %v995_v8  ;;  %v1035_v8 = vld [vmem:[#allocation8 + $0x4a0] sm:$0xff] }
  0xcc   :  { %7410 = vmatpush1.bf16.msra.mxu1 %v9152_v18  ;;  %v9225_v18 = vcombine.high %v992_v11, %v996_v12 }
  0xcd   :  { %7411 = vmatprep.subr.bf16.mxu1 %v9161_v22  ;;  %v1000_v22 = vld [vmem:[#allocation8 + $0x388] sm:$0xff] }
  0xce   :  { %7084 = vmatpush1.bf16.msra.mxu0 %v9158_v21  ;;  %v1003_v21 = vld [vmem:[#allocation8 + $0x3a0] sm:$0xff]  ;;  %v9233_v28 = vcombine.high %v1000_v22, %v1004_v24 }
  0xcf   :  { %7085 = vmatprep.subr.bf16.mxu0 %v9167_v25  ;;  %v9231_v23 = vcombine.high %v999_v20, %v1003_v21  ;;  %v9230_v25 = vcombine.low %v999_v20, %v1003_v21  ;;  %v1043_v20 = vld [vmem:[#allocation8 + $0x4e0] sm:$0xff]  ;;  %v1040_v21 = vld [vmem:[#allocation8 + $0x4c8] sm:$0xff] }
  0xd0   :  { %7412 = vmatpush1.bf16.msra.mxu1 %v9160_v27  ;;  %v9232_v27 = vcombine.low %v1000_v22, %v1004_v24  ;;  %v1044_v22 = vld [vmem:[#allocation8 + $0x4e8] sm:$0xff] }
  0xd1   :  { %7413 = vmatprep.subr.bf16.mxu1 %v9169_v31  ;;  %v1008_v31 = vld [vmem:[#allocation8 + $0x3c8] sm:$0xff] }
  0xd2   :  { %7086 = vmatpush1.bf16.msra.mxu0 %v9166_v30  ;;  %v1011_v30 = vld [vmem:[#allocation8 + $0x3e0] sm:$0xff]  ;;  %v9241_v36 = vcombine.high %v1008_v31, %v1012_v33 }
  0xd3   :  { %7087 = vmatprep.subr.bf16.mxu0 %v9175_v34  ;;  %v9239_v32 = vcombine.high %v1007_v29, %v1011_v30  ;;  %v9238_v34 = vcombine.low %v1007_v29, %v1011_v30  ;;  %v1047_v29 = vld [vmem:[#allocation8 + $0x500] sm:$0xff] }
  0xd4   :  { %7414 = vmatpush1.bf16.msra.mxu1 %v9168_v35  ;;  %v9240_v35 = vcombine.low %v1008_v31, %v1012_v33  ;;  %v1051_v30 = vld [vmem:[#allocation8 + $0x520] sm:$0xff]  ;;  %v1048_v31 = vld [vmem:[#allocation8 + $0x508] sm:$0xff] }
  0xd5   :  { %7415 = vmatprep.subr.bf16.mxu1 %v9177_v39  ;;  %v1016_v39 = vld [vmem:[#allocation8 + $0x408] sm:$0xff] }
  0xd6   :  { %7088 = vmatpush1.bf16.msra.mxu0 %v9174_v38  ;;  %v1019_v38 = vld [vmem:[#allocation8 + $0x420] sm:$0xff]  ;;  %v9249_v44 = vcombine.high %v1016_v39, %v1020_v41 }
  0xd7   :  { %7089 = vmatprep.subr.bf16.mxu0 %v9183_v42  ;;  %v9247_v40 = vcombine.high %v1015_v37, %v1019_v38  ;;  %v9246_v42 = vcombine.low %v1015_v37, %v1019_v38  ;;  %v1055_v38 = vld [vmem:[#allocation8 + $0x540] sm:$0xff] }
  0xd8   :  { %7416 = vmatpush1.bf16.msra.mxu1 %v9176_v43  ;;  %v9248_v43 = vcombine.low %v1016_v39, %v1020_v41  ;;  %v1059_v39 = vld [vmem:[#allocation8 + $0x560] sm:$0xff] }
  0xd9   :  { %7417 = vmatprep.subr.bf16.mxu1 %v9185_v47 }
  0xda   :  { %7090 = vmatpush1.bf16.msra.mxu0 %v9182_v46  ;;  %v10938_v46 = vshrl.u32 %v203_v45, 7  ;;  %v200_v45 = vld [vmem:[#allocation7 + $0x8] sm:$0xff] }
  0xdb   :  { %7091 = vmatprep.subr.bf16.mxu0 %v9191_v50 }
  0xdc   :  { %7418 = vmatpush1.bf16.msra.mxu1 %v9184_v51  ;;  %v10941_v47 = vsub.s32 0, %v10938_v46  ;;  %v10946_v49 = vsub.s32 1, %v10938_v46  ;;  %v10951_v51 = vsub.s32 3, %v10938_v46 }
  0xdd   :  { %7419 = vmatprep.subr.bf16.mxu1 %v9193_v54 }
  0xde   :  { %7092 = vmatpush1.bf16.msra.mxu0 %v9190_v1  ;;  %v206_v50 = vrot.slane %v10943_v48, %v10941_v47  ;;  %v210_v52 = vrot.slane %v10943_v48, %v10946_v49  ;;  %v218_v55 = vrot.slane %v10943_v48, %v10951_v51 }
  0xdf   :  { %7093 = vmatprep.subr.bf16.mxu0 %v9199_v57 }
  0xe0   :  { %7420 = vmatpush1.bf16.msra.mxu1 %v9192_v58  ;;  %v1023_v58 = vld [vmem:[#allocation8 + $0x440] sm:$0xff] }
  0xe1   :  { %7421 = vmatprep.subr.bf16.mxu1 %v9201_v62  ;;  %v1024_v62 = vld [vmem:[#allocation8 + $0x448] sm:$0xff] }
  0xe2   :  { %7094 = vmatpush1.bf16.msra.mxu0 %v9198_v61  ;;  %v1027_v61 = vld [vmem:[#allocation8 + $0x460] sm:$0xff] }
  0xe3   :  { %7095 = vmatprep.subr.bf16.mxu0 %v9207_v2  ;;  %v9255_v5 = vcombine.high %v1023_v58, %v1027_v61 }
  0xe4   :  { %7422 = vmatpush1.bf16.msra.mxu1 %v9200_v3 }
  0xe5   :  { %7423 = vmatprep.subr.bf16.mxu1 %v9209_v6  ;;  %v1031_v6 = vld [vmem:[#allocation8 + $0x480] sm:$0xff] }
  0xe6   :  { %7096 = vmatpush1.bf16.msra.mxu0 %v9206_v26  ;;  %v9257_v26 = vcombine.high %v1024_v62, %v1028_v63 }
  0xe7   :  { %7097 = vmatprep.subr.bf16.mxu0 %v9215_v9  ;;  %v1032_v9 = vld [vmem:[#allocation8 + $0x488] sm:$0xff] }
  0xe8   :  { %7424 = vmatpush1.bf16.msra.mxu1 %v9208_v10  ;;  %v1036_v10 = vld [vmem:[#allocation8 + $0x4a8] sm:$0xff] }
  0xe9   :  { %7425 = vmatprep.subr.bf16.mxu1 %v9217_v14  ;;  %v9254_v14 = vcombine.low %v1023_v58, %v1027_v61  ;;  %v9264_v24 = vcombine.low %v1032_v9, %v1036_v10  ;;  %v1064_v61 = vld [vmem:[#allocation8 + $0x588] sm:$0xff] }
  0xea   :  { %7098 = vmatpush1.bf16.msra.mxu0 %v9214_v13 }
  0xeb   :  { %7099 = vmatprep.subr.bf16.mxu0 %v9223_v15  ;;  %v9256_v15 = vcombine.low %v1024_v62, %v1028_v63  ;;  %v1068_v62 = vld [vmem:[#allocation8 + $0x5a8] sm:$0xff]  ;;  %v10991_v63 = vsub.s32 4, %v10938_v46 }
  0xec   :  { %7426 = vmatpush1.bf16.msra.mxu1 %v9216_v16  ;;  %v9263_v16 = vcombine.high %v1031_v6, %v1035_v8 }
  0xed   :  { %7427 = vmatprep.subr.bf16.mxu1 %v9225_v18  ;;  %v1039_v18 = vld [vmem:[#allocation8 + $0x4c0] sm:$0xff] }
  0xee   :  { %7100 = vmatpush1.bf16.msra.mxu0 %v9222_v17  ;;  %v9265_v17 = vcombine.high %v1032_v9, %v1036_v10  ;;  %v9270_v33 = vcombine.low %v1039_v18, %v1043_v20  ;;  %v9297_v10 = vcombine.high %v1064_v61, %v1068_v62 }
  0xef   :  { %7101 = vmatprep.subr.bf16.mxu0 %v9231_v23  ;;  %v9262_v23 = vcombine.low %v1031_v6, %v1035_v8  ;;  %v254_v6 = vrot.slane %v200_v45, %v10991_v63 }
  0xf0   :  { %7428 = vmatpush1.bf16.msra.mxu1 %v9224_v19 }
  0xf1   :  { %7429 = vmatprep.subr.bf16.mxu1 %v9233_v28  ;;  %v9273_v28 = vcombine.high %v1040_v21, %v1044_v22 }
  0xf2   :  { %7102 = vmatpush1.bf16.msra.mxu0 %v9230_v25 }
  0xf3   :  { %7103 = vmatprep.subr.bf16.mxu0 %v9239_v32  ;;  %v1052_v32 = vld [vmem:[#allocation8 + $0x528] sm:$0xff] }
  0xf4   :  { %7430 = vmatpush1.bf16.msra.mxu1 %v9232_v27  ;;  %v9271_v27 = vcombine.high %v1039_v18, %v1043_v20  ;;  %v9281_v37 = vcombine.high %v1048_v31, %v1052_v32  ;;  %v1075_v18 = vld [vmem:[#allocation8 + $0x5e0] sm:$0xff]  ;;  %v1072_v20 = vld [vmem:[#allocation8 + $0x5c8] sm:$0xff] }
  0xf5   :  { %7431 = vmatprep.subr.bf16.mxu1 %v9241_v36  ;;  %v9279_v36 = vcombine.high %v1047_v29, %v1051_v30 }
  0xf6   :  { %7104 = vmatpush1.bf16.msra.mxu0 %v9238_v34  ;;  %v9272_v34 = vcombine.low %v1040_v21, %v1044_v22  ;;  %v1076_v21 = vld [vmem:[#allocation8 + $0x5e8] sm:$0xff]  ;;  %v11004_v22 = vsub.s32 7, %v10938_v46 }
  0xf7   :  { %7114 = vmatprep.subr.bf16.mxu0 %v9247_v40  ;;  %v10982_v40 = vsub.s32 2, %v10938_v46 }
  0xf8   :  { %7432 = vmatpush1.bf16.msra.mxu1 %v9240_v35 }
  0xf9   :  { %7442 = vmatprep.subr.bf16.mxu1 %v9249_v44  ;;  %v1060_v44 = vld [vmem:[#allocation8 + $0x568] sm:$0xff] }
 0x174   :  { %v353_v53 = vpop.f32.mrb[0].mxu0 }
 0x175   :  { %v354_v1 = vadd.f32 %v353_v53, %v206_v50  ;;  %v355_v54 = vpop.f32.mrb[1].mxu0  ;;  %v246_v50 = vrot.slane %v200_v45, %v10982_v40  ;;  %v9280_v53 = vcombine.low %v1048_v31, %v1052_v32 }
 0x176   :  { %v356_v56 = vadd.f32 %v355_v54, %v210_v52  ;;  %v10957_v59 = vpop.f32.mrb[0].mxu1  ;;  %v9278_v52 = vcombine.low %v1047_v29, %v1051_v30  ;;  %v9296_v29 = vcombine.low %v1064_v61, %v1068_v62  ;;  %v266_v30 = vrot.slane %v200_v45, %v11004_v22  ;;  %v1099_v61 = vld [vmem:[#allocation8 + $0x6a0] sm:$0xff]  ;;  %v1096_v62 = vld [vmem:[#allocation8 + $0x688] sm:$0xff] }
 0x177   :  { %v855_v57 = vmax.f32 %v354_v1, 0.0  ;;  %v426_v0 = vpop.f32.mrb[1].mxu1  ;;  %v250_v1 = vrot.slane %v200_v45, %v10951_v51 }
 0x178   :  { %v856_v60 = vmax.f32 %v356_v56, 0.0  ;;  %v427_v2 = vadd.f32 %v426_v0, %v218_v55  ;;  %v9287_v55 = vcombine.high %v1055_v38, %v1059_v39  ;;  %v10994_v0 = vsub.s32 5, %v10938_v46 }
 0x179   :  { %v10961_v4 = vpack.c.bf16 %v855_v57, %v855_v57  ;;  %v1063_v57 = vld [vmem:[#allocation8 + $0x580] sm:$0xff] }
 0x17a   :  { %v10959_v3 = vpack.c.bf16 %v856_v60, %v856_v60  ;;  %v858_v7 = vmax.f32 %v427_v2, 0.0  ;;  %v1067_v60 = vld [vmem:[#allocation8 + $0x5a0] sm:$0xff]  ;;  %v258_v8 = vrot.slane %v200_v45, %v10994_v0 }
 0x17b   :  { %v9295_v9 = vcombine.high %v1063_v57, %v1067_v60 }
 0x17c   :  { %7105 = vmatprep.mubr.bf16.mxu0 %v10959_v3  ;;  %7433 = vmatprep.mubr.bf16.mxu1 %v10959_v3  ;;  %v10965_v11 = vpop.f32.mrb[2].mxu0  ;;  %v10969_v12 = vpack.c.bf16 %v858_v7, %v858_v7 }
 0x17d   :  { %7106 = vmatmul.mubr.bf16.vlgmr.msra.gmra.mrb[8].mxu0 %v10961_v4  ;;  %7434 = vmatmul.mubr.bf16.vlgmr.msra.gmra.mrb[8].mxu1 %v10961_v4  ;;  %v10971_v13 = vpop.f32.mrb[3].mxu0 }
 0x17e   :  { %7115 = vmatpush1.bf16.msra.mxu0 %v9246_v42  ;;  %7443 = vmatpush1.bf16.msra.mxu1 %v9248_v43  ;;  %v10973_v19 = vpop.f32.mrb[2].mxu1  ;;  %v1056_v43 = vld [vmem:[#allocation8 + $0x548] sm:$0xff] }
 0x17f   :  { %7116 = vmatprep.subr.bf16.mxu0 %v9255_v5  ;;  %7444 = vmatprep.subr.bf16.mxu1 %v9257_v26  ;;  %v10977_v25 = vpop.f32.mrb[3].mxu1  ;;  %v9289_v56 = vcombine.high %v1056_v43, %v1060_v44  ;;  %v9286_v5 = vcombine.low %v1055_v38, %v1059_v39  ;;  %v9288_v26 = vcombine.low %v1056_v43, %v1060_v44  ;;  %v1084_v38 = vld [vmem:[#allocation8 + $0x628] sm:$0xff] }
 0x180   :  { %7146 = vmatprep.mubr.bf16.mxu0 %v10969_v12  ;;  %7474 = vmatprep.mubr.bf16.mxu1 %v10969_v12  ;;  %v9304_v43 = vcombine.low %v1072_v20, %v1076_v21 }
 0x182   :  { %7117 = vmatpush1.bf16.msra.mxu0 %v9254_v14  ;;  %7445 = vmatpush1.bf16.msra.mxu1 %v9256_v15  ;;  %v1071_v14 = vld [vmem:[#allocation8 + $0x5c0] sm:$0xff]  ;;  %v11001_v15 = vsub.s32 6, %v10938_v46 }
 0x183   :  { %7118 = vmatprep.subr.bf16.mxu0 %v9263_v16  ;;  %7446 = vmatprep.subr.bf16.mxu1 %v9265_v17  ;;  %v9303_v32 = vcombine.high %v1071_v14, %v1075_v18 }
 0x184   :  { %v10979_v35 = vpop.f32.mrb[4].mxu0 }
 0x185   :  { %v10984_v41 = vpop.f32.mrb[5].mxu0 }
 0x186   :  { %7119 = vmatpush1.bf16.msra.mxu0 %v9262_v23  ;;  %7447 = vmatpush1.bf16.msra.mxu1 %v9264_v24  ;;  %v708_v42 = vpop.f32.mrb[4].mxu1 }
 0x187   :  { %7120 = vmatprep.subr.bf16.mxu0 %v9271_v27  ;;  %7448 = vmatprep.subr.bf16.mxu1 %v9273_v28  ;;  %v710_v54 = vpop.f32.mrb[5].mxu1  ;;  %v10988_v58 = vadd.f32 %v708_v42, %v246_v50  ;;  %v262_v27 = vrot.slane %v200_v45, %v11001_v15  ;;  %v9294_v28 = vcombine.low %v1063_v57, %v1067_v60  ;;  %v1087_v50 = vld [vmem:[#allocation8 + $0x640] sm:$0xff] }
 0x188   :  { %v10996_v2 = vadd.f32 %v710_v54, %v250_v1  ;;  %v9302_v42 = vcombine.low %v1071_v14, %v1075_v18  ;;  %v1092_v1 = vld [vmem:[#allocation8 + $0x668] sm:$0xff]  ;;  %v1095_v60 = vld [vmem:[#allocation8 + $0x680] sm:$0xff] }
 0x189   :  { %v1104_v14 = vld [vmem:[#allocation8 + $0x6c8] sm:$0xff] }
 0x18a   :  { %7121 = vmatpush1.bf16.msra.mxu0 %v9270_v33  ;;  %7449 = vmatpush1.bf16.msra.mxu1 %v9272_v34  ;;  %v9305_v33 = vcombine.high %v1072_v20, %v1076_v21  ;;  %v1079_v34 = vld [vmem:[#allocation8 + $0x600] sm:$0xff] }
 0x18b   :  { %7122 = vmatprep.subr.bf16.mxu0 %v9279_v36  ;;  %7450 = vmatprep.subr.bf16.mxu1 %v9281_v37  ;;  %v1083_v36 = vld [vmem:[#allocation8 + $0x620] sm:$0xff]  ;;  %v1080_v37 = vld [vmem:[#allocation8 + $0x608] sm:$0xff] }
 0x18c   :  { %v779_v7 = vpop.f32.mrb[6].mxu0  ;;  %v9311_v44 = vcombine.high %v1079_v34, %v1083_v36  ;;  %v9313_v45 = vcombine.high %v1080_v37, %v1084_v38  ;;  %v9310_v54 = vcombine.low %v1079_v34, %v1083_v36  ;;  %v1119_v36 = vld [vmem:[#allocation8 + $0x740] sm:$0xff] }
 0x18d   :  { %v781_v16 = vpop.f32.mrb[7].mxu0  ;;  %v11006_v23 = vadd.f32 %v779_v7, %v254_v6  ;;  %v9327_v7 = vcombine.high %v1095_v60, %v1099_v61 }
 0x18e   :  { %7123 = vmatpush1.bf16.msra.mxu0 %v9278_v52  ;;  %7451 = vmatpush1.bf16.msra.mxu1 %v9280_v53  ;;  %v850_v17 = vpop.f32.mrb[6].mxu1  ;;  %v11008_v24 = vadd.f32 %v781_v16, %v258_v8  ;;  %v1091_v52 = vld [vmem:[#allocation8 + $0x660] sm:$0xff]  ;;  %v1088_v53 = vld [vmem:[#allocation8 + $0x648] sm:$0xff] }
 0x18f   :  { %7124 = vmatprep.subr.bf16.mxu0 %v9287_v55  ;;  %7452 = vmatprep.subr.bf16.mxu1 %v9289_v56  ;;  %v852_v31 = vpop.f32.mrb[7].mxu1  ;;  %v11012_v46 = vadd.f32 %v850_v17, %v262_v27  ;;  %v9312_v55 = vcombine.low %v1080_v37, %v1084_v38  ;;  %v9319_v56 = vcombine.high %v1087_v50, %v1091_v52  ;;  %v1108_v16 = vld [vmem:[#allocation8 + $0x6e8] sm:$0xff]  ;;  %v1111_v27 = vld [vmem:[#allocation8 + $0x700] sm:$0xff] }
 0x190   :  { %v11014_v39 = vadd.f32 %v852_v31, %v266_v30  ;;  %v9321_v57 = vcombine.high %v1088_v53, %v1092_v1  ;;  %v9320_v6 = vcombine.low %v1088_v53, %v1092_v1  ;;  %v9326_v17 = vcombine.low %v1095_v60, %v1099_v61  ;;  %v1116_v30 = vld [vmem:[#allocation8 + $0x728] sm:$0xff]  ;;  %v1123_v37 = vld [vmem:[#allocation8 + $0x760] sm:$0xff] }
 0x191   :  { %v9337_v21 = vcombine.high %v1104_v14, %v1108_v16  ;;  %v1120_v38 = vld [vmem:[#allocation8 + $0x748] sm:$0xff]  ;;  %v1131_v53 = vld [vmem:[#allocation8 + $0x7a0] sm:$0xff] }
 0x192   :  { %7125 = vmatpush1.bf16.msra.mxu0 %v9286_v5  ;;  %7453 = vmatpush1.bf16.msra.mxu1 %v9288_v26  ;;  %v1100_v5 = vld [vmem:[#allocation8 + $0x6a8] sm:$0xff]  ;;  %v9318_v26 = vcombine.low %v1087_v50, %v1091_v52  ;;  %v1127_v52 = vld [vmem:[#allocation8 + $0x780] sm:$0xff] }
 0x193   :  { %7126 = vmatprep.subr.bf16.mxu0 %v9295_v9  ;;  %7454 = vmatprep.subr.bf16.mxu1 %v9297_v10  ;;  %v9329_v8 = vcombine.high %v1096_v62, %v1100_v5  ;;  %v1103_v9 = vld [vmem:[#allocation8 + $0x6c0] sm:$0xff]  ;;  %v9328_v18 = vcombine.low %v1096_v62, %v1100_v5  ;;  %v1128_v1 = vld [vmem:[#allocation8 + $0x788] sm:$0xff]  ;;  %v9359_v60 = vcombine.high %v1127_v52, %v1131_v53 }
 0x194   :  { %v1107_v10 = vld [vmem:[#allocation8 + $0x6e0] sm:$0xff] }
 0x195   :  { %v9335_v20 = vcombine.high %v1103_v9, %v1107_v10  ;;  %v9334_v31 = vcombine.low %v1103_v9, %v1107_v10  ;;  %v1135_v62 = vld [vmem:[#allocation8 + $0x7c0] sm:$0xff]  ;;  %v9358_v9 = vcombine.low %v1127_v52, %v1131_v53  ;;  %v1160_v52 = vld [vmem:[#allocation8 + $0x888] sm:$0xff] }
 0x196   :  { %7127 = vmatpush1.bf16.msra.mxu0 %v9294_v28  ;;  %7455 = vmatpush1.bf16.msra.mxu1 %v9296_v29  ;;  %v1115_v28 = vld [vmem:[#allocation8 + $0x720] sm:$0xff]  ;;  %v1112_v29 = vld [vmem:[#allocation8 + $0x708] sm:$0xff] }
 0x197   :  { %7128 = vmatprep.subr.bf16.mxu0 %v9303_v32  ;;  %7456 = vmatprep.subr.bf16.mxu1 %v9305_v33  ;;  %v9336_v32 = vcombine.low %v1104_v14, %v1108_v16  ;;  %v9343_v33 = vcombine.high %v1111_v27, %v1115_v28  ;;  %v9345_v34 = vcombine.high %v1112_v29, %v1116_v30  ;;  %v1139_v5 = vld [vmem:[#allocation8 + $0x7e0] sm:$0xff]  ;;  %v1164_v53 = vld [vmem:[#allocation8 + $0x8a8] sm:$0xff] }
 0x198   :  { %v9367_v14 = vcombine.high %v1135_v62, %v1139_v5 }
 0x19a   :  { %7129 = vmatpush1.bf16.msra.mxu0 %v9302_v42  ;;  %7457 = vmatpush1.bf16.msra.mxu1 %v9304_v43  ;;  %v1124_v42 = vld [vmem:[#allocation8 + $0x768] sm:$0xff]  ;;  %v9342_v43 = vcombine.low %v1111_v27, %v1115_v28 }
 0x19b   :  { %7130 = vmatprep.subr.bf16.mxu0 %v9311_v44  ;;  %7458 = vmatprep.subr.bf16.mxu1 %v9313_v45  ;;  %v9344_v44 = vcombine.low %v1112_v29, %v1116_v30  ;;  %v9351_v45 = vcombine.high %v1119_v36, %v1123_v37  ;;  %v9353_v50 = vcombine.high %v1120_v38, %v1124_v42 }
 0x19c   :  { %v9366_v29 = vcombine.low %v1135_v62, %v1139_v5  ;;  %v1168_v62 = vld [vmem:[#allocation8 + $0x8c8] sm:$0xff] }
 0x19d   :  { %v1172_v5 = vld [vmem:[#allocation8 + $0x8e8] sm:$0xff] }
 0x19e   :  { %7131 = vmatpush1.bf16.msra.mxu0 %v9310_v54  ;;  %7459 = vmatpush1.bf16.msra.mxu1 %v9312_v55  ;;  %v1132_v54 = vld [vmem:[#allocation8 + $0x7a8] sm:$0xff]  ;;  %v214_v55 = vrot.slane %v10943_v48, %v10982_v40 }
 0x19f   :  { %7132 = vmatprep.subr.bf16.mxu0 %v9319_v56  ;;  %7460 = vmatprep.subr.bf16.mxu1 %v9321_v57  ;;  %v9350_v56 = vcombine.low %v1119_v36, %v1123_v37  ;;  %v9352_v57 = vcombine.low %v1120_v38, %v1124_v42  ;;  %v9361_v61 = vcombine.high %v1128_v1, %v1132_v54  ;;  %v1156_v36 = vld [vmem:[#allocation8 + $0x868] sm:$0xff] }
 0x1a0   :  { %v9360_v10 = vcombine.low %v1128_v1, %v1132_v54 }
 0x1a2   :  { %7133 = vmatpush1.bf16.msra.mxu0 %v9318_v26  ;;  %7461 = vmatpush1.bf16.msra.mxu1 %v9320_v6  ;;  %v1136_v26 = vld [vmem:[#allocation8 + $0x7c8] sm:$0xff] }
 0x1a3   :  { %7134 = vmatprep.subr.bf16.mxu0 %v9327_v7  ;;  %7462 = vmatprep.subr.bf16.mxu1 %v9329_v8  ;;  %v1140_v6 = vld [vmem:[#allocation8 + $0x7e8] sm:$0xff]  ;;  %v226_v7 = vrot.slane %v10943_v48, %v10994_v0  ;;  %v425_v8 = vadd.f32 %v10957_v59, %v214_v55 }
 0x1a4   :  { %v9369_v16 = vcombine.high %v1136_v26, %v1140_v6  ;;  %v9368_v30 = vcombine.low %v1136_v26, %v1140_v6  ;;  %v9392_v6 = vcombine.low %v1160_v52, %v1164_v53 }
 0x1a5   :  { %v498_v27 = vadd.f32 %v10971_v13, %v226_v7  ;;  %v857_v28 = vmax.f32 %v425_v8, 0.0  ;;  %v9401_v8 = vcombine.high %v1168_v62, %v1172_v5 }
 0x1a6   :  { %7135 = vmatpush1.bf16.msra.mxu0 %v9326_v17  ;;  %7463 = vmatpush1.bf16.msra.mxu1 %v9328_v18  ;;  %v1143_v17 = vld [vmem:[#allocation8 + $0x800] sm:$0xff] }
 0x1a7   :  { %7136 = vmatprep.subr.bf16.mxu0 %v9335_v20  ;;  %7464 = vmatprep.subr.bf16.mxu1 %v9337_v21  ;;  %v1147_v18 = vld [vmem:[#allocation8 + $0x820] sm:$0xff]  ;;  %v1144_v20 = vld [vmem:[#allocation8 + $0x808] sm:$0xff]  ;;  %v860_v37 = vmax.f32 %v498_v27, 0.0  ;;  %v11022_v38 = vpack.c.bf16 %v857_v28, %v857_v28 }
 0x1a8   :  { %v1148_v21 = vld [vmem:[#allocation8 + $0x828] sm:$0xff]  ;;  %v9375_v59 = vcombine.high %v1143_v17, %v1147_v18  ;;  %v9374_v42 = vcombine.low %v1143_v17, %v1147_v18  ;;  %v9400_v18 = vcombine.low %v1168_v62, %v1172_v5  ;;  %v1183_v27 = vld [vmem:[#allocation8 + $0x940] sm:$0xff] }
 0x1a9   :  { %v9376_v13 = vcombine.low %v1144_v20, %v1148_v21  ;;  %v11024_v1 = vpack.c.bf16 %v860_v37, %v860_v37  ;;  %v1187_v28 = vld [vmem:[#allocation8 + $0x960] sm:$0xff]  ;;  %v1192_v37 = vld [vmem:[#allocation8 + $0x988] sm:$0xff] }
 0x1aa   :  { %7137 = vmatpush1.bf16.msra.mxu0 %v9334_v31  ;;  %7465 = vmatpush1.bf16.msra.mxu1 %v9336_v32  ;;  %v9377_v31 = vcombine.high %v1144_v20, %v1148_v21  ;;  %v1151_v32 = vld [vmem:[#allocation8 + $0x840] sm:$0xff]  ;;  %v1208_v5 = vld [vmem:[#allocation8 + $0xa08] sm:$0xff] }
 0x1ab   :  { %7138 = vmatprep.subr.bf16.mxu0 %v9343_v33  ;;  %7466 = vmatprep.subr.bf16.mxu1 %v9345_v34  ;;  %v1155_v33 = vld [vmem:[#allocation8 + $0x860] sm:$0xff]  ;;  %v1152_v34 = vld [vmem:[#allocation8 + $0x848] sm:$0xff] }
 0x1ac   :  { %v9382_v54 = vcombine.low %v1151_v32, %v1155_v33  ;;  %v9384_v55 = vcombine.low %v1152_v34, %v1156_v36  ;;  %v1211_v62 = vld [vmem:[#allocation8 + $0xa20] sm:$0xff] }
 0x1ae   :  { %7139 = vmatpush1.bf16.msra.mxu0 %v9342_v43  ;;  %7467 = vmatpush1.bf16.msra.mxu1 %v9344_v44  ;;  %v9383_v43 = vcombine.high %v1151_v32, %v1155_v33  ;;  %v9385_v44 = vcombine.high %v1152_v34, %v1156_v36  ;;  %v9415_v32 = vcombine.high %v1183_v27, %v1187_v28  ;;  %v1191_v34 = vld [vmem:[#allocation8 + $0x980] sm:$0xff] }
 0x1af   :  { %7140 = vmatprep.subr.bf16.mxu0 %v9351_v45  ;;  %7468 = vmatprep.subr.bf16.mxu1 %v9353_v50  ;;  %v1159_v45 = vld [vmem:[#allocation8 + $0x880] sm:$0xff] }
 0x1b0   :  { %v1163_v50 = vld [vmem:[#allocation8 + $0x8a0] sm:$0xff] }
 0x1b1   :  { %v9390_v26 = vcombine.low %v1159_v45, %v1163_v50  ;;  %v1195_v36 = vld [vmem:[#allocation8 + $0x9a0] sm:$0xff] }
 0x1b2   :  { %7141 = vmatpush1.bf16.msra.mxu0 %v9350_v56  ;;  %7469 = vmatpush1.bf16.msra.mxu1 %v9352_v57  ;;  %v9391_v56 = vcombine.high %v1159_v45, %v1163_v50  ;;  %v9393_v57 = vcombine.high %v1160_v52, %v1164_v53  ;;  %v1199_v50 = vld [vmem:[#allocation8 + $0x9c0] sm:$0xff]  ;;  %v1200_v53 = vld [vmem:[#allocation8 + $0x9c8] sm:$0xff] }
 0x1b3   :  { %7142 = vmatprep.subr.bf16.mxu0 %v9359_v60  ;;  %7470 = vmatprep.subr.bf16.mxu1 %v9361_v61  ;;  %v1167_v60 = vld [vmem:[#allocation8 + $0x8c0] sm:$0xff] }
 0x1b4   :  { %v1171_v61 = vld [vmem:[#allocation8 + $0x8e0] sm:$0xff] }
 0x1b5   :  { %v9399_v7 = vcombine.high %v1167_v60, %v1171_v61  ;;  %v9398_v17 = vcombine.low %v1167_v60, %v1171_v61  ;;  %v1203_v52 = vld [vmem:[#allocation8 + $0x9e0] sm:$0xff] }
 0x1b6   :  { %7143 = vmatpush1.bf16.msra.mxu0 %v9358_v9  ;;  %7471 = vmatpush1.bf16.msra.mxu1 %v9360_v10  ;;  %v1175_v9 = vld [vmem:[#allocation8 + $0x900] sm:$0xff] }
 0x1b7   :  { %7144 = vmatprep.subr.bf16.mxu0 %v9367_v14  ;;  %7472 = vmatprep.subr.bf16.mxu1 %v9369_v16  ;;  %v1179_v10 = vld [vmem:[#allocation8 + $0x920] sm:$0xff]  ;;  %v1176_v14 = vld [vmem:[#allocation8 + $0x908] sm:$0xff] }
 0x1b8   :  { %v1180_v16 = vld [vmem:[#allocation8 + $0x928] sm:$0xff]  ;;  %v9407_v20 = vcombine.high %v1175_v9, %v1179_v10  ;;  %v1207_v61 = vld [vmem:[#allocation8 + $0xa00] sm:$0xff] }
 0x1b9   :  { %v9409_v21 = vcombine.high %v1176_v14, %v1180_v16 }
 0x1ba   :  { %7145 = vmatpush1.bf16.msra.mxu0 %v9366_v29  ;;  %7473 = vmatpush1.bf16.msra.mxu1 %v9368_v30  ;;  %v1184_v29 = vld [vmem:[#allocation8 + $0x948] sm:$0xff] }
 0x1bb   :  { %7155 = vmatprep.subr.bf16.mxu0 %v9375_v59  ;;  %7483 = vmatprep.subr.bf16.mxu1 %v9377_v31  ;;  %v1188_v30 = vld [vmem:[#allocation8 + $0x968] sm:$0xff]  ;;  %v9406_v59 = vcombine.low %v1175_v9, %v1179_v10  ;;  %v9408_v31 = vcombine.low %v1176_v14, %v1180_v16  ;;  %v1215_v10 = vld [vmem:[#allocation8 + $0xa40] sm:$0xff] }
 0x1bc   :  { %v9417_v33 = vcombine.high %v1184_v29, %v1188_v30  ;;  %v1219_v14 = vld [vmem:[#allocation8 + $0xa60] sm:$0xff]  ;;  %v1216_v16 = vld [vmem:[#allocation8 + $0xa48] sm:$0xff] }
 0x1bd   :  { %7147 = vmatmul.mubr.bf16.vlgmr.msra.gmra.mrb[8].mxu0 %v11022_v38  ;;  %7475 = vmatmul.mubr.bf16.vlgmr.msra.gmra.mrb[8].mxu1 %v11022_v38 }
 0x1be   :  { %7156 = vmatpush1.bf16.msra.mxu0 %v9374_v42  ;;  %7484 = vmatpush1.bf16.msra.mxu1 %v9376_v13  ;;  %v1196_v42 = vld [vmem:[#allocation8 + $0x9a8] sm:$0xff]  ;;  %v9414_v13 = vcombine.low %v1183_v27, %v1187_v28  ;;  %v1223_v28 = vld [vmem:[#allocation8 + $0xa80] sm:$0xff] }
 0x1bf   :  { %7157 = vmatprep.subr.bf16.mxu0 %v9383_v43  ;;  %7485 = vmatprep.subr.bf16.mxu1 %v9385_v44  ;;  %v9416_v43 = vcombine.low %v1184_v29, %v1188_v30  ;;  %v9423_v44 = vcombine.high %v1191_v34, %v1195_v36  ;;  %v9425_v45 = vcombine.high %v1192_v37, %v1196_v42  ;;  %v1227_v29 = vld [vmem:[#allocation8 + $0xaa0] sm:$0xff]  ;;  %v1224_v30 = vld [vmem:[#allocation8 + $0xa88] sm:$0xff] }
 0x1c0   :  { %7187 = vmatprep.mubr.bf16.mxu0 %v11024_v1  ;;  %7515 = vmatprep.mubr.bf16.mxu1 %v11024_v1 }
 0x1c2   :  { %7158 = vmatpush1.bf16.msra.mxu0 %v9382_v54  ;;  %7486 = vmatpush1.bf16.msra.mxu1 %v9384_v55  ;;  %v1204_v54 = vld [vmem:[#allocation8 + $0x9e8] sm:$0xff]  ;;  %v9422_v55 = vcombine.low %v1191_v34, %v1195_v36  ;;  %v1231_v36 = vld [vmem:[#allocation8 + $0xac0] sm:$0xff] }
 0x1c3   :  { %7159 = vmatprep.subr.bf16.mxu0 %v9391_v56  ;;  %7487 = vmatprep.subr.bf16.mxu1 %v9393_v57  ;;  %v9424_v56 = vcombine.low %v1192_v37, %v1196_v42  ;;  %v9431_v57 = vcombine.high %v1199_v50, %v1203_v52  ;;  %v9433_v60 = vcombine.high %v1200_v53, %v1204_v54  ;;  %v1235_v37 = vld [vmem:[#allocation8 + $0xae0] sm:$0xff]  ;;  %v1232_v42 = vld [vmem:[#allocation8 + $0xac8] sm:$0xff] }
 0x1c6   :  { %7160 = vmatpush1.bf16.msra.mxu0 %v9390_v26  ;;  %7488 = vmatpush1.bf16.msra.mxu1 %v9392_v6  ;;  %v1212_v26 = vld [vmem:[#allocation8 + $0xa28] sm:$0xff]  ;;  %v9430_v6 = vcombine.low %v1199_v50, %v1203_v52  ;;  %v1239_v52 = vld [vmem:[#allocation8 + $0xb00] sm:$0xff] }
 0x1c7   :  { %7161 = vmatprep.subr.bf16.mxu0 %v9399_v7  ;;  %7489 = vmatprep.subr.bf16.mxu1 %v9401_v8  ;;  %v9432_v7 = vcombine.low %v1200_v53, %v1204_v54  ;;  %v9439_v8 = vcombine.high %v1207_v61, %v1211_v62  ;;  %v9441_v9 = vcombine.high %v1208_v5, %v1212_v26  ;;  %v1243_v53 = vld [vmem:[#allocation8 + $0xb20] sm:$0xff]  ;;  %v1240_v54 = vld [vmem:[#allocation8 + $0xb08] sm:$0xff] }
 0x1ca   :  { %7162 = vmatpush1.bf16.msra.mxu0 %v9398_v17  ;;  %7490 = vmatpush1.bf16.msra.mxu1 %v9400_v18  ;;  %v1220_v17 = vld [vmem:[#allocation8 + $0xa68] sm:$0xff]  ;;  %v9438_v18 = vcombine.low %v1207_v61, %v1211_v62  ;;  %v1247_v62 = vld [vmem:[#allocation8 + $0xb40] sm:$0xff] }
 0x1cb   :  { %7163 = vmatprep.subr.bf16.mxu0 %v9407_v20  ;;  %7491 = vmatprep.subr.bf16.mxu1 %v9409_v21  ;;  %v9440_v20 = vcombine.low %v1208_v5, %v1212_v26  ;;  %v9447_v21 = vcombine.high %v1215_v10, %v1219_v14  ;;  %v9449_v27 = vcombine.high %v1216_v16, %v1220_v17  ;;  %v1251_v5 = vld [vmem:[#allocation8 + $0xb60] sm:$0xff]  ;;  %v1248_v26 = vld [vmem:[#allocation8 + $0xb48] sm:$0xff] }
 0x1ce   :  { %7164 = vmatpush1.bf16.msra.mxu0 %v9406_v59  ;;  %7492 = vmatpush1.bf16.msra.mxu1 %v9408_v31  ;;  %v1228_v59 = vld [vmem:[#allocation8 + $0xaa8] sm:$0xff]  ;;  %v9446_v31 = vcombine.low %v1215_v10, %v1219_v14  ;;  %v1255_v14 = vld [vmem:[#allocation8 + $0xb80] sm:$0xff] }
 0x1cf   :  { %7165 = vmatprep.subr.bf16.mxu0 %v9415_v32  ;;  %7493 = vmatprep.subr.bf16.mxu1 %v9417_v33  ;;  %v9448_v32 = vcombine.low %v1216_v16, %v1220_v17  ;;  %v9455_v33 = vcombine.high %v1223_v28, %v1227_v29  ;;  %v9457_v34 = vcombine.high %v1224_v30, %v1228_v59  ;;  %v1259_v16 = vld [vmem:[#allocation8 + $0xba0] sm:$0xff]  ;;  %v1256_v17 = vld [vmem:[#allocation8 + $0xb88] sm:$0xff] }
 0x1d2   :  { %7166 = vmatpush1.bf16.msra.mxu0 %v9414_v13  ;;  %7494 = vmatpush1.bf16.msra.mxu1 %v9416_v43  ;;  %v1236_v13 = vld [vmem:[#allocation8 + $0xae8] sm:$0xff]  ;;  %v9454_v43 = vcombine.low %v1223_v28, %v1227_v29  ;;  %v9487_v28 = vcombine.high %v1255_v14, %v1259_v16 }
 0x1d3   :  { %7167 = vmatprep.subr.bf16.mxu0 %v9423_v44  ;;  %7495 = vmatprep.subr.bf16.mxu1 %v9425_v45  ;;  %v9456_v44 = vcombine.low %v1224_v30, %v1228_v59  ;;  %v9463_v45 = vcombine.high %v1231_v36, %v1235_v37  ;;  %v9465_v50 = vcombine.high %v1232_v42, %v1236_v13  ;;  %v1263_v30 = vld [vmem:[#allocation8 + $0xbc0] sm:$0xff] }
 0x1d4   :  { %v1267_v59 = vld [vmem:[#allocation8 + $0xbe0] sm:$0xff] }
 0x1d6   :  { %7168 = vmatpush1.bf16.msra.mxu0 %v9422_v55  ;;  %7496 = vmatpush1.bf16.msra.mxu1 %v9424_v56  ;;  %v1244_v55 = vld [vmem:[#allocation8 + $0xb28] sm:$0xff]  ;;  %v9462_v56 = vcombine.low %v1231_v36, %v1235_v37  ;;  %v9486_v36 = vcombine.low %v1255_v14, %v1259_v16 }
 0x1d7   :  { %7169 = vmatprep.subr.bf16.mxu0 %v9431_v57  ;;  %7497 = vmatprep.subr.bf16.mxu1 %v9433_v60  ;;  %v9464_v57 = vcombine.low %v1232_v42, %v1236_v13  ;;  %v9471_v60 = vcombine.high %v1239_v52, %v1243_v53  ;;  %v9473_v61 = vcombine.high %v1240_v54, %v1244_v55  ;;  %v1288_v14 = vld [vmem:[#allocation8 + $0xc88] sm:$0xff] }
 0x1d8   :  { %v9495_v42 = vcombine.high %v1263_v30, %v1267_v59  ;;  %v1292_v16 = vld [vmem:[#allocation8 + $0xca8] sm:$0xff] }
 0x1da   :  { %7170 = vmatpush1.bf16.msra.mxu0 %v9430_v6  ;;  %7498 = vmatpush1.bf16.msra.mxu1 %v9432_v7  ;;  %v1252_v6 = vld [vmem:[#allocation8 + $0xb68] sm:$0xff]  ;;  %v9470_v7 = vcombine.low %v1239_v52, %v1243_v53 }
 0x1db   :  { %7171 = vmatprep.subr.bf16.mxu0 %v9439_v8  ;;  %7499 = vmatprep.subr.bf16.mxu1 %v9441_v9  ;;  %v9472_v8 = vcombine.low %v1240_v54, %v1244_v55  ;;  %v9479_v9 = vcombine.high %v1247_v62, %v1251_v5  ;;  %v9481_v10 = vcombine.high %v1248_v26, %v1252_v6 }
 0x1de   :  { %7172 = vmatpush1.bf16.msra.mxu0 %v9438_v18  ;;  %7500 = vmatpush1.bf16.msra.mxu1 %v9440_v20  ;;  %v1260_v18 = vld [vmem:[#allocation8 + $0xba8] sm:$0xff]  ;;  %v222_v20 = vrot.slane %v10943_v48, %v10991_v63 }
 0x1df   :  { %7173 = vmatprep.subr.bf16.mxu0 %v9447_v21  ;;  %7501 = vmatprep.subr.bf16.mxu1 %v9449_v27  ;;  %v9478_v21 = vcombine.low %v1247_v62, %v1251_v5  ;;  %v9480_v27 = vcombine.low %v1248_v26, %v1252_v6  ;;  %v9489_v29 = vcombine.high %v1256_v17, %v1260_v18 }
 0x1e0   :  { %v9488_v37 = vcombine.low %v1256_v17, %v1260_v18 }
 0x1e2   :  { %7174 = vmatpush1.bf16.msra.mxu0 %v9446_v31  ;;  %7502 = vmatpush1.bf16.msra.mxu1 %v9448_v32  ;;  %v1264_v31 = vld [vmem:[#allocation8 + $0xbc8] sm:$0xff] }
 0x1e3   :  { %7175 = vmatprep.subr.bf16.mxu0 %v9455_v33  ;;  %7503 = vmatprep.subr.bf16.mxu1 %v9457_v34  ;;  %v1268_v32 = vld [vmem:[#allocation8 + $0xbe8] sm:$0xff]  ;;  %v234_v33 = vrot.slane %v10943_v48, %v11004_v22  ;;  %v496_v34 = vadd.f32 %v10965_v11, %v222_v20  ;;  %v9494_v48 = vcombine.low %v1263_v30, %v1267_v59 }
 0x1e4   :  { %v9497_v13 = vcombine.high %v1264_v31, %v1268_v32  ;;  %v9496_v54 = vcombine.low %v1264_v31, %v1268_v32  ;;  %v1300_v30 = vld [vmem:[#allocation8 + $0xce8] sm:$0xff]  ;;  %v9520_v31 = vcombine.low %v1288_v14, %v1292_v16 }
 0x1e5   :  { %v569_v52 = vadd.f32 %v10977_v25, %v234_v33  ;;  %v859_v53 = vmax.f32 %v496_v34, 0.0  ;;  %v1303_v34 = vld [vmem:[#allocation8 + $0xd00] sm:$0xff] }
 0x1e6   :  { %7176 = vmatpush1.bf16.msra.mxu0 %v9454_v43  ;;  %7504 = vmatpush1.bf16.msra.mxu1 %v9456_v44  ;;  %v1271_v43 = vld [vmem:[#allocation8 + $0xc00] sm:$0xff] }
 0x1e7   :  { %7177 = vmatprep.subr.bf16.mxu0 %v9463_v45  ;;  %7505 = vmatprep.subr.bf16.mxu1 %v9465_v50  ;;  %v1275_v44 = vld [vmem:[#allocation8 + $0xc20] sm:$0xff]  ;;  %v1272_v45 = vld [vmem:[#allocation8 + $0xc08] sm:$0xff]  ;;  %v862_v62 = vmax.f32 %v569_v52, 0.0  ;;  %v11036_v5 = vpack.c.bf16 %v859_v53, %v859_v53 }
 0x1e8   :  { %v1276_v50 = vld [vmem:[#allocation8 + $0xc28] sm:$0xff]  ;;  %v9503_v11 = vcombine.high %v1271_v43, %v1275_v44  ;;  %v9502_v26 = vcombine.low %v1271_v43, %v1275_v44  ;;  %v1315_v52 = vld [vmem:[#allocation8 + $0xd60] sm:$0xff] }
 0x1e9   :  { %v9505_v55 = vcombine.high %v1272_v45, %v1276_v50  ;;  %v9504_v25 = vcombine.low %v1272_v45, %v1276_v50  ;;  %v1311_v50 = vld [vmem:[#allocation8 + $0xd40] sm:$0xff]  ;;  %v1312_v53 = vld [vmem:[#allocation8 + $0xd48] sm:$0xff] }
 0x1ea   :  { %7178 = vmatpush1.bf16.msra.mxu0 %v9462_v56  ;;  %7506 = vmatpush1.bf16.msra.mxu1 %v9464_v57  ;;  %v1279_v56 = vld [vmem:[#allocation8 + $0xc40] sm:$0xff] }
 0x1eb   :  { %7179 = vmatprep.subr.bf16.mxu0 %v9471_v60  ;;  %7507 = vmatprep.subr.bf16.mxu1 %v9473_v61  ;;  %v1283_v57 = vld [vmem:[#allocation8 + $0xc60] sm:$0xff]  ;;  %v1280_v60 = vld [vmem:[#allocation8 + $0xc48] sm:$0xff] }
 0x1ec   :  { %v1284_v61 = vld [vmem:[#allocation8 + $0xc68] sm:$0xff]  ;;  %v9511_v6 = vcombine.high %v1279_v56, %v1283_v57  ;;  %v9510_v17 = vcombine.low %v1279_v56, %v1283_v57  ;;  %v1319_v57 = vld [vmem:[#allocation8 + $0xd80] sm:$0xff] }
 0x1ed   :  { %v9512_v18 = vcombine.low %v1280_v60, %v1284_v61 }
 0x1ee   :  { %7180 = vmatpush1.bf16.msra.mxu0 %v9470_v7  ;;  %7508 = vmatpush1.bf16.msra.mxu1 %v9472_v8  ;;  %v9513_v7 = vcombine.high %v1280_v60, %v1284_v61  ;;  %v1287_v8 = vld [vmem:[#allocation8 + $0xc80] sm:$0xff]  ;;  %v1320_v61 = vld [vmem:[#allocation8 + $0xd88] sm:$0xff] }
 0x1ef   :  { %7181 = vmatprep.subr.bf16.mxu0 %v9479_v9  ;;  %7509 = vmatprep.subr.bf16.mxu1 %v9481_v10  ;;  %v11038_v9 = vpack.c.bf16 %v862_v62, %v862_v62  ;;  %v1291_v10 = vld [vmem:[#allocation8 + $0xca0] sm:$0xff]  ;;  %v1324_v62 = vld [vmem:[#allocation8 + $0xda8] sm:$0xff] }
 0x1f0   :  { %v9519_v20 = vcombine.high %v1287_v8, %v1291_v10  ;;  %v9518_v59 = vcombine.low %v1287_v8, %v1291_v10  ;;  %v1323_v60 = vld [vmem:[#allocation8 + $0xda0] sm:$0xff] }
 0x1f1   :  { %v1327_v8 = vld [vmem:[#allocation8 + $0xdc0] sm:$0xff] }
 0x1f2   :  { %7182 = vmatpush1.bf16.msra.mxu0 %v9478_v21  ;;  %7510 = vmatpush1.bf16.msra.mxu1 %v9480_v27  ;;  %v9521_v21 = vcombine.high %v1288_v14, %v1292_v16  ;;  %v1295_v27 = vld [vmem:[#allocation8 + $0xcc0] sm:$0xff]  ;;  %v1328_v14 = vld [vmem:[#allocation8 + $0xdc8] sm:$0xff] }
 0x1f3   :  { %7183 = vmatprep.subr.bf16.mxu0 %v9487_v28  ;;  %7511 = vmatprep.subr.bf16.mxu1 %v9489_v29  ;;  %v1299_v28 = vld [vmem:[#allocation8 + $0xce0] sm:$0xff]  ;;  %v1296_v29 = vld [vmem:[#allocation8 + $0xcc8] sm:$0xff] }
 0x1f4   :  { %v9527_v32 = vcombine.high %v1295_v27, %v1299_v28  ;;  %v9529_v33 = vcombine.high %v1296_v29, %v1300_v30  ;;  %v9528_v43 = vcombine.low %v1296_v29, %v1300_v30  ;;  %v1331_v10 = vld [vmem:[#allocation8 + $0xde0] sm:$0xff]  ;;  %v1332_v16 = vld [vmem:[#allocation8 + $0xde8] sm:$0xff] }
 0x1f5   :  { %v1336_v29 = vld [vmem:[#allocation8 + $0xe08] sm:$0xff] }
 0x1f6   :  { %7184 = vmatpush1.bf16.msra.mxu0 %v9486_v36  ;;  %7512 = vmatpush1.bf16.msra.mxu1 %v9488_v37  ;;  %v1307_v36 = vld [vmem:[#allocation8 + $0xd20] sm:$0xff]  ;;  %v1304_v37 = vld [vmem:[#allocation8 + $0xd08] sm:$0xff] }
 0x1f7   :  { %7185 = vmatprep.subr.bf16.mxu0 %v9495_v42  ;;  %7513 = vmatprep.subr.bf16.mxu1 %v9497_v13  ;;  %v1308_v42 = vld [vmem:[#allocation8 + $0xd28] sm:$0xff]  ;;  %v9526_v13 = vcombine.low %v1295_v27, %v1299_v28  ;;  %v9535_v44 = vcombine.high %v1303_v34, %v1307_v36  ;;  %v1335_v27 = vld [vmem:[#allocation8 + $0xe00] sm:$0xff] }
 0x1f8   :  { %v9537_v45 = vcombine.high %v1304_v37, %v1308_v42  ;;  %v1339_v28 = vld [vmem:[#allocation8 + $0xe20] sm:$0xff]  ;;  %v1340_v30 = vld [vmem:[#allocation8 + $0xe28] sm:$0xff] }
 0x1fa   :  { %7186 = vmatpush1.bf16.msra.mxu0 %v9494_v48  ;;  %7514 = vmatpush1.bf16.msra.mxu1 %v9496_v54  ;;  %v1316_v48 = vld [vmem:[#allocation8 + $0xd68] sm:$0xff]  ;;  %v9534_v54 = vcombine.low %v1303_v34, %v1307_v36  ;;  %v1343_v34 = vld [vmem:[#allocation8 + $0xe40] sm:$0xff] }
 0x1fb   :  { %7196 = vmatprep.subr.bf16.mxu0 %v9503_v11  ;;  %7524 = vmatprep.subr.bf16.mxu1 %v9505_v55  ;;  %v9536_v11 = vcombine.low %v1304_v37, %v1308_v42  ;;  %v9543_v55 = vcombine.high %v1311_v50, %v1315_v52  ;;  %v9545_v56 = vcombine.high %v1312_v53, %v1316_v48  ;;  %v1347_v36 = vld [vmem:[#allocation8 + $0xe60] sm:$0xff]  ;;  %v1344_v37 = vld [vmem:[#allocation8 + $0xe48] sm:$0xff] }
 0x1fc   :  { %v1348_v42 = vld [vmem:[#allocation8 + $0xe68] sm:$0xff] }
 0x1fd   :  { %7188 = vmatmul.mubr.bf16.vlgmr.msra.gmra.mrb[8].mxu0 %v11036_v5  ;;  %7516 = vmatmul.mubr.bf16.vlgmr.msra.gmra.mrb[8].mxu1 %v11036_v5 }
 0x1fe   :  { %7197 = vmatpush1.bf16.msra.mxu0 %v9502_v26  ;;  %7525 = vmatpush1.bf16.msra.mxu1 %v9504_v25  ;;  %v9542_v26 = vcombine.low %v1311_v50, %v1315_v52  ;;  %v9544_v25 = vcombine.low %v1312_v53, %v1316_v48  ;;  %v1351_v50 = vld [vmem:[#allocation8 + $0xe80] sm:$0xff]  ;;  %v1352_v53 = vld [vmem:[#allocation8 + $0xe88] sm:$0xff] }
 0x1ff   :  { %7198 = vmatprep.subr.bf16.mxu0 %v9511_v6  ;;  %7526 = vmatprep.subr.bf16.mxu1 %v9513_v7  ;;  %v9551_v6 = vcombine.high %v1319_v57, %v1323_v60  ;;  %v9553_v7 = vcombine.high %v1320_v61, %v1324_v62  ;;  %v1355_v52 = vld [vmem:[#allocation8 + $0xea0] sm:$0xff]  ;;  %v1356_v48 = vld [vmem:[#allocation8 + $0xea8] sm:$0xff] }
 0x200   :  { %7228 = vmatprep.mubr.bf16.mxu0 %v11038_v9  ;;  %7556 = vmatprep.mubr.bf16.mxu1 %v11038_v9 }
 0x202   :  { %7199 = vmatpush1.bf16.msra.mxu0 %v9510_v17  ;;  %7527 = vmatpush1.bf16.msra.mxu1 %v9512_v18  ;;  %v9550_v17 = vcombine.low %v1319_v57, %v1323_v60  ;;  %v9552_v18 = vcombine.low %v1320_v61, %v1324_v62  ;;  %v1359_v57 = vld [vmem:[#allocation8 + $0xec0] sm:$0xff]  ;;  %v1360_v61 = vld [vmem:[#allocation8 + $0xec8] sm:$0xff] }
 0x203   :  { %7200 = vmatprep.subr.bf16.mxu0 %v9519_v20  ;;  %7528 = vmatprep.subr.bf16.mxu1 %v9521_v21  ;;  %v9559_v20 = vcombine.high %v1327_v8, %v1331_v10  ;;  %v9561_v21 = vcombine.high %v1328_v14, %v1332_v16  ;;  %v1363_v60 = vld [vmem:[#allocation8 + $0xee0] sm:$0xff]  ;;  %v1364_v62 = vld [vmem:[#allocation8 + $0xee8] sm:$0xff] }
 0x206   :  { %7201 = vmatpush1.bf16.msra.mxu0 %v9518_v59  ;;  %7529 = vmatpush1.bf16.msra.mxu1 %v9520_v31  ;;  %v9558_v59 = vcombine.low %v1327_v8, %v1331_v10  ;;  %v9560_v31 = vcombine.low %v1328_v14, %v1332_v16  ;;  %v1367_v8 = vld [vmem:[#allocation8 + $0xf00] sm:$0xff]  ;;  %v1368_v14 = vld [vmem:[#allocation8 + $0xf08] sm:$0xff] }
 0x207   :  { %7202 = vmatprep.subr.bf16.mxu0 %v9527_v32  ;;  %7530 = vmatprep.subr.bf16.mxu1 %v9529_v33  ;;  %v9567_v32 = vcombine.high %v1335_v27, %v1339_v28  ;;  %v9569_v33 = vcombine.high %v1336_v29, %v1340_v30  ;;  %v1371_v10 = vld [vmem:[#allocation8 + $0xf20] sm:$0xff]  ;;  %v1372_v16 = vld [vmem:[#allocation8 + $0xf28] sm:$0xff] }
 0x20a   :  { %7203 = vmatpush1.bf16.msra.mxu0 %v9526_v13  ;;  %7531 = vmatpush1.bf16.msra.mxu1 %v9528_v43  ;;  %v9566_v13 = vcombine.low %v1335_v27, %v1339_v28  ;;  %v9568_v43 = vcombine.low %v1336_v29, %v1340_v30  ;;  %v1375_v27 = vld [vmem:[#allocation8 + $0xf40] sm:$0xff]  ;;  %v1376_v29 = vld [vmem:[#allocation8 + $0xf48] sm:$0xff] }
 0x20b   :  { %7204 = vmatprep.subr.bf16.mxu0 %v9535_v44  ;;  %7532 = vmatprep.subr.bf16.mxu1 %v9537_v45  ;;  %v9575_v44 = vcombine.high %v1343_v34, %v1347_v36  ;;  %v9577_v45 = vcombine.high %v1344_v37, %v1348_v42  ;;  %v1379_v28 = vld [vmem:[#allocation8 + $0xf60] sm:$0xff]  ;;  %v1380_v30 = vld [vmem:[#allocation8 + $0xf68] sm:$0xff] }
 0x20e   :  { %7205 = vmatpush1.bf16.msra.mxu0 %v9534_v54  ;;  %7533 = vmatpush1.bf16.msra.mxu1 %v9536_v11  ;;  %v9574_v54 = vcombine.low %v1343_v34, %v1347_v36  ;;  %v9576_v11 = vcombine.low %v1344_v37, %v1348_v42  ;;  %v1383_v34 = vld [vmem:[#allocation8 + $0xf80] sm:$0xff]  ;;  %v1384_v37 = vld [vmem:[#allocation8 + $0xf88] sm:$0xff] }
 0x20f   :  { %7206 = vmatprep.subr.bf16.mxu0 %v9543_v55  ;;  %7534 = vmatprep.subr.bf16.mxu1 %v9545_v56  ;;  %v9583_v55 = vcombine.high %v1351_v50, %v1355_v52  ;;  %v9585_v56 = vcombine.high %v1352_v53, %v1356_v48  ;;  %v1387_v36 = vld [vmem:[#allocation8 + $0xfa0] sm:$0xff]  ;;  %v1388_v42 = vld [vmem:[#allocation8 + $0xfa8] sm:$0xff] }
 0x212   :  { %7207 = vmatpush1.bf16.msra.mxu0 %v9542_v26  ;;  %7535 = vmatpush1.bf16.msra.mxu1 %v9544_v25  ;;  %v9582_v26 = vcombine.low %v1351_v50, %v1355_v52  ;;  %v9584_v25 = vcombine.low %v1352_v53, %v1356_v48  ;;  %v9615_v50 = vcombine.high %v1383_v34, %v1387_v36  ;;  %v1391_v53 = vld [vmem:[#allocation8 + $0xfc0] sm:$0xff]  ;;  %v11045_v48 = vld [vmem:[#allocation7 + $0x8] sm:$0xff] }
 0x213   :  { %7208 = vmatprep.subr.bf16.mxu0 %v9551_v6  ;;  %7536 = vmatprep.subr.bf16.mxu1 %v9553_v7  ;;  %v9591_v6 = vcombine.high %v1359_v57, %v1363_v60  ;;  %v9593_v7 = vcombine.high %v1360_v61, %v1364_v62  ;;  %v9617_v52 = vcombine.high %v1384_v37, %v1388_v42 }
 0x216   :  { %7209 = vmatpush1.bf16.msra.mxu0 %v9550_v17  ;;  %7537 = vmatpush1.bf16.msra.mxu1 %v9552_v18  ;;  %v9590_v17 = vcombine.low %v1359_v57, %v1363_v60  ;;  %v9592_v18 = vcombine.low %v1360_v61, %v1364_v62  ;;  %v9614_v57 = vcombine.low %v1383_v34, %v1387_v36  ;;  %v1415_v34 = vld [vmem:[#allocation8 + $0x1080] sm:$0xff] }
 0x217   :  { %7210 = vmatprep.subr.bf16.mxu0 %v9559_v20  ;;  %7538 = vmatprep.subr.bf16.mxu1 %v9561_v21  ;;  %v9599_v20 = vcombine.high %v1367_v8, %v1371_v10  ;;  %v9601_v21 = vcombine.high %v1368_v14, %v1372_v16  ;;  %v9616_v60 = vcombine.low %v1384_v37, %v1388_v42  ;;  %v1419_v36 = vld [vmem:[#allocation8 + $0x10a0] sm:$0xff]  ;;  %v1416_v37 = vld [vmem:[#allocation8 + $0x1088] sm:$0xff] }
 0x218   :  { %v1420_v42 = vld [vmem:[#allocation8 + $0x10a8] sm:$0xff] }
 0x21a   :  { %7211 = vmatpush1.bf16.msra.mxu0 %v9558_v59  ;;  %7539 = vmatpush1.bf16.msra.mxu1 %v9560_v31  ;;  %v9598_v59 = vcombine.low %v1367_v8, %v1371_v10  ;;  %v9600_v31 = vcombine.low %v1368_v14, %v1372_v16  ;;  %v1400_v8 = vld [vmem:[#allocation8 + $0x1008] sm:$0xff] }
 0x21b   :  { %7212 = vmatprep.subr.bf16.mxu0 %v9567_v32  ;;  %7540 = vmatprep.subr.bf16.mxu1 %v9569_v33  ;;  %v9607_v32 = vcombine.high %v1375_v27, %v1379_v28  ;;  %v9609_v33 = vcombine.high %v1376_v29, %v1380_v30  ;;  %v1404_v10 = vld [vmem:[#allocation8 + $0x1028] sm:$0xff] }
 0x21e   :  { %7213 = vmatpush1.bf16.msra.mxu0 %v9566_v13  ;;  %7541 = vmatpush1.bf16.msra.mxu1 %v9568_v43  ;;  %v9606_v13 = vcombine.low %v1375_v27, %v1379_v28  ;;  %v9608_v43 = vcombine.low %v1376_v29, %v1380_v30  ;;  %v1411_v27 = vld [vmem:[#allocation8 + $0x1060] sm:$0xff]  ;;  %v1408_v28 = vld [vmem:[#allocation8 + $0x1048] sm:$0xff] }
 0x21f   :  { %7214 = vmatprep.subr.bf16.mxu0 %v9575_v44  ;;  %7542 = vmatprep.subr.bf16.mxu1 %v9577_v45  ;;  %v10560_v44 = vld [vmem:[#allocation7] sm:$0xff]  ;;  %v1412_v29 = vld [vmem:[#allocation8 + $0x1068] sm:$0xff] }
 0x220   :  { %v230_v45 = vrot.slane %v10560_v44, %v11001_v15  ;;  %v9647_v44 = vcombine.high %v1415_v34, %v1419_v36 }
 0x222   :  { %7215 = vmatpush1.bf16.msra.mxu0 %v9574_v54  ;;  %7543 = vmatpush1.bf16.msra.mxu1 %v9576_v11  ;;  %v242_v54 = vrot.slane %v11045_v48, %v10946_v49  ;;  %v1395_v11 = vld [vmem:[#allocation8 + $0xfe0] sm:$0xff]  ;;  %v567_v61 = vadd.f32 %v10973_v19, %v230_v45  ;;  %v9649_v45 = vcombine.high %v1416_v37, %v1420_v42 }
 0x223   :  { %7216 = vmatprep.subr.bf16.mxu0 %v9583_v55  ;;  %7544 = vmatprep.subr.bf16.mxu1 %v9585_v56  ;;  %v1392_v55 = vld [vmem:[#allocation8 + $0xfc8] sm:$0xff]  ;;  %v9623_v62 = vcombine.high %v1391_v53, %v1395_v11  ;;  %v9622_v14 = vcombine.low %v1391_v53, %v1395_v11  ;;  %v9646_v11 = vcombine.low %v1415_v34, %v1419_v36  ;;  %v1455_v36 = vld [vmem:[#allocation8 + $0x11c0] sm:$0xff] }
 0x224   :  { %v1396_v56 = vld [vmem:[#allocation8 + $0xfe8] sm:$0xff] }
 0x225   :  { %v9624_v16 = vcombine.low %v1392_v55, %v1396_v56  ;;  %v1424_v53 = vld [vmem:[#allocation8 + $0x10c8] sm:$0xff] }
 0x226   :  { %7217 = vmatpush1.bf16.msra.mxu0 %v9582_v26  ;;  %7545 = vmatpush1.bf16.msra.mxu1 %v9584_v25  ;;  %v9625_v26 = vcombine.high %v1392_v55, %v1396_v56  ;;  %v1399_v25 = vld [vmem:[#allocation8 + $0x1000] sm:$0xff]  ;;  %v9648_v55 = vcombine.low %v1416_v37, %v1420_v42  ;;  %v1456_v42 = vld [vmem:[#allocation8 + $0x11c8] sm:$0xff] }
 0x227   :  { %7218 = vmatprep.subr.bf16.mxu0 %v9591_v6  ;;  %7546 = vmatprep.subr.bf16.mxu1 %v9593_v7  ;;  %v640_v6 = vadd.f32 %v10984_v41, %v242_v54  ;;  %v1403_v7 = vld [vmem:[#allocation8 + $0x1020] sm:$0xff]  ;;  %v1428_v54 = vld [vmem:[#allocation8 + $0x10e8] sm:$0xff] }
 0x228   :  { %v9630_v41 = vcombine.low %v1399_v25, %v1403_v7  ;;  %v1459_v37 = vld [vmem:[#allocation8 + $0x11e0] sm:$0xff] }
 0x229   :  { %v864_v19 = vmax.f32 %v640_v6, 0.0  ;;  %v9656_v6 = vcombine.low %v1424_v53, %v1428_v54 }
 0x22a   :  { %7219 = vmatpush1.bf16.msra.mxu0 %v9590_v17  ;;  %7547 = vmatpush1.bf16.msra.mxu1 %v9592_v18  ;;  %v861_v17 = vmax.f32 %v567_v61, 0.0  ;;  %v9631_v18 = vcombine.high %v1399_v25, %v1403_v7  ;;  %v1435_v61 = vld [vmem:[#allocation8 + $0x1120] sm:$0xff] }
 0x22b   :  { %7220 = vmatprep.subr.bf16.mxu0 %v9599_v20  ;;  %7548 = vmatprep.subr.bf16.mxu1 %v9601_v21  ;;  %v9633_v20 = vcombine.high %v1400_v8, %v1404_v10  ;;  %v1407_v21 = vld [vmem:[#allocation8 + $0x1040] sm:$0xff] }
 0x22c   :  { %v11051_v30 = vpack.c.bf16 %v861_v17, %v861_v17  ;;  %v1444_v17 = vld [vmem:[#allocation8 + $0x1168] sm:$0xff] }
 0x22e   :  { %7221 = vmatpush1.bf16.msra.mxu0 %v9598_v59  ;;  %7549 = vmatpush1.bf16.msra.mxu1 %v9600_v31  ;;  %v9632_v59 = vcombine.low %v1400_v8, %v1404_v10  ;;  %v11053_v31 = vpack.c.bf16 %v864_v19, %v864_v19  ;;  %v1439_v10 = vld [vmem:[#allocation8 + $0x1140] sm:$0xff] }
 0x22f   :  { %7222 = vmatprep.subr.bf16.mxu0 %v9607_v32  ;;  %7550 = vmatprep.subr.bf16.mxu1 %v9609_v33  ;;  %v9639_v32 = vcombine.high %v1407_v21, %v1411_v27  ;;  %v9641_v33 = vcombine.high %v1408_v28, %v1412_v29 }
 0x232   :  { %7223 = vmatpush1.bf16.msra.mxu0 %v9606_v13  ;;  %7551 = vmatpush1.bf16.msra.mxu1 %v9608_v43  ;;  %v9638_v13 = vcombine.low %v1407_v21, %v1411_v27  ;;  %v9640_v43 = vcombine.low %v1408_v28, %v1412_v29  ;;  %v1447_v27 = vld [vmem:[#allocation8 + $0x1180] sm:$0xff]  ;;  %v1448_v29 = vld [vmem:[#allocation8 + $0x1188] sm:$0xff] }
 0x233   :  { %7224 = vmatprep.subr.bf16.mxu0 %v9615_v50  ;;  %7552 = vmatprep.subr.bf16.mxu1 %v9617_v52  ;;  %v1423_v50 = vld [vmem:[#allocation8 + $0x10c0] sm:$0xff] }
 0x234   :  { %v1427_v52 = vld [vmem:[#allocation8 + $0x10e0] sm:$0xff] }
 0x235   :  { %v9655_v56 = vcombine.high %v1423_v50, %v1427_v52  ;;  %v9654_v25 = vcombine.low %v1423_v50, %v1427_v52  ;;  %v1451_v28 = vld [vmem:[#allocation8 + $0x11a0] sm:$0xff] }
 0x236   :  { %7225 = vmatpush1.bf16.msra.mxu0 %v9614_v57  ;;  %7553 = vmatpush1.bf16.msra.mxu1 %v9616_v60  ;;  %v9657_v57 = vcombine.high %v1424_v53, %v1428_v54  ;;  %v1431_v60 = vld [vmem:[#allocation8 + $0x1100] sm:$0xff]  ;;  %v1464_v54 = vld [vmem:[#allocation8 + $0x1208] sm:$0xff] }
 0x237   :  { %7226 = vmatprep.subr.bf16.mxu0 %v9623_v62  ;;  %7554 = vmatprep.subr.bf16.mxu1 %v9625_v26  ;;  %v1432_v62 = vld [vmem:[#allocation8 + $0x1108] sm:$0xff]  ;;  %v9663_v7 = vcombine.high %v1431_v60, %v1435_v61  ;;  %v1463_v52 = vld [vmem:[#allocation8 + $0x1200] sm:$0xff] }
 0x238   :  { %v1436_v26 = vld [vmem:[#allocation8 + $0x1128] sm:$0xff]  ;;  %v1467_v53 = vld [vmem:[#allocation8 + $0x1220] sm:$0xff] }
 0x239   :  { %v9665_v8 = vcombine.high %v1432_v62, %v1436_v26 }
 0x23a   :  { %7227 = vmatpush1.bf16.msra.mxu0 %v9622_v14  ;;  %7555 = vmatpush1.bf16.msra.mxu1 %v9624_v16  ;;  %v1443_v14 = vld [vmem:[#allocation8 + $0x1160] sm:$0xff]  ;;  %v1440_v16 = vld [vmem:[#allocation8 + $0x1148] sm:$0xff] }
 0x23b   :  { %7237 = vmatprep.subr.bf16.mxu0 %v9631_v18  ;;  %7565 = vmatprep.subr.bf16.mxu1 %v9633_v20  ;;  %v9662_v18 = vcombine.low %v1431_v60, %v1435_v61  ;;  %v9664_v20 = vcombine.low %v1432_v62, %v1436_v26  ;;  %v9671_v19 = vcombine.high %v1439_v10, %v1443_v14  ;;  %v1471_v61 = vld [vmem:[#allocation8 + $0x1240] sm:$0xff]  ;;  %v1472_v26 = vld [vmem:[#allocation8 + $0x1248] sm:$0xff] }
 0x23c   :  { %v9673_v21 = vcombine.high %v1440_v16, %v1444_v17  ;;  %v1475_v62 = vld [vmem:[#allocation8 + $0x1260] sm:$0xff] }
 0x23d   :  { %7229 = vmatmul.mubr.bf16.vlgmr.msra.gmra.mrb[8].mxu0 %v11051_v30  ;;  %7557 = vmatmul.mubr.bf16.vlgmr.msra.gmra.mrb[8].mxu1 %v11051_v30 }
 0x23e   :  { %7238 = vmatpush1.bf16.msra.mxu0 %v9630_v41  ;;  %7269 = vmatprep.mubr.bf16.mxu0 %v11053_v31  ;;  %v1452_v41 = vld [vmem:[#allocation8 + $0x11a8] sm:$0xff] }
 0x23f   :  { %7566 = vmatpush1.bf16.msra.mxu1 %v9632_v59  ;;  %7597 = vmatprep.mubr.bf16.mxu1 %v11053_v31  ;;  %v9670_v59 = vcombine.low %v1439_v10, %v1443_v14  ;;  %v9681_v34 = vcombine.high %v1448_v29, %v1452_v41  ;;  %v1479_v14 = vld [vmem:[#allocation8 + $0x1280] sm:$0xff] }
 0x240   :  { %7239 = vmatprep.subr.bf16.mxu0 %v9639_v32  ;;  %7567 = vmatprep.subr.bf16.mxu1 %v9641_v33  ;;  %v9672_v32 = vcombine.low %v1440_v16, %v1444_v17  ;;  %v9679_v33 = vcombine.high %v1447_v27, %v1451_v28  ;;  %v1483_v16 = vld [vmem:[#allocation8 + $0x12a0] sm:$0xff]  ;;  %v1480_v17 = vld [vmem:[#allocation8 + $0x1288] sm:$0xff] }
 0x242   :  { %7240 = vmatpush1.bf16.msra.mxu0 %v9638_v13  ;;  %v1460_v13 = vld [vmem:[#allocation8 + $0x11e8] sm:$0xff] }
 0x243   :  { %7568 = vmatpush1.bf16.msra.mxu1 %v9640_v43  ;;  %7241 = vmatprep.subr.bf16.mxu0 %v9647_v44  ;;  %v9678_v43 = vcombine.low %v1447_v27, %v1451_v28  ;;  %v9680_v44 = vcombine.low %v1448_v29, %v1452_v41  ;;  %v9689_v50 = vcombine.high %v1456_v42, %v1460_v13  ;;  %v1487_v28 = vld [vmem:[#allocation8 + $0x12c0] sm:$0xff]  ;;  %v1488_v41 = vld [vmem:[#allocation8 + $0x12c8] sm:$0xff] }
 0x244   :  { %7569 = vmatprep.subr.bf16.mxu1 %v9649_v45  ;;  %v9687_v45 = vcombine.high %v1455_v36, %v1459_v37  ;;  %v1491_v29 = vld [vmem:[#allocation8 + $0x12e0] sm:$0xff] }
 0x246   :  { %7242 = vmatpush1.bf16.msra.mxu0 %v9646_v11  ;;  %v1468_v11 = vld [vmem:[#allocation8 + $0x1228] sm:$0xff] }
 0x247   :  { %7570 = vmatpush1.bf16.msra.mxu1 %v9648_v55  ;;  %7243 = vmatprep.subr.bf16.mxu0 %v9655_v56  ;;  %v9686_v55 = vcombine.low %v1455_v36, %v1459_v37  ;;  %v9688_v56 = vcombine.low %v1456_v42, %v1460_v13  ;;  %v9697_v60 = vcombine.high %v1464_v54, %v1468_v11  ;;  %v1495_v37 = vld [vmem:[#allocation8 + $0x1300] sm:$0xff]  ;;  %v1496_v13 = vld [vmem:[#allocation8 + $0x1308] sm:$0xff] }
 0x248   :  { %7571 = vmatprep.subr.bf16.mxu1 %v9657_v57  ;;  %v9695_v57 = vcombine.high %v1463_v52, %v1467_v53  ;;  %v1499_v42 = vld [vmem:[#allocation8 + $0x1320] sm:$0xff] }
 0x24a   :  { %7244 = vmatpush1.bf16.msra.mxu0 %v9654_v25  ;;  %v1476_v25 = vld [vmem:[#allocation8 + $0x1268] sm:$0xff] }
 0x24b   :  { %7572 = vmatpush1.bf16.msra.mxu1 %v9656_v6  ;;  %7245 = vmatprep.subr.bf16.mxu0 %v9663_v7  ;;  %v9694_v6 = vcombine.low %v1463_v52, %v1467_v53  ;;  %v9696_v7 = vcombine.low %v1464_v54, %v1468_v11  ;;  %v9705_v10 = vcombine.high %v1472_v26, %v1476_v25  ;;  %v1503_v53 = vld [vmem:[#allocation8 + $0x1340] sm:$0xff]  ;;  %v1504_v11 = vld [vmem:[#allocation8 + $0x1348] sm:$0xff] }
 0x24c   :  { %7573 = vmatprep.subr.bf16.mxu1 %v9665_v8  ;;  %v9703_v8 = vcombine.high %v1471_v61, %v1475_v62  ;;  %v1507_v54 = vld [vmem:[#allocation8 + $0x1360] sm:$0xff] }
 0x24e   :  { %7246 = vmatpush1.bf16.msra.mxu0 %v9662_v18  ;;  %v1484_v18 = vld [vmem:[#allocation8 + $0x12a8] sm:$0xff] }
 0x24f   :  { %7574 = vmatpush1.bf16.msra.mxu1 %v9664_v20  ;;  %7247 = vmatprep.subr.bf16.mxu0 %v9671_v19  ;;  %v9702_v20 = vcombine.low %v1471_v61, %v1475_v62  ;;  %v9704_v19 = vcombine.low %v1472_v26, %v1476_v25  ;;  %v9713_v27 = vcombine.high %v1480_v17, %v1484_v18  ;;  %v1511_v62 = vld [vmem:[#allocation8 + $0x1380] sm:$0xff]  ;;  %v1512_v25 = vld [vmem:[#allocation8 + $0x1388] sm:$0xff] }
 0x250   :  { %7575 = vmatprep.subr.bf16.mxu1 %v9673_v21  ;;  %v9711_v21 = vcombine.high %v1479_v14, %v1483_v16  ;;  %v1515_v26 = vld [vmem:[#allocation8 + $0x13a0] sm:$0xff] }
 0x252   :  { %7248 = vmatpush1.bf16.msra.mxu0 %v9670_v59  ;;  %v1492_v59 = vld [vmem:[#allocation8 + $0x12e8] sm:$0xff] }
 0x253   :  { %7576 = vmatpush1.bf16.msra.mxu1 %v9672_v32  ;;  %7249 = vmatprep.subr.bf16.mxu0 %v9679_v33  ;;  %v9710_v32 = vcombine.low %v1479_v14, %v1483_v16  ;;  %v9712_v33 = vcombine.low %v1480_v17, %v1484_v18  ;;  %v9721_v36 = vcombine.high %v1488_v41, %v1492_v59  ;;  %v1519_v17 = vld [vmem:[#allocation8 + $0x13c0] sm:$0xff] }
 0x254   :  { %7577 = vmatprep.subr.bf16.mxu1 %v9681_v34  ;;  %v9719_v34 = vcombine.high %v1487_v28, %v1491_v29  ;;  %v9743_v14 = vcombine.high %v1511_v62, %v1515_v26  ;;  %v1523_v18 = vld [vmem:[#allocation8 + $0x13e0] sm:$0xff] }
 0x256   :  { %7250 = vmatpush1.bf16.msra.mxu0 %v9678_v43  ;;  %v1500_v43 = vld [vmem:[#allocation8 + $0x1328] sm:$0xff] }
 0x257   :  { %7578 = vmatpush1.bf16.msra.mxu1 %v9680_v44  ;;  %7251 = vmatprep.subr.bf16.mxu0 %v9687_v45  ;;  %v9718_v44 = vcombine.low %v1487_v28, %v1491_v29  ;;  %v9720_v45 = vcombine.low %v1488_v41, %v1492_v59  ;;  %v9729_v52 = vcombine.high %v1496_v13, %v1500_v43  ;;  %v1527_v41 = vld [vmem:[#allocation8 + $0x1400] sm:$0xff] }
 0x258   :  { %7579 = vmatprep.subr.bf16.mxu1 %v9689_v50  ;;  %v9727_v50 = vcombine.high %v1495_v37, %v1499_v42  ;;  %v9751_v29 = vcombine.high %v1519_v17, %v1523_v18  ;;  %v1531_v59 = vld [vmem:[#allocation8 + $0x1420] sm:$0xff] }
 0x25a   :  { %7252 = vmatpush1.bf16.msra.mxu0 %v9686_v55  ;;  %v1508_v55 = vld [vmem:[#allocation8 + $0x1368] sm:$0xff] }
 0x25b   :  { %7580 = vmatpush1.bf16.msra.mxu1 %v9688_v56  ;;  %7253 = vmatprep.subr.bf16.mxu0 %v9695_v57  ;;  %v9726_v56 = vcombine.low %v1495_v37, %v1499_v42  ;;  %v9728_v57 = vcombine.low %v1496_v13, %v1500_v43  ;;  %v9737_v61 = vcombine.high %v1504_v11, %v1508_v55  ;;  %v1535_v43 = vld [vmem:[#allocation8 + $0x1440] sm:$0xff] }
 0x25c   :  { %7581 = vmatprep.subr.bf16.mxu1 %v9697_v60  ;;  %v9735_v60 = vcombine.high %v1503_v53, %v1507_v54  ;;  %v9759_v42 = vcombine.high %v1527_v41, %v1531_v59 }
 0x25e   :  { %7254 = vmatpush1.bf16.msra.mxu0 %v9694_v6  ;;  %v1516_v6 = vld [vmem:[#allocation8 + $0x13a8] sm:$0xff] }
 0x25f   :  { %7582 = vmatpush1.bf16.msra.mxu1 %v9696_v7  ;;  %7255 = vmatprep.subr.bf16.mxu0 %v9703_v8  ;;  %v9734_v7 = vcombine.low %v1503_v53, %v1507_v54  ;;  %v238_v8 = vrot.slane %v11045_v48, %v10941_v47  ;;  %v9745_v16 = vcombine.high %v1512_v25, %v1516_v6 }
 0x260   :  { %7583 = vmatprep.subr.bf16.mxu1 %v9705_v10  ;;  %v9736_v10 = vcombine.low %v1504_v11, %v1508_v55  ;;  %v9744_v28 = vcombine.low %v1512_v25, %v1516_v6  ;;  %v1543_v55 = vld [vmem:[#allocation8 + $0x1480] sm:$0xff] }
 0x262   :  { %7256 = vmatpush1.bf16.msra.mxu0 %v9702_v20  ;;  %v1520_v20 = vld [vmem:[#allocation8 + $0x13c8] sm:$0xff] }
 0x263   :  { %7584 = vmatpush1.bf16.msra.mxu1 %v9704_v19  ;;  %7257 = vmatprep.subr.bf16.mxu0 %v9711_v21  ;;  %v1524_v19 = vld [vmem:[#allocation8 + $0x13e8] sm:$0xff]  ;;  %v9742_v21 = vcombine.low %v1511_v62, %v1515_v26 }
 0x264   :  { %7585 = vmatprep.subr.bf16.mxu1 %v9713_v27  ;;  %v638_v27 = vadd.f32 %v10979_v35, %v238_v8  ;;  %v9753_v48 = vcombine.high %v1520_v20, %v1524_v19  ;;  %v9752_v37 = vcombine.low %v1520_v20, %v1524_v19  ;;  %v866_v35 = vmax.f32 %v10996_v2, 0.0  ;;  %v1555_v8 = vld [vmem:[#allocation8 + $0x14e0] sm:$0xff] }
 0x265   :  { %v1559_v19 = vld [vmem:[#allocation8 + $0x1500] sm:$0xff] }
 0x266   :  { %7258 = vmatpush1.bf16.msra.mxu0 %v9710_v32  ;;  %v1528_v32 = vld [vmem:[#allocation8 + $0x1408] sm:$0xff] }
 0x267   :  { %7586 = vmatpush1.bf16.msra.mxu1 %v9712_v33  ;;  %7259 = vmatprep.subr.bf16.mxu0 %v9719_v34  ;;  %v1532_v33 = vld [vmem:[#allocation8 + $0x1428] sm:$0xff]  ;;  %v9750_v34 = vcombine.low %v1519_v17, %v1523_v18 }
 0x268   :  { %7587 = vmatprep.subr.bf16.mxu1 %v9721_v36  ;;  %v863_v36 = vmax.f32 %v638_v27, 0.0  ;;  %v9761_v13 = vcombine.high %v1528_v32, %v1532_v33  ;;  %v9760_v54 = vcombine.low %v1528_v32, %v1532_v33  ;;  %v1560_v27 = vld [vmem:[#allocation8 + $0x1508] sm:$0xff]  ;;  %v1567_v32 = vld [vmem:[#allocation8 + $0x1540] sm:$0xff] }
 0x269   :  { %v1571_v33 = vld [vmem:[#allocation8 + $0x1560] sm:$0xff] }
 0x26a   :  { %7260 = vmatpush1.bf16.msra.mxu0 %v9718_v44  ;;  %v1539_v44 = vld [vmem:[#allocation8 + $0x1460] sm:$0xff]  ;;  %v11063_v53 = vpack.c.bf16 %v863_v36, %v863_v36  ;;  %v1572_v36 = vld [vmem:[#allocation8 + $0x1568] sm:$0xff] }
 0x26b   :  { %7588 = vmatpush1.bf16.msra.mxu1 %v9720_v45  ;;  %7261 = vmatprep.subr.bf16.mxu0 %v9727_v50  ;;  %v9758_v45 = vcombine.low %v1527_v41, %v1531_v59  ;;  %v1536_v50 = vld [vmem:[#allocation8 + $0x1448] sm:$0xff]  ;;  %v9767_v11 = vcombine.high %v1535_v43, %v1539_v44  ;;  %v9766_v62 = vcombine.low %v1535_v43, %v1539_v44  ;;  %v1575_v43 = vld [vmem:[#allocation8 + $0x1580] sm:$0xff] }
 0x26c   :  { %7589 = vmatprep.subr.bf16.mxu1 %v9729_v52  ;;  %v1540_v52 = vld [vmem:[#allocation8 + $0x1468] sm:$0xff]  ;;  %v1579_v44 = vld [vmem:[#allocation8 + $0x15a0] sm:$0xff] }
 0x26d   :  { %v9769_v2 = vcombine.high %v1536_v50, %v1540_v52  ;;  %v9768_v26 = vcombine.low %v1536_v50, %v1540_v52  ;;  %v1580_v50 = vld [vmem:[#allocation8 + $0x15a8] sm:$0xff]  ;;  %v9798_v52 = vcombine.low %v1567_v32, %v1571_v33 }
 0x26e   :  { %7262 = vmatpush1.bf16.msra.mxu0 %v9726_v56  ;;  %v1547_v56 = vld [vmem:[#allocation8 + $0x14a0] sm:$0xff] }
 0x26f   :  { %7590 = vmatpush1.bf16.msra.mxu1 %v9728_v57  ;;  %7263 = vmatprep.subr.bf16.mxu0 %v9735_v60  ;;  %v11065_v57 = vpack.c.bf16 %v866_v35, %v866_v35  ;;  %v1544_v60 = vld [vmem:[#allocation8 + $0x1488] sm:$0xff]  ;;  %v9775_v25 = vcombine.high %v1543_v55, %v1547_v56 }
 0x270   :  { %7591 = vmatprep.subr.bf16.mxu1 %v9737_v61  ;;  %v1548_v61 = vld [vmem:[#allocation8 + $0x14a8] sm:$0xff] }
 0x271   :  { %v9777_v6 = vcombine.high %v1544_v60, %v1548_v61  ;;  %v9776_v17 = vcombine.low %v1544_v60, %v1548_v61  ;;  %v1584_v60 = vld [vmem:[#allocation8 + $0x15c8] sm:$0xff] }
 0x272   :  { %7264 = vmatpush1.bf16.msra.mxu0 %v9734_v7  ;;  %v1551_v7 = vld [vmem:[#allocation8 + $0x14c0] sm:$0xff]  ;;  %v1588_v61 = vld [vmem:[#allocation8 + $0x15e8] sm:$0xff] }
 0x273   :  { %7592 = vmatpush1.bf16.msra.mxu1 %v9736_v10  ;;  %7265 = vmatprep.subr.bf16.mxu0 %v9743_v14  ;;  %v1552_v10 = vld [vmem:[#allocation8 + $0x14c8] sm:$0xff]  ;;  %v9783_v18 = vcombine.high %v1551_v7, %v1555_v8 }
 0x274   :  { %7593 = vmatprep.subr.bf16.mxu1 %v9745_v16  ;;  %v1556_v14 = vld [vmem:[#allocation8 + $0x14e8] sm:$0xff]  ;;  %v9774_v16 = vcombine.low %v1543_v55, %v1547_v56  ;;  %v1583_v56 = vld [vmem:[#allocation8 + $0x15c0] sm:$0xff] }
 0x275   :  { %v9785_v20 = vcombine.high %v1552_v10, %v1556_v14 }
 0x276   :  { %7266 = vmatpush1.bf16.msra.mxu0 %v9742_v21  ;;  %v1563_v21 = vld [vmem:[#allocation8 + $0x1520] sm:$0xff] }
 0x277   :  { %7594 = vmatpush1.bf16.msra.mxu1 %v9744_v28  ;;  %7267 = vmatprep.subr.bf16.mxu0 %v9751_v29  ;;  %v1564_v28 = vld [vmem:[#allocation8 + $0x1528] sm:$0xff]  ;;  %v9782_v29 = vcombine.low %v1551_v7, %v1555_v8  ;;  %v9791_v41 = vcombine.high %v1559_v19, %v1563_v21  ;;  %v1591_v7 = vld [vmem:[#allocation8 + $0x1600] sm:$0xff] }
 0x278   :  { %7595 = vmatprep.subr.bf16.mxu1 %v9753_v48  ;;  %v9784_v48 = vcombine.low %v1552_v10, %v1556_v14  ;;  %v9793_v59 = vcombine.high %v1560_v27, %v1564_v28  ;;  %v1595_v8 = vld [vmem:[#allocation8 + $0x1620] sm:$0xff]  ;;  %v1592_v10 = vld [vmem:[#allocation8 + $0x1608] sm:$0xff] }
 0x279   :  { %v1596_v14 = vld [vmem:[#allocation8 + $0x1628] sm:$0xff] }
 0x27a   :  { %7268 = vmatpush1.bf16.msra.mxu0 %v9750_v34  ;;  %v1568_v34 = vld [vmem:[#allocation8 + $0x1548] sm:$0xff] }
 0x27b   :  { %7596 = vmatpush1.bf16.msra.mxu1 %v9752_v37  ;;  %7278 = vmatprep.subr.bf16.mxu0 %v9759_v42  ;;  %v9790_v37 = vcombine.low %v1559_v19, %v1563_v21  ;;  %v9792_v42 = vcombine.low %v1560_v27, %v1564_v28  ;;  %v9801_v35 = vcombine.high %v1568_v34, %v1572_v36  ;;  %v1599_v19 = vld [vmem:[#allocation8 + $0x1640] sm:$0xff]  ;;  %v1600_v27 = vld [vmem:[#allocation8 + $0x1648] sm:$0xff] }
 0x27c   :  { %7606 = vmatprep.subr.bf16.mxu1 %v9761_v13  ;;  %v9799_v13 = vcombine.high %v1567_v32, %v1571_v33  ;;  %v1603_v21 = vld [vmem:[#allocation8 + $0x1660] sm:$0xff]  ;;  %v1604_v28 = vld [vmem:[#allocation8 + $0x1668] sm:$0xff] }
 0x27d   :  { %7270 = vmatmul.mubr.bf16.vlgmr.msra.gmra.mrb[8].mxu0 %v11063_v53  ;;  %v1607_v32 = vld [vmem:[#allocation8 + $0x1680] sm:$0xff] }
 0x27e   :  { %7598 = vmatmul.mubr.bf16.vlgmr.msra.gmra.mrb[8].mxu1 %v11063_v53  ;;  %7279 = vmatpush1.bf16.msra.mxu0 %v9758_v45  ;;  %v1576_v45 = vld [vmem:[#allocation8 + $0x1588] sm:$0xff]  ;;  %v1611_v33 = vld [vmem:[#allocation8 + $0x16a0] sm:$0xff] }
 0x27f   :  { %7310 = vmatprep.mubr.bf16.mxu0 %v11065_v57  ;;  %7607 = vmatpush1.bf16.msra.mxu1 %v9760_v54  ;;  %v9800_v54 = vcombine.low %v1568_v34, %v1572_v36  ;;  %v9809_v55 = vcombine.high %v1576_v45, %v1580_v50  ;;  %v1608_v34 = vld [vmem:[#allocation8 + $0x1688] sm:$0xff] }
 0x280   :  { %7638 = vmatprep.mubr.bf16.mxu1 %v11065_v57  ;;  %7280 = vmatprep.subr.bf16.mxu0 %v9767_v11  ;;  %v9807_v11 = vcombine.high %v1575_v43, %v1579_v44  ;;  %v1612_v36 = vld [vmem:[#allocation8 + $0x16a8] sm:$0xff] }
 0x281   :  { %7608 = vmatprep.subr.bf16.mxu1 %v9769_v2  ;;  %v1587_v2 = vld [vmem:[#allocation8 + $0x15e0] sm:$0xff] }
 0x282   :  { %7281 = vmatpush1.bf16.msra.mxu0 %v9766_v62  ;;  %v9806_v62 = vcombine.low %v1575_v43, %v1579_v44  ;;  %v1615_v43 = vld [vmem:[#allocation8 + $0x16c0] sm:$0xff] }
 0x283   :  { %7609 = vmatpush1.bf16.msra.mxu1 %v9768_v26  ;;  %7282 = vmatprep.subr.bf16.mxu0 %v9775_v25  ;;  %v9808_v26 = vcombine.low %v1576_v45, %v1580_v50  ;;  %v9815_v25 = vcombine.high %v1583_v56, %v1587_v2  ;;  %v1619_v44 = vld [vmem:[#allocation8 + $0x16e0] sm:$0xff]  ;;  %v1616_v45 = vld [vmem:[#allocation8 + $0x16c8] sm:$0xff] }
 0x284   :  { %7610 = vmatprep.subr.bf16.mxu1 %v9777_v6  ;;  %v9817_v6 = vcombine.high %v1584_v60, %v1588_v61  ;;  %v1620_v50 = vld [vmem:[#allocation8 + $0x16e8] sm:$0xff] }
 0x286   :  { %7283 = vmatpush1.bf16.msra.mxu0 %v9774_v16  ;;  %v9814_v16 = vcombine.low %v1583_v56, %v1587_v2  ;;  %v1623_v56 = vld [vmem:[#allocation8 + $0x1700] sm:$0xff] }
 0x287   :  { %7611 = vmatpush1.bf16.msra.mxu1 %v9776_v17  ;;  %7284 = vmatprep.subr.bf16.mxu0 %v9783_v18  ;;  %v9816_v17 = vcombine.low %v1584_v60, %v1588_v61  ;;  %v9823_v18 = vcombine.high %v1591_v7, %v1595_v8  ;;  %v1627_v2 = vld [vmem:[#allocation8 + $0x1720] sm:$0xff]  ;;  %v1624_v60 = vld [vmem:[#allocation8 + $0x1708] sm:$0xff] }
 0x288   :  { %7612 = vmatprep.subr.bf16.mxu1 %v9785_v20  ;;  %v9825_v20 = vcombine.high %v1592_v10, %v1596_v14  ;;  %v1628_v61 = vld [vmem:[#allocation8 + $0x1728] sm:$0xff] }
 0x28a   :  { %7285 = vmatpush1.bf16.msra.mxu0 %v9782_v29  ;;  %v9822_v29 = vcombine.low %v1591_v7, %v1595_v8  ;;  %v1631_v7 = vld [vmem:[#allocation8 + $0x1740] sm:$0xff] }
 0x28b   :  { %7613 = vmatpush1.bf16.msra.mxu1 %v9784_v48  ;;  %7286 = vmatprep.subr.bf16.mxu0 %v9791_v41  ;;  %v9824_v48 = vcombine.low %v1592_v10, %v1596_v14  ;;  %v9831_v41 = vcombine.high %v1599_v19, %v1603_v21  ;;  %v1635_v8 = vld [vmem:[#allocation8 + $0x1760] sm:$0xff]  ;;  %v1632_v10 = vld [vmem:[#allocation8 + $0x1748] sm:$0xff] }
 0x28c   :  { %7614 = vmatprep.subr.bf16.mxu1 %v9793_v59  ;;  %v9833_v59 = vcombine.high %v1600_v27, %v1604_v28  ;;  %v1636_v14 = vld [vmem:[#allocation8 + $0x1768] sm:$0xff] }
 0x28e   :  { %7287 = vmatpush1.bf16.msra.mxu0 %v9790_v37  ;;  %v9830_v37 = vcombine.low %v1599_v19, %v1603_v21  ;;  %v1639_v19 = vld [vmem:[#allocation8 + $0x1780] sm:$0xff] }
 0x28f   :  { %7615 = vmatpush1.bf16.msra.mxu1 %v9792_v42  ;;  %7288 = vmatprep.subr.bf16.mxu0 %v9799_v13  ;;  %v9832_v42 = vcombine.low %v1600_v27, %v1604_v28  ;;  %v9839_v13 = vcombine.high %v1607_v32, %v1611_v33  ;;  %v1643_v21 = vld [vmem:[#allocation8 + $0x17a0] sm:$0xff]  ;;  %v1640_v27 = vld [vmem:[#allocation8 + $0x1788] sm:$0xff] }
 0x290   :  { %7616 = vmatprep.subr.bf16.mxu1 %v9801_v35  ;;  %v9841_v35 = vcombine.high %v1608_v34, %v1612_v36  ;;  %v1644_v28 = vld [vmem:[#allocation8 + $0x17a8] sm:$0xff] }
 0x292   :  { %7289 = vmatpush1.bf16.msra.mxu0 %v9798_v52  ;;  %v9838_v52 = vcombine.low %v1607_v32, %v1611_v33  ;;  %v1647_v32 = vld [vmem:[#allocation8 + $0x17c0] sm:$0xff] }
 0x293   :  { %7617 = vmatpush1.bf16.msra.mxu1 %v9800_v54  ;;  %7290 = vmatprep.subr.bf16.mxu0 %v9807_v11  ;;  %v9840_v54 = vcombine.low %v1608_v34, %v1612_v36  ;;  %v9847_v11 = vcombine.high %v1615_v43, %v1619_v44  ;;  %v1651_v33 = vld [vmem:[#allocation8 + $0x17e0] sm:$0xff]  ;;  %v1648_v34 = vld [vmem:[#allocation8 + $0x17c8] sm:$0xff] }
 0x294   :  { %7618 = vmatprep.subr.bf16.mxu1 %v9809_v55  ;;  %v9849_v55 = vcombine.high %v1616_v45, %v1620_v50  ;;  %v1652_v36 = vld [vmem:[#allocation8 + $0x17e8] sm:$0xff] }
 0x296   :  { %7291 = vmatpush1.bf16.msra.mxu0 %v9806_v62  ;;  %v9846_v62 = vcombine.low %v1615_v43, %v1619_v44  ;;  %v1655_v43 = vld [vmem:[#allocation8 + $0x1800] sm:$0xff] }
 0x297   :  { %7619 = vmatpush1.bf16.msra.mxu1 %v9808_v26  ;;  %7292 = vmatprep.subr.bf16.mxu0 %v9815_v25  ;;  %v9848_v26 = vcombine.low %v1616_v45, %v1620_v50  ;;  %v9855_v25 = vcombine.high %v1623_v56, %v1627_v2  ;;  %v1659_v44 = vld [vmem:[#allocation8 + $0x1820] sm:$0xff]  ;;  %v1656_v45 = vld [vmem:[#allocation8 + $0x1808] sm:$0xff] }
 0x298   :  { %7620 = vmatprep.subr.bf16.mxu1 %v9817_v6  ;;  %v9857_v6 = vcombine.high %v1624_v60, %v1628_v61  ;;  %v1660_v50 = vld [vmem:[#allocation8 + $0x1828] sm:$0xff] }
 0x29a   :  { %7293 = vmatpush1.bf16.msra.mxu0 %v9814_v16  ;;  %v9854_v16 = vcombine.low %v1623_v56, %v1627_v2  ;;  %v9889_v56 = vcombine.high %v1656_v45, %v1660_v50  ;;  %v868_v2 = vmax.f32 %v11008_v24, 0.0 }
 0x29b   :  { %7621 = vmatpush1.bf16.msra.mxu1 %v9816_v17  ;;  %7294 = vmatprep.subr.bf16.mxu0 %v9823_v18  ;;  %v9856_v17 = vcombine.low %v1624_v60, %v1628_v61  ;;  %v9863_v18 = vcombine.high %v1631_v7, %v1635_v8  ;;  %v1663_v60 = vld [vmem:[#allocation8 + $0x1840] sm:$0xff] }
 0x29c   :  { %7622 = vmatprep.subr.bf16.mxu1 %v9825_v20  ;;  %v9865_v20 = vcombine.high %v1632_v10, %v1636_v14  ;;  %v1667_v61 = vld [vmem:[#allocation8 + $0x1860] sm:$0xff] }
 0x29e   :  { %7295 = vmatpush1.bf16.msra.mxu0 %v9822_v29  ;;  %v9862_v29 = vcombine.low %v1631_v7, %v1635_v8  ;;  %v9888_v7 = vcombine.low %v1656_v45, %v1660_v50  ;;  %v1671_v8 = vld [vmem:[#allocation8 + $0x1880] sm:$0xff] }
 0x29f   :  { %7623 = vmatpush1.bf16.msra.mxu1 %v9824_v48  ;;  %7296 = vmatprep.subr.bf16.mxu0 %v9831_v41  ;;  %v9864_v48 = vcombine.low %v1632_v10, %v1636_v14  ;;  %v9871_v41 = vcombine.high %v1639_v19, %v1643_v21  ;;  %v1675_v10 = vld [vmem:[#allocation8 + $0x18a0] sm:$0xff]  ;;  %v11075_v14 = vpack.c.bf16 %v868_v2, %v868_v2 }
 0x2a0   :  { %7624 = vmatprep.subr.bf16.mxu1 %v9833_v59  ;;  %v9873_v59 = vcombine.high %v1640_v27, %v1644_v28  ;;  %v1695_v45 = vld [vmem:[#allocation8 + $0x1940] sm:$0xff] }
 0x2a1   :  { %v1699_v50 = vld [vmem:[#allocation8 + $0x1960] sm:$0xff] }
 0x2a2   :  { %7297 = vmatpush1.bf16.msra.mxu0 %v9830_v37  ;;  %v9870_v37 = vcombine.low %v1639_v19, %v1643_v21  ;;  %v9903_v19 = vcombine.high %v1671_v8, %v1675_v10 }
 0x2a3   :  { %7625 = vmatpush1.bf16.msra.mxu1 %v9832_v42  ;;  %7298 = vmatprep.subr.bf16.mxu0 %v9839_v13  ;;  %v9872_v42 = vcombine.low %v1640_v27, %v1644_v28  ;;  %v9879_v13 = vcombine.high %v1647_v32, %v1651_v33  ;;  %v1679_v27 = vld [vmem:[#allocation8 + $0x18c0] sm:$0xff] }
 0x2a4   :  { %7626 = vmatprep.subr.bf16.mxu1 %v9841_v35  ;;  %v9881_v35 = vcombine.high %v1648_v34, %v1652_v36  ;;  %v1683_v28 = vld [vmem:[#allocation8 + $0x18e0] sm:$0xff] }
 0x2a6   :  { %7299 = vmatpush1.bf16.msra.mxu0 %v9838_v52  ;;  %v9878_v52 = vcombine.low %v1647_v32, %v1651_v33  ;;  %v9911_v32 = vcombine.high %v1679_v27, %v1683_v28 }
 0x2a7   :  { %7627 = vmatpush1.bf16.msra.mxu1 %v9840_v54  ;;  %7300 = vmatprep.subr.bf16.mxu0 %v9847_v11  ;;  %v865_v54 = vmax.f32 %v10988_v58, 0.0  ;;  %v9880_v11 = vcombine.low %v1648_v34, %v1652_v36  ;;  %v9895_v58 = vcombine.high %v1663_v60, %v1667_v61  ;;  %v1687_v34 = vld [vmem:[#allocation8 + $0x1900] sm:$0xff] }
 0x2a8   :  { %7628 = vmatprep.subr.bf16.mxu1 %v9849_v55  ;;  %v9887_v55 = vcombine.high %v1655_v43, %v1659_v44  ;;  %v1691_v36 = vld [vmem:[#allocation8 + $0x1920] sm:$0xff] }
 0x2aa   :  { %7301 = vmatpush1.bf16.msra.mxu0 %v9846_v62  ;;  %v9886_v62 = vcombine.low %v1655_v43, %v1659_v44  ;;  %v9919_v43 = vcombine.high %v1687_v34, %v1691_v36 }
 0x2ab   :  { %7629 = vmatpush1.bf16.msra.mxu1 %v9848_v26  ;;  %7302 = vmatprep.subr.bf16.mxu0 %v9855_v25  ;;  %v1664_v26 = vld [vmem:[#allocation8 + $0x1848] sm:$0xff] }
 0x2ac   :  { %7630 = vmatprep.subr.bf16.mxu1 %v9857_v6  ;;  %v1668_v25 = vld [vmem:[#allocation8 + $0x1868] sm:$0xff]  ;;  %v11073_v6 = vpack.c.bf16 %v865_v54, %v865_v54 }
 0x2ad   :  { %v9897_v24 = vcombine.high %v1664_v26, %v1668_v25  ;;  %v1700_v54 = vld [vmem:[#allocation8 + $0x1968] sm:$0xff] }
 0x2ae   :  { %7303 = vmatpush1.bf16.msra.mxu0 %v9854_v16  ;;  %v1672_v16 = vld [vmem:[#allocation8 + $0x1888] sm:$0xff] }
 0x2af   :  { %7631 = vmatpush1.bf16.msra.mxu1 %v9856_v17  ;;  %7304 = vmatprep.subr.bf16.mxu0 %v9863_v18  ;;  %v1676_v17 = vld [vmem:[#allocation8 + $0x18a8] sm:$0xff]  ;;  %v9894_v18 = vcombine.low %v1663_v60, %v1667_v61  ;;  %v1703_v60 = vld [vmem:[#allocation8 + $0x1980] sm:$0xff] }
 0x2b0   :  { %7632 = vmatprep.subr.bf16.mxu1 %v9865_v20  ;;  %v9896_v20 = vcombine.low %v1664_v26, %v1668_v25  ;;  %v9905_v21 = vcombine.high %v1672_v16, %v1676_v17  ;;  %v1707_v61 = vld [vmem:[#allocation8 + $0x19a0] sm:$0xff]  ;;  %v1708_v26 = vld [vmem:[#allocation8 + $0x19a8] sm:$0xff]  ;;  %v9926_v25 = vcombine.low %v1695_v45, %v1699_v50 }
 0x2b2   :  { %7305 = vmatpush1.bf16.msra.mxu0 %v9862_v29  ;;  %v1680_v29 = vld [vmem:[#allocation8 + $0x18c8] sm:$0xff] }
 0x2b3   :  { %7633 = vmatpush1.bf16.msra.mxu1 %v9864_v48  ;;  %7306 = vmatprep.subr.bf16.mxu0 %v9871_v41  ;;  %v1684_v48 = vld [vmem:[#allocation8 + $0x18e8] sm:$0xff]  ;;  %v9902_v41 = vcombine.low %v1671_v8, %v1675_v10  ;;  %v1711_v10 = vld [vmem:[#allocation8 + $0x19c0] sm:$0xff] }
 0x2b4   :  { %7634 = vmatprep.subr.bf16.mxu1 %v9873_v59  ;;  %v9904_v59 = vcombine.low %v1672_v16, %v1676_v17  ;;  %v9913_v33 = vcombine.high %v1680_v29, %v1684_v48  ;;  %v1712_v16 = vld [vmem:[#allocation8 + $0x19c8] sm:$0xff] }
 0x2b5   :  { %v1716_v17 = vld [vmem:[#allocation8 + $0x19e8] sm:$0xff] }
 0x2b6   :  { %7307 = vmatpush1.bf16.msra.mxu0 %v9870_v37  ;;  %v1688_v37 = vld [vmem:[#allocation8 + $0x1908] sm:$0xff] }
 0x2b7   :  { %7635 = vmatpush1.bf16.msra.mxu1 %v9872_v42  ;;  %7308 = vmatprep.subr.bf16.mxu0 %v9879_v13  ;;  %v1692_v42 = vld [vmem:[#allocation8 + $0x1928] sm:$0xff]  ;;  %v9910_v13 = vcombine.low %v1679_v27, %v1683_v28  ;;  %v1719_v27 = vld [vmem:[#allocation8 + $0x1a00] sm:$0xff] }
 0x2b8   :  { %7636 = vmatprep.subr.bf16.mxu1 %v9881_v35  ;;  %v9912_v35 = vcombine.low %v1680_v29, %v1684_v48  ;;  %v9921_v44 = vcombine.high %v1688_v37, %v1692_v42  ;;  %v1723_v28 = vld [vmem:[#allocation8 + $0x1a20] sm:$0xff]  ;;  %v1720_v29 = vld [vmem:[#allocation8 + $0x1a08] sm:$0xff] }
 0x2b9   :  { %v1724_v48 = vld [vmem:[#allocation8 + $0x1a28] sm:$0xff] }
 0x2ba   :  { %7309 = vmatpush1.bf16.msra.mxu0 %v9878_v52  ;;  %v1696_v52 = vld [vmem:[#allocation8 + $0x1948] sm:$0xff] }
 0x2bb   :  { %7637 = vmatpush1.bf16.msra.mxu1 %v9880_v11  ;;  %7319 = vmatprep.subr.bf16.mxu0 %v9887_v55  ;;  %v9918_v11 = vcombine.low %v1687_v34, %v1691_v36  ;;  %v9920_v55 = vcombine.low %v1688_v37, %v1692_v42  ;;  %v9929_v2 = vcombine.high %v1696_v52, %v1700_v54  ;;  %v1727_v34 = vld [vmem:[#allocation8 + $0x1a40] sm:$0xff]  ;;  %v1728_v37 = vld [vmem:[#allocation8 + $0x1a48] sm:$0xff] }
 0x2bc   :  { %7647 = vmatprep.subr.bf16.mxu1 %v9889_v56  ;;  %v9927_v56 = vcombine.high %v1695_v45, %v1699_v50  ;;  %v1731_v36 = vld [vmem:[#allocation8 + $0x1a60] sm:$0xff]  ;;  %v1732_v42 = vld [vmem:[#allocation8 + $0x1a68] sm:$0xff] }
 0x2bd   :  { %7311 = vmatmul.mubr.bf16.vlgmr.msra.gmra.mrb[8].mxu0 %v11073_v6  ;;  %v1735_v45 = vld [vmem:[#allocation8 + $0x1a80] sm:$0xff] }
 0x2be   :  { %7639 = vmatmul.mubr.bf16.vlgmr.msra.gmra.mrb[8].mxu1 %v11073_v6  ;;  %7320 = vmatpush1.bf16.msra.mxu0 %v9886_v62  ;;  %v1704_v62 = vld [vmem:[#allocation8 + $0x1988] sm:$0xff]  ;;  %v1739_v50 = vld [vmem:[#allocation8 + $0x1aa0] sm:$0xff] }
 0x2bf   :  { %7351 = vmatprep.mubr.bf16.mxu0 %v11075_v14  ;;  %7648 = vmatpush1.bf16.msra.mxu1 %v9888_v7  ;;  %v9928_v7 = vcombine.low %v1696_v52, %v1700_v54  ;;  %v9937_v8 = vcombine.high %v1704_v62, %v1708_v26  ;;  %v1736_v52 = vld [vmem:[#allocation8 + $0x1a88] sm:$0xff] }
 0x2c0   :  { %7679 = vmatprep.mubr.bf16.mxu1 %v11075_v14  ;;  %7321 = vmatprep.subr.bf16.mxu0 %v9895_v58  ;;  %v9935_v58 = vcombine.high %v1703_v60, %v1707_v61  ;;  %v1740_v54 = vld [vmem:[#allocation8 + $0x1aa8] sm:$0xff] }
 0x2c1   :  { %7649 = vmatprep.subr.bf16.mxu1 %v9897_v24  ;;  %v1715_v24 = vld [vmem:[#allocation8 + $0x19e0] sm:$0xff] }
 0x2c2   :  { %7322 = vmatpush1.bf16.msra.mxu0 %v9894_v18  ;;  %v9934_v18 = vcombine.low %v1703_v60, %v1707_v61  ;;  %v1743_v60 = vld [vmem:[#allocation8 + $0x1ac0] sm:$0xff] }
 0x2c3   :  { %7650 = vmatpush1.bf16.msra.mxu1 %v9896_v20  ;;  %7323 = vmatprep.subr.bf16.mxu0 %v9903_v19  ;;  %v9936_v20 = vcombine.low %v1704_v62, %v1708_v26  ;;  %v9943_v19 = vcombine.high %v1711_v10, %v1715_v24  ;;  %v1747_v61 = vld [vmem:[#allocation8 + $0x1ae0] sm:$0xff]  ;;  %v1744_v62 = vld [vmem:[#allocation8 + $0x1ac8] sm:$0xff] }
 0x2c4   :  { %7651 = vmatprep.subr.bf16.mxu1 %v9905_v21  ;;  %v9945_v21 = vcombine.high %v1712_v16, %v1716_v17  ;;  %v1748_v26 = vld [vmem:[#allocation8 + $0x1ae8] sm:$0xff] }
 0x2c6   :  { %7324 = vmatpush1.bf16.msra.mxu0 %v9902_v41  ;;  %v9942_v41 = vcombine.low %v1711_v10, %v1715_v24  ;;  %v1751_v10 = vld [vmem:[#allocation8 + $0x1b00] sm:$0xff] }
 0x2c7   :  { %7652 = vmatpush1.bf16.msra.mxu1 %v9904_v59  ;;  %7325 = vmatprep.subr.bf16.mxu0 %v9911_v32  ;;  %v9944_v59 = vcombine.low %v1712_v16, %v1716_v17  ;;  %v9951_v32 = vcombine.high %v1719_v27, %v1723_v28  ;;  %v1755_v24 = vld [vmem:[#allocation8 + $0x1b20] sm:$0xff]  ;;  %v1752_v16 = vld [vmem:[#allocation8 + $0x1b08] sm:$0xff] }
 0x2c8   :  { %7653 = vmatprep.subr.bf16.mxu1 %v9913_v33  ;;  %v9953_v33 = vcombine.high %v1720_v29, %v1724_v48  ;;  %v1756_v17 = vld [vmem:[#allocation8 + $0x1b28] sm:$0xff] }
 0x2ca   :  { %7326 = vmatpush1.bf16.msra.mxu0 %v9910_v13  ;;  %v9950_v13 = vcombine.low %v1719_v27, %v1723_v28  ;;  %v1759_v27 = vld [vmem:[#allocation8 + $0x1b40] sm:$0xff] }
 0x2cb   :  { %7654 = vmatpush1.bf16.msra.mxu1 %v9912_v35  ;;  %7327 = vmatprep.subr.bf16.mxu0 %v9919_v43  ;;  %v9952_v35 = vcombine.low %v1720_v29, %v1724_v48  ;;  %v9959_v43 = vcombine.high %v1727_v34, %v1731_v36  ;;  %v1763_v28 = vld [vmem:[#allocation8 + $0x1b60] sm:$0xff]  ;;  %v1760_v29 = vld [vmem:[#allocation8 + $0x1b48] sm:$0xff] }
 0x2cc   :  { %7655 = vmatprep.subr.bf16.mxu1 %v9921_v44  ;;  %v9961_v44 = vcombine.high %v1728_v37, %v1732_v42  ;;  %v1764_v48 = vld [vmem:[#allocation8 + $0x1b68] sm:$0xff] }
 0x2ce   :  { %7328 = vmatpush1.bf16.msra.mxu0 %v9918_v11  ;;  %v9958_v11 = vcombine.low %v1727_v34, %v1731_v36  ;;  %v1767_v34 = vld [vmem:[#allocation8 + $0x1b80] sm:$0xff] }
 0x2cf   :  { %7656 = vmatpush1.bf16.msra.mxu1 %v9920_v55  ;;  %7329 = vmatprep.subr.bf16.mxu0 %v9927_v56  ;;  %v9960_v55 = vcombine.low %v1728_v37, %v1732_v42  ;;  %v9967_v56 = vcombine.high %v1735_v45, %v1739_v50  ;;  %v1771_v36 = vld [vmem:[#allocation8 + $0x1ba0] sm:$0xff]  ;;  %v1768_v37 = vld [vmem:[#allocation8 + $0x1b88] sm:$0xff] }
 0x2d0   :  { %7657 = vmatprep.subr.bf16.mxu1 %v9929_v2  ;;  %v9969_v2 = vcombine.high %v1736_v52, %v1740_v54  ;;  %v1772_v42 = vld [vmem:[#allocation8 + $0x1ba8] sm:$0xff] }
 0x2d2   :  { %7330 = vmatpush1.bf16.msra.mxu0 %v9926_v25  ;;  %v9966_v25 = vcombine.low %v1735_v45, %v1739_v50  ;;  %v1775_v45 = vld [vmem:[#allocation8 + $0x1bc0] sm:$0xff] }
 0x2d3   :  { %7658 = vmatpush1.bf16.msra.mxu1 %v9928_v7  ;;  %7331 = vmatprep.subr.bf16.mxu0 %v9935_v58  ;;  %v9968_v7 = vcombine.low %v1736_v52, %v1740_v54  ;;  %v9975_v58 = vcombine.high %v1743_v60, %v1747_v61  ;;  %v1779_v50 = vld [vmem:[#allocation8 + $0x1be0] sm:$0xff]  ;;  %v1776_v52 = vld [vmem:[#allocation8 + $0x1bc8] sm:$0xff] }
 0x2d4   :  { %7659 = vmatprep.subr.bf16.mxu1 %v9937_v8  ;;  %v9977_v8 = vcombine.high %v1744_v62, %v1748_v26  ;;  %v1780_v54 = vld [vmem:[#allocation8 + $0x1be8] sm:$0xff] }
 0x2d6   :  { %7332 = vmatpush1.bf16.msra.mxu0 %v9934_v18  ;;  %v9974_v18 = vcombine.low %v1743_v60, %v1747_v61  ;;  %v1783_v60 = vld [vmem:[#allocation8 + $0x1c00] sm:$0xff] }
 0x2d7   :  { %7660 = vmatpush1.bf16.msra.mxu1 %v9936_v20  ;;  %7333 = vmatprep.subr.bf16.mxu0 %v9943_v19  ;;  %v9976_v20 = vcombine.low %v1744_v62, %v1748_v26  ;;  %v9983_v19 = vcombine.high %v1751_v10, %v1755_v24  ;;  %v1787_v61 = vld [vmem:[#allocation8 + $0x1c20] sm:$0xff]  ;;  %v1784_v62 = vld [vmem:[#allocation8 + $0x1c08] sm:$0xff] }
 0x2d8   :  { %7661 = vmatprep.subr.bf16.mxu1 %v9945_v21  ;;  %v9985_v21 = vcombine.high %v1752_v16, %v1756_v17  ;;  %v1788_v26 = vld [vmem:[#allocation8 + $0x1c28] sm:$0xff] }
 0x2da   :  { %7334 = vmatpush1.bf16.msra.mxu0 %v9942_v41  ;;  %v9982_v41 = vcombine.low %v1751_v10, %v1755_v24  ;;  %v10017_v10 = vcombine.high %v1784_v62, %v1788_v26  ;;  %v870_v24 = vmax.f32 %v11014_v39, 0.0 }
 0x2db   :  { %7662 = vmatpush1.bf16.msra.mxu1 %v9944_v59  ;;  %7335 = vmatprep.subr.bf16.mxu0 %v9951_v32  ;;  %v9984_v59 = vcombine.low %v1752_v16, %v1756_v17  ;;  %v9991_v32 = vcombine.high %v1759_v27, %v1763_v28  ;;  %v1791_v16 = vld [vmem:[#allocation8 + $0x1c40] sm:$0xff] }
 0x2dc   :  { %7663 = vmatprep.subr.bf16.mxu1 %v9953_v33  ;;  %v9993_v33 = vcombine.high %v1760_v29, %v1764_v48  ;;  %v1795_v17 = vld [vmem:[#allocation8 + $0x1c60] sm:$0xff] }
 0x2de   :  { %7336 = vmatpush1.bf16.msra.mxu0 %v9950_v13  ;;  %v9990_v13 = vcombine.low %v1759_v27, %v1763_v28  ;;  %v10016_v27 = vcombine.low %v1784_v62, %v1788_v26  ;;  %v1799_v28 = vld [vmem:[#allocation8 + $0x1c80] sm:$0xff] }
 0x2df   :  { %7664 = vmatpush1.bf16.msra.mxu1 %v9952_v35  ;;  %7337 = vmatprep.subr.bf16.mxu0 %v9959_v43  ;;  %v9992_v35 = vcombine.low %v1760_v29, %v1764_v48  ;;  %v9999_v43 = vcombine.high %v1767_v34, %v1771_v36  ;;  %v1803_v29 = vld [vmem:[#allocation8 + $0x1ca0] sm:$0xff]  ;;  %v11085_v48 = vpack.c.bf16 %v870_v24, %v870_v24 }
 0x2e0   :  { %7665 = vmatprep.subr.bf16.mxu1 %v9961_v44  ;;  %v10001_v44 = vcombine.high %v1768_v37, %v1772_v42  ;;  %v1823_v62 = vld [vmem:[#allocation8 + $0x1d40] sm:$0xff] }
 0x2e1   :  { %v1827_v26 = vld [vmem:[#allocation8 + $0x1d60] sm:$0xff] }
 0x2e2   :  { %7338 = vmatpush1.bf16.msra.mxu0 %v9958_v11  ;;  %v9998_v11 = vcombine.low %v1767_v34, %v1771_v36  ;;  %v10031_v34 = vcombine.high %v1799_v28, %v1803_v29 }
 0x2e3   :  { %7666 = vmatpush1.bf16.msra.mxu1 %v9960_v55  ;;  %7339 = vmatprep.subr.bf16.mxu0 %v9967_v56  ;;  %v10000_v55 = vcombine.low %v1768_v37, %v1772_v42  ;;  %v10007_v56 = vcombine.high %v1775_v45, %v1779_v50  ;;  %v1807_v37 = vld [vmem:[#allocation8 + $0x1cc0] sm:$0xff] }
 0x2e4   :  { %7667 = vmatprep.subr.bf16.mxu1 %v9969_v2  ;;  %v10009_v2 = vcombine.high %v1776_v52, %v1780_v54  ;;  %v1811_v42 = vld [vmem:[#allocation8 + $0x1ce0] sm:$0xff] }
 0x2e6   :  { %7340 = vmatpush1.bf16.msra.mxu0 %v9966_v25  ;;  %v10006_v25 = vcombine.low %v1775_v45, %v1779_v50  ;;  %v10039_v45 = vcombine.high %v1807_v37, %v1811_v42 }
 0x2e7   :  { %7668 = vmatpush1.bf16.msra.mxu1 %v9968_v7  ;;  %7341 = vmatprep.subr.bf16.mxu0 %v9975_v58  ;;  %v867_v7 = vmax.f32 %v11006_v23, 0.0  ;;  %v10008_v58 = vcombine.low %v1776_v52, %v1780_v54  ;;  %v10023_v23 = vcombine.high %v1791_v16, %v1795_v17  ;;  %v1815_v52 = vld [vmem:[#allocation8 + $0x1d00] sm:$0xff] }
 0x2e8   :  { %7669 = vmatprep.subr.bf16.mxu1 %v9977_v8  ;;  %v10015_v8 = vcombine.high %v1783_v60, %v1787_v61  ;;  %v1819_v54 = vld [vmem:[#allocation8 + $0x1d20] sm:$0xff] }
 0x2ea   :  { %7342 = vmatpush1.bf16.msra.mxu0 %v9974_v18  ;;  %v10014_v18 = vcombine.low %v1783_v60, %v1787_v61  ;;  %v10047_v60 = vcombine.high %v1815_v52, %v1819_v54 }
 0x2eb   :  { %7670 = vmatpush1.bf16.msra.mxu1 %v9976_v20  ;;  %7343 = vmatprep.subr.bf16.mxu0 %v9983_v19  ;;  %v1792_v20 = vld [vmem:[#allocation8 + $0x1c48] sm:$0xff] }
 0x2ec   :  { %7671 = vmatprep.subr.bf16.mxu1 %v9985_v21  ;;  %v1796_v19 = vld [vmem:[#allocation8 + $0x1c68] sm:$0xff]  ;;  %v11083_v21 = vpack.c.bf16 %v867_v7, %v867_v7 }
 0x2ed   :  { %v10025_v39 = vcombine.high %v1792_v20, %v1796_v19  ;;  %v1828_v7 = vld [vmem:[#allocation8 + $0x1d68] sm:$0xff] }
 0x2ee   :  { %7344 = vmatpush1.bf16.msra.mxu0 %v9982_v41  ;;  %v1800_v41 = vld [vmem:[#allocation8 + $0x1c88] sm:$0xff] }
 0x2ef   :  { %7672 = vmatpush1.bf16.msra.mxu1 %v9984_v59  ;;  %7345 = vmatprep.subr.bf16.mxu0 %v9991_v32  ;;  %v1804_v59 = vld [vmem:[#allocation8 + $0x1ca8] sm:$0xff]  ;;  %v10022_v32 = vcombine.low %v1791_v16, %v1795_v17  ;;  %v1831_v16 = vld [vmem:[#allocation8 + $0x1d80] sm:$0xff] }
 0x2f0   :  { %7673 = vmatprep.subr.bf16.mxu1 %v9993_v33  ;;  %v10024_v33 = vcombine.low %v1792_v20, %v1796_v19  ;;  %v10033_v36 = vcombine.high %v1800_v41, %v1804_v59  ;;  %v1835_v17 = vld [vmem:[#allocation8 + $0x1da0] sm:$0xff]  ;;  %v1836_v20 = vld [vmem:[#allocation8 + $0x1da8] sm:$0xff]  ;;  %v10054_v19 = vcombine.low %v1823_v62, %v1827_v26 }
 0x2f2   :  { %7346 = vmatpush1.bf16.msra.mxu0 %v9990_v13  ;;  %v1808_v13 = vld [vmem:[#allocation8 + $0x1cc8] sm:$0xff] }
 0x2f3   :  { %7674 = vmatpush1.bf16.msra.mxu1 %v9992_v35  ;;  %7347 = vmatprep.subr.bf16.mxu0 %v9999_v43  ;;  %v1812_v35 = vld [vmem:[#allocation8 + $0x1ce8] sm:$0xff]  ;;  %v10030_v43 = vcombine.low %v1799_v28, %v1803_v29  ;;  %v1839_v29 = vld [vmem:[#allocation8 + $0x1dc0] sm:$0xff] }
 0x2f4   :  { %7675 = vmatprep.subr.bf16.mxu1 %v10001_v44  ;;  %v10032_v44 = vcombine.low %v1800_v41, %v1804_v59  ;;  %v10041_v50 = vcombine.high %v1808_v13, %v1812_v35  ;;  %v1840_v41 = vld [vmem:[#allocation8 + $0x1dc8] sm:$0xff] }
 0x2f5   :  { %v1844_v59 = vld [vmem:[#allocation8 + $0x1de8] sm:$0xff] }
 0x2f6   :  { %7348 = vmatpush1.bf16.msra.mxu0 %v9998_v11  ;;  %v1816_v11 = vld [vmem:[#allocation8 + $0x1d08] sm:$0xff] }
 0x2f7   :  { %7676 = vmatpush1.bf16.msra.mxu1 %v10000_v55  ;;  %7349 = vmatprep.subr.bf16.mxu0 %v10007_v56  ;;  %v1820_v55 = vld [vmem:[#allocation8 + $0x1d28] sm:$0xff]  ;;  %v10038_v56 = vcombine.low %v1807_v37, %v1811_v42  ;;  %v1847_v37 = vld [vmem:[#allocation8 + $0x1e00] sm:$0xff] }
 0x2f8   :  { %7677 = vmatprep.subr.bf16.mxu1 %v10009_v2  ;;  %v10040_v2 = vcombine.low %v1808_v13, %v1812_v35  ;;  %v10049_v61 = vcombine.high %v1816_v11, %v1820_v55  ;;  %v1851_v42 = vld [vmem:[#allocation8 + $0x1e20] sm:$0xff]  ;;  %v1848_v13 = vld [vmem:[#allocation8 + $0x1e08] sm:$0xff] }
 0x2f9   :  { %v1852_v35 = vld [vmem:[#allocation8 + $0x1e28] sm:$0xff] }
 0x2fa   :  { %7350 = vmatpush1.bf16.msra.mxu0 %v10006_v25  ;;  %v1824_v25 = vld [vmem:[#allocation8 + $0x1d48] sm:$0xff] }
 0x2fb   :  { %7678 = vmatpush1.bf16.msra.mxu1 %v10008_v58  ;;  %7360 = vmatprep.subr.bf16.mxu0 %v10015_v8  ;;  %v10046_v58 = vcombine.low %v1815_v52, %v1819_v54  ;;  %v10048_v8 = vcombine.low %v1816_v11, %v1820_v55  ;;  %v10057_v24 = vcombine.high %v1824_v25, %v1828_v7  ;;  %v1855_v52 = vld [vmem:[#allocation8 + $0x1e40] sm:$0xff]  ;;  %v1856_v11 = vld [vmem:[#allocation8 + $0x1e48] sm:$0xff] }
 0x2fc   :  { %7688 = vmatprep.subr.bf16.mxu1 %v10017_v10  ;;  %v10055_v10 = vcombine.high %v1823_v62, %v1827_v26  ;;  %v1859_v54 = vld [vmem:[#allocation8 + $0x1e60] sm:$0xff]  ;;  %v1860_v55 = vld [vmem:[#allocation8 + $0x1e68] sm:$0xff] }
 0x2fd   :  { %7352 = vmatmul.mubr.bf16.vlgmr.msra.gmra.mrb[8].mxu0 %v11083_v21  ;;  %v1863_v62 = vld [vmem:[#allocation8 + $0x1e80] sm:$0xff] }
 0x2fe   :  { %7680 = vmatmul.mubr.bf16.vlgmr.msra.gmra.mrb[8].mxu1 %v11083_v21  ;;  %7361 = vmatpush1.bf16.msra.mxu0 %v10014_v18  ;;  %v1832_v18 = vld [vmem:[#allocation8 + $0x1d88] sm:$0xff]  ;;  %v1867_v26 = vld [vmem:[#allocation8 + $0x1ea0] sm:$0xff] }
 0x2ff   :  { %7392 = vmatprep.mubr.bf16.mxu0 %v11085_v48  ;;  %7689 = vmatpush1.bf16.msra.mxu1 %v10016_v27  ;;  %v10056_v27 = vcombine.low %v1824_v25, %v1828_v7  ;;  %v10065_v28 = vcombine.high %v1832_v18, %v1836_v20  ;;  %v1864_v25 = vld [vmem:[#allocation8 + $0x1e88] sm:$0xff] }
 0x300   :  { %7720 = vmatprep.mubr.bf16.mxu1 %v11085_v48  ;;  %7362 = vmatprep.subr.bf16.mxu0 %v10023_v23  ;;  %v10063_v23 = vcombine.high %v1831_v16, %v1835_v17  ;;  %v1868_v7 = vld [vmem:[#allocation8 + $0x1ea8] sm:$0xff] }
 0x301   :  { %7690 = vmatprep.subr.bf16.mxu1 %v10025_v39  ;;  %v1843_v39 = vld [vmem:[#allocation8 + $0x1de0] sm:$0xff] }
 0x302   :  { %7363 = vmatpush1.bf16.msra.mxu0 %v10022_v32  ;;  %v10062_v32 = vcombine.low %v1831_v16, %v1835_v17  ;;  %v1871_v16 = vld [vmem:[#allocation8 + $0x1ec0] sm:$0xff] }
 0x303   :  { %7691 = vmatpush1.bf16.msra.mxu1 %v10024_v33  ;;  %7364 = vmatprep.subr.bf16.mxu0 %v10031_v34  ;;  %v10064_v33 = vcombine.low %v1832_v18, %v1836_v20  ;;  %v10071_v34 = vcombine.high %v1839_v29, %v1843_v39  ;;  %v1875_v17 = vld [vmem:[#allocation8 + $0x1ee0] sm:$0xff]  ;;  %v1872_v18 = vld [vmem:[#allocation8 + $0x1ec8] sm:$0xff] }
 0x304   :  { %7692 = vmatprep.subr.bf16.mxu1 %v10033_v36  ;;  %v10073_v36 = vcombine.high %v1840_v41, %v1844_v59  ;;  %v1876_v20 = vld [vmem:[#allocation8 + $0x1ee8] sm:$0xff] }
 0x306   :  { %7365 = vmatpush1.bf16.msra.mxu0 %v10030_v43  ;;  %v10070_v43 = vcombine.low %v1839_v29, %v1843_v39  ;;  %v1879_v29 = vld [vmem:[#allocation8 + $0x1f00] sm:$0xff] }
 0x307   :  { %7693 = vmatpush1.bf16.msra.mxu1 %v10032_v44  ;;  %7366 = vmatprep.subr.bf16.mxu0 %v10039_v45  ;;  %v10072_v44 = vcombine.low %v1840_v41, %v1844_v59  ;;  %v10079_v45 = vcombine.high %v1847_v37, %v1851_v42  ;;  %v1883_v39 = vld [vmem:[#allocation8 + $0x1f20] sm:$0xff]  ;;  %v1880_v41 = vld [vmem:[#allocation8 + $0x1f08] sm:$0xff] }
 0x308   :  { %7694 = vmatprep.subr.bf16.mxu1 %v10041_v50  ;;  %v10081_v50 = vcombine.high %v1848_v13, %v1852_v35  ;;  %v1884_v59 = vld [vmem:[#allocation8 + $0x1f28] sm:$0xff] }
 0x30a   :  { %7367 = vmatpush1.bf16.msra.mxu0 %v10038_v56  ;;  %v10078_v56 = vcombine.low %v1847_v37, %v1851_v42  ;;  %v1887_v37 = vld [vmem:[#allocation8 + $0x1f40] sm:$0xff] }
 0x30b   :  { %7695 = vmatpush1.bf16.msra.mxu1 %v10040_v2  ;;  %7368 = vmatprep.subr.bf16.mxu0 %v10047_v60  ;;  %v10080_v2 = vcombine.low %v1848_v13, %v1852_v35  ;;  %v10087_v60 = vcombine.high %v1855_v52, %v1859_v54  ;;  %v1891_v42 = vld [vmem:[#allocation8 + $0x1f60] sm:$0xff]  ;;  %v1888_v13 = vld [vmem:[#allocation8 + $0x1f48] sm:$0xff] }
 0x30c   :  { %7696 = vmatprep.subr.bf16.mxu1 %v10049_v61  ;;  %v10089_v61 = vcombine.high %v1856_v11, %v1860_v55  ;;  %v1892_v35 = vld [vmem:[#allocation8 + $0x1f68] sm:$0xff] }
 0x30e   :  { %7369 = vmatpush1.bf16.msra.mxu0 %v10046_v58  ;;  %v10086_v58 = vcombine.low %v1855_v52, %v1859_v54  ;;  %v1895_v52 = vld [vmem:[#allocation8 + $0x1f80] sm:$0xff] }
 0x30f   :  { %7697 = vmatpush1.bf16.msra.mxu1 %v10048_v8  ;;  %7370 = vmatprep.subr.bf16.mxu0 %v10055_v10  ;;  %v10088_v8 = vcombine.low %v1856_v11, %v1860_v55  ;;  %v10095_v10 = vcombine.high %v1863_v62, %v1867_v26  ;;  %v1899_v54 = vld [vmem:[#allocation8 + $0x1fa0] sm:$0xff]  ;;  %v1896_v11 = vld [vmem:[#allocation8 + $0x1f88] sm:$0xff] }
 0x310   :  { %7698 = vmatprep.subr.bf16.mxu1 %v10057_v24  ;;  %v10097_v24 = vcombine.high %v1864_v25, %v1868_v7  ;;  %v1900_v55 = vld [vmem:[#allocation8 + $0x1fa8] sm:$0xff] }
 0x312   :  { %7371 = vmatpush1.bf16.msra.mxu0 %v10054_v19  ;;  %v10094_v19 = vcombine.low %v1863_v62, %v1867_v26  ;;  %v1903_v62 = vld [vmem:[#allocation8 + $0x1fc0] sm:$0xff] }
 0x313   :  { %7699 = vmatpush1.bf16.msra.mxu1 %v10056_v27  ;;  %7372 = vmatprep.subr.bf16.mxu0 %v10063_v23  ;;  %v10096_v27 = vcombine.low %v1864_v25, %v1868_v7  ;;  %v10103_v23 = vcombine.high %v1871_v16, %v1875_v17  ;;  %v1907_v26 = vld [vmem:[#allocation8 + $0x1fe0] sm:$0xff]  ;;  %v1904_v25 = vld [vmem:[#allocation8 + $0x1fc8] sm:$0xff] }
 0x314   :  { %7700 = vmatprep.subr.bf16.mxu1 %v10065_v28  ;;  %v10105_v28 = vcombine.high %v1872_v18, %v1876_v20  ;;  %v1908_v7 = vld [vmem:[#allocation8 + $0x1fe8] sm:$0xff] }
 0x316   :  { %7373 = vmatpush1.bf16.msra.mxu0 %v10062_v32  ;;  %v10102_v32 = vcombine.low %v1871_v16, %v1875_v17  ;;  %v889_v16 = vld [vmem:[#allocation8 + $0x10] sm:$0xff] }
 0x317   :  { %7701 = vmatpush1.bf16.msra.mxu1 %v10064_v33  ;;  %7374 = vmatprep.subr.bf16.mxu0 %v10071_v34  ;;  %v10104_v33 = vcombine.low %v1872_v18, %v1876_v20  ;;  %v10111_v34 = vcombine.high %v1879_v29, %v1883_v39  ;;  %v893_v17 = vld [vmem:[#allocation8 + $0x30] sm:$0xff]  ;;  %v890_v18 = vld [vmem:[#allocation8 + $0x18] sm:$0xff] }
 0x318   :  { %7702 = vmatprep.subr.bf16.mxu1 %v10073_v36  ;;  %v10113_v36 = vcombine.high %v1880_v41, %v1884_v59  ;;  %v894_v20 = vld [vmem:[#allocation8 + $0x38] sm:$0xff] }
 0x31a   :  { %7375 = vmatpush1.bf16.msra.mxu0 %v10070_v43  ;;  %v10110_v43 = vcombine.low %v1879_v29, %v1883_v39  ;;  %v9125_v29 = vcombine.high %v890_v18, %v894_v20  ;;  %v897_v39 = vld [vmem:[#allocation8 + $0x50] sm:$0xff] }
 0x31b   :  { %7703 = vmatpush1.bf16.msra.mxu1 %v10072_v44  ;;  %7376 = vmatprep.subr.bf16.mxu0 %v10079_v45  ;;  %v10112_v44 = vcombine.low %v1880_v41, %v1884_v59  ;;  %v10119_v45 = vcombine.high %v1887_v37, %v1891_v42  ;;  %v901_v41 = vld [vmem:[#allocation8 + $0x70] sm:$0xff]  ;;  %v9122_v59 = vcombine.low %v889_v16, %v893_v17 }
 0x31c   :  { %7704 = vmatprep.subr.bf16.mxu1 %v10081_v50  ;;  %v10121_v50 = vcombine.high %v1888_v13, %v1892_v35 }
 0x31e   :  { %7377 = vmatpush1.bf16.msra.mxu0 %v10078_v56  ;;  %v10118_v56 = vcombine.low %v1887_v37, %v1891_v42  ;;  %v9131_v37 = vcombine.high %v897_v39, %v901_v41  ;;  %v909_v42 = vld [vmem:[#allocation8 + $0xb0] sm:$0xff] }
 0x31f   :  { %7705 = vmatpush1.bf16.msra.mxu1 %v10080_v2  ;;  %7378 = vmatprep.subr.bf16.mxu0 %v10087_v60  ;;  %v10120_v2 = vcombine.low %v1888_v13, %v1892_v35  ;;  %v10127_v60 = vcombine.high %v1895_v52, %v1899_v54  ;;  %v906_v35 = vld [vmem:[#allocation8 + $0x98] sm:$0xff] }
 0x320   :  { %7706 = vmatprep.subr.bf16.mxu1 %v10089_v61  ;;  %v10129_v61 = vcombine.high %v1896_v11, %v1900_v55 }
 0x322   :  { %7379 = vmatpush1.bf16.msra.mxu0 %v10086_v58  ;;  %v10126_v58 = vcombine.low %v1895_v52, %v1899_v54  ;;  %v913_v54 = vld [vmem:[#allocation8 + $0xd0] sm:$0xff] }
 0x323   :  { %7707 = vmatpush1.bf16.msra.mxu1 %v10088_v8  ;;  %7380 = vmatprep.subr.bf16.mxu0 %v10095_v10  ;;  %v10128_v8 = vcombine.low %v1896_v11, %v1900_v55  ;;  %v10135_v10 = vcombine.high %v1903_v62, %v1907_v26  ;;  %v917_v11 = vld [vmem:[#allocation8 + $0xf0] sm:$0xff]  ;;  %v914_v55 = vld [vmem:[#allocation8 + $0xd8] sm:$0xff] }
 0x324   :  { %7708 = vmatprep.subr.bf16.mxu1 %v10097_v24  ;;  %v10137_v24 = vcombine.high %v1904_v25, %v1908_v7 }
 0x326   :  { %7381 = vmatpush1.bf16.msra.mxu0 %v10094_v19  ;;  %v10134_v19 = vcombine.low %v1903_v62, %v1907_v26  ;;  %v921_v26 = vld [vmem:[#allocation8 + $0x110] sm:$0xff] }
 0x327   :  { %7709 = vmatpush1.bf16.msra.mxu1 %v10096_v27  ;;  %7382 = vmatprep.subr.bf16.mxu0 %v10103_v23  ;;  %v869_v27 = vmax.f32 %v11012_v46, 0.0  ;;  %v10136_v23 = vcombine.low %v1904_v25, %v1908_v7  ;;  %v905_v46 = vld [vmem:[#allocation8 + $0x90] sm:$0xff]  ;;  %v922_v7 = vld [vmem:[#allocation8 + $0x118] sm:$0xff] }
 0x328   :  { %7710 = vmatprep.subr.bf16.mxu1 %v10105_v28  ;;  %v9123_v28 = vcombine.high %v889_v16, %v893_v17  ;;  %v925_v25 = vld [vmem:[#allocation8 + $0x130] sm:$0xff] }
 0x329   :  { %v929_v16 = vld [vmem:[#allocation8 + $0x150] sm:$0xff] }
 0x32a   :  { %7383 = vmatpush1.bf16.msra.mxu0 %v10102_v32  ;;  %v898_v32 = vld [vmem:[#allocation8 + $0x58] sm:$0xff]  ;;  %v933_v17 = vld [vmem:[#allocation8 + $0x170] sm:$0xff] }
 0x32b   :  { %7711 = vmatpush1.bf16.msra.mxu1 %v10104_v33  ;;  %7384 = vmatprep.subr.bf16.mxu0 %v10111_v34  ;;  %v902_v33 = vld [vmem:[#allocation8 + $0x78] sm:$0xff]  ;;  %v11092_v34 = vpack.c.bf16 %v869_v27, %v869_v27 }
 0x32c   :  { %7712 = vmatprep.subr.bf16.mxu1 %v10113_v36  ;;  %v9124_v36 = vcombine.low %v890_v18, %v894_v20  ;;  %v9133_v13 = vcombine.high %v898_v32, %v902_v33  ;;  %v930_v18 = vld [vmem:[#allocation8 + $0x158] sm:$0xff] }
 0x32d   :  { %v934_v20 = vld [vmem:[#allocation8 + $0x178] sm:$0xff] }
 0x32e   :  { %7385 = vmatpush1.bf16.msra.mxu0 %v10110_v43  ;;  %v910_v43 = vld [vmem:[#allocation8 + $0xb8] sm:$0xff] }
 0x32f   :  { %7713 = vmatpush1.bf16.msra.mxu1 %v10112_v44  ;;  %7386 = vmatprep.subr.bf16.mxu0 %v10119_v45  ;;  %v9130_v44 = vcombine.low %v897_v39, %v901_v41  ;;  %v9132_v45 = vcombine.low %v898_v32, %v902_v33  ;;  %v9141_v52 = vcombine.high %v906_v35, %v910_v43  ;;  %v941_v39 = vld [vmem:[#allocation8 + $0x1b0] sm:$0xff]  ;;  %v938_v41 = vld [vmem:[#allocation8 + $0x198] sm:$0xff] }
 0x330   :  { %7714 = vmatprep.subr.bf16.mxu1 %v10121_v50  ;;  %v9139_v50 = vcombine.high %v905_v46, %v909_v42  ;;  %v9162_v32 = vcombine.low %v929_v16, %v933_v17  ;;  %v9164_v33 = vcombine.low %v930_v18, %v934_v20 }
 0x332   :  { %7387 = vmatpush1.bf16.msra.mxu0 %v10118_v56  ;;  %v918_v56 = vld [vmem:[#allocation8 + $0xf8] sm:$0xff] }
 0x333   :  { %7715 = vmatpush1.bf16.msra.mxu1 %v10120_v2  ;;  %7388 = vmatprep.subr.bf16.mxu0 %v10127_v60  ;;  %v9138_v2 = vcombine.low %v905_v46, %v909_v42  ;;  %v9140_v60 = vcombine.low %v906_v35, %v910_v43  ;;  %v9149_v62 = vcombine.high %v914_v55, %v918_v56  ;;  %v945_v46 = vld [vmem:[#allocation8 + $0x1d0] sm:$0xff]  ;;  %v950_v35 = vld [vmem:[#allocation8 + $0x1f8] sm:$0xff] }
 0x334   :  { %7716 = vmatprep.subr.bf16.mxu1 %v10129_v61  ;;  %v9147_v61 = vcombine.high %v913_v54, %v917_v11  ;;  %v949_v42 = vld [vmem:[#allocation8 + $0x1f0] sm:$0xff] }
 0x336   :  { %7389 = vmatpush1.bf16.msra.mxu0 %v10126_v58  ;;  %v926_v58 = vld [vmem:[#allocation8 + $0x138] sm:$0xff] }
 0x337   :  { %7717 = vmatpush1.bf16.msra.mxu1 %v10128_v8  ;;  %7390 = vmatprep.subr.bf16.mxu0 %v10135_v10  ;;  %v9148_v8 = vcombine.low %v914_v55, %v918_v56  ;;  %v9155_v10 = vcombine.high %v921_v26, %v925_v25  ;;  %v9156_v27 = vcombine.low %v922_v7, %v926_v58  ;;  %v958_v55 = vld [vmem:[#allocation8 + $0x238] sm:$0xff] }
 0x338   :  { %7718 = vmatprep.subr.bf16.mxu1 %v10137_v24  ;;  %v9157_v24 = vcombine.high %v922_v7, %v926_v58  ;;  %v9178_v56 = vcombine.low %v945_v46, %v949_v42  ;;  %v966_v7 = vld [vmem:[#allocation8 + $0x278] sm:$0xff] }
 0x33a   :  { %7391 = vmatpush1.bf16.msra.mxu0 %v10134_v19  ;;  %v9154_v19 = vcombine.low %v921_v26, %v925_v25  ;;  %v965_v26 = vld [vmem:[#allocation8 + $0x270] sm:$0xff]  ;;  %v962_v25 = vld [vmem:[#allocation8 + $0x258] sm:$0xff] }
 0x33b   :  { %7719 = vmatpush1.bf16.msra.mxu1 %v10136_v23  ;;  %7729 = vmatprep.subr.bf16.mxu0 %v9123_v28  ;;  %v9163_v23 = vcombine.high %v929_v16, %v933_v17  ;;  %v9165_v28 = vcombine.high %v930_v18, %v934_v20  ;;  %v973_v16 = vld [vmem:[#allocation8 + $0x2b0] sm:$0xff]  ;;  %v970_v17 = vld [vmem:[#allocation8 + $0x298] sm:$0xff] }
 0x33c   :  { %8057 = vmatprep.subr.bf16.mxu1 %v9125_v29  ;;  %v937_v29 = vld [vmem:[#allocation8 + $0x190] sm:$0xff]  ;;  %v974_v18 = vld [vmem:[#allocation8 + $0x2b8] sm:$0xff] }
 0x33d   :  { %7393 = vmatmul.mubr.bf16.vlgmr.msra.gmra.mrb[8].mxu0 %v11092_v34  ;;  %v9170_v43 = vcombine.low %v937_v29, %v941_v39 }
 0x33e   :  { %7721 = vmatmul.mubr.bf16.vlgmr.msra.gmra.mrb[8].mxu1 %v11092_v34  ;;  %7730 = vmatpush1.bf16.msra.mxu0 %v9122_v59  ;;  %v942_v59 = vld [vmem:[#allocation8 + $0x1b8] sm:$0xff] }
 0x33f   :  { %7761 = vmatprep.mubr.bf16.mxu0 %v10959_v3  ;;  %8058 = vmatpush1.bf16.msra.mxu1 %v9124_v36  ;;  %v9171_v36 = vcombine.high %v937_v29, %v941_v39  ;;  %v981_v29 = vld [vmem:[#allocation8 + $0x2f0] sm:$0xff]  ;;  %v978_v39 = vld [vmem:[#allocation8 + $0x2d8] sm:$0xff] }
 0x340   :  { %8089 = vmatprep.mubr.bf16.mxu1 %v10959_v3  ;;  %7731 = vmatprep.subr.bf16.mxu0 %v9131_v37  ;;  %v9146_v3 = vcombine.low %v913_v54, %v917_v11  ;;  %v9173_v37 = vcombine.high %v938_v41, %v942_v59  ;;  %v957_v54 = vld [vmem:[#allocation8 + $0x230] sm:$0xff]  ;;  %v954_v11 = vld [vmem:[#allocation8 + $0x218] sm:$0xff] }
 0x341   :  { %8059 = vmatprep.subr.bf16.mxu1 %v9133_v13  ;;  %v946_v13 = vld [vmem:[#allocation8 + $0x1d8] sm:$0xff] }
 0x342   :  { %7732 = vmatpush1.bf16.msra.mxu0 %v9130_v44  ;;  %v9172_v44 = vcombine.low %v938_v41, %v942_v59  ;;  %v982_v41 = vld [vmem:[#allocation8 + $0x2f8] sm:$0xff] }
 0x343   :  { %8060 = vmatpush1.bf16.msra.mxu1 %v9132_v45  ;;  %7733 = vmatprep.subr.bf16.mxu0 %v9139_v50  ;;  %v9179_v45 = vcombine.high %v945_v46, %v949_v42  ;;  %v9181_v50 = vcombine.high %v946_v13, %v950_v35  ;;  %v989_v46 = vld [vmem:[#allocation8 + $0x330] sm:$0xff]  ;;  %v986_v42 = vld [vmem:[#allocation8 + $0x318] sm:$0xff] }
 0x344   :  { %8061 = vmatprep.subr.bf16.mxu1 %v9141_v52  ;;  %v953_v52 = vld [vmem:[#allocation8 + $0x210] sm:$0xff] }
 0x345   :  { %v9186_v58 = vcombine.low %v953_v52, %v957_v54 }
 0x346   :  { %7734 = vmatpush1.bf16.msra.mxu0 %v9138_v2  ;;  %v9180_v2 = vcombine.low %v946_v13, %v950_v35  ;;  %v990_v13 = vld [vmem:[#allocation8 + $0x338] sm:$0xff] }
 0x347   :  { %8062 = vmatpush1.bf16.msra.mxu1 %v9140_v60  ;;  %7735 = vmatprep.subr.bf16.mxu0 %v9147_v61  ;;  %v9187_v60 = vcombine.high %v953_v52, %v957_v54  ;;  %v9189_v61 = vcombine.high %v954_v11, %v958_v55  ;;  %v997_v52 = vld [vmem:[#allocation8 + $0x370] sm:$0xff]  ;;  %v994_v54 = vld [vmem:[#allocation8 + $0x358] sm:$0xff] }
 0x348   :  { %8063 = vmatprep.subr.bf16.mxu1 %v9149_v62  ;;  %v961_v62 = vld [vmem:[#allocation8 + $0x250] sm:$0xff] }
 0x349   :  { %v9194_v20 = vcombine.low %v961_v62, %v965_v26 }
 0x34a   :  { %7736 = vmatpush1.bf16.msra.mxu0 %v9146_v3  ;;  %v9188_v3 = vcombine.low %v954_v11, %v958_v55  ;;  %v998_v11 = vld [vmem:[#allocation8 + $0x378] sm:$0xff] }
 0x34b   :  { %8064 = vmatpush1.bf16.msra.mxu1 %v9148_v8  ;;  %7737 = vmatprep.subr.bf16.mxu0 %v9155_v10  ;;  %v9195_v8 = vcombine.high %v961_v62, %v965_v26  ;;  %v9197_v10 = vcombine.high %v962_v25, %v966_v7  ;;  %v1005_v62 = vld [vmem:[#allocation8 + $0x3b0] sm:$0xff]  ;;  %v1002_v26 = vld [vmem:[#allocation8 + $0x398] sm:$0xff] }
 0x34c   :  { %8065 = vmatprep.subr.bf16.mxu1 %v9157_v24  ;;  %v969_v24 = vld [vmem:[#allocation8 + $0x290] sm:$0xff] }
 0x34d   :  { %v9202_v59 = vcombine.low %v969_v24, %v973_v16 }
 0x34e   :  { %7738 = vmatpush1.bf16.msra.mxu0 %v9154_v19  ;;  %v9196_v19 = vcombine.low %v962_v25, %v966_v7  ;;  %v1006_v25 = vld [vmem:[#allocation8 + $0x3b8] sm:$0xff] }
 0x34f   :  { %8066 = vmatpush1.bf16.msra.mxu1 %v9156_v27  ;;  %7739 = vmatprep.subr.bf16.mxu0 %v9163_v23  ;;  %v9203_v27 = vcombine.high %v969_v24, %v973_v16  ;;  %v9205_v23 = vcombine.high %v970_v17, %v974_v18  ;;  %v1013_v24 = vld [vmem:[#allocation8 + $0x3f0] sm:$0xff]  ;;  %v1010_v16 = vld [vmem:[#allocation8 + $0x3d8] sm:$0xff] }
 0x350   :  { %8067 = vmatprep.subr.bf16.mxu1 %v9165_v28  ;;  %v977_v28 = vld [vmem:[#allocation8 + $0x2d0] sm:$0xff] }
 0x351   :  { %v9210_v35 = vcombine.low %v977_v28, %v981_v29 }
 0x352   :  { %7740 = vmatpush1.bf16.msra.mxu0 %v9162_v32  ;;  %v9204_v32 = vcombine.low %v970_v17, %v974_v18  ;;  %v1014_v17 = vld [vmem:[#allocation8 + $0x3f8] sm:$0xff] }
 0x353   :  { %8068 = vmatpush1.bf16.msra.mxu1 %v9164_v33  ;;  %7741 = vmatprep.subr.bf16.mxu0 %v9171_v36  ;;  %v9211_v33 = vcombine.high %v977_v28, %v981_v29  ;;  %v9213_v36 = vcombine.high %v978_v39, %v982_v41  ;;  %v1021_v28 = vld [vmem:[#allocation8 + $0x430] sm:$0xff]  ;;  %v1018_v29 = vld [vmem:[#allocation8 + $0x418] sm:$0xff] }
 0x354   :  { %8069 = vmatprep.subr.bf16.mxu1 %v9173_v37  ;;  %v985_v37 = vld [vmem:[#allocation8 + $0x310] sm:$0xff] }
 0x355   :  { %v9218_v55 = vcombine.low %v985_v37, %v989_v46 }
 0x356   :  { %7742 = vmatpush1.bf16.msra.mxu0 %v9170_v43  ;;  %v9212_v43 = vcombine.low %v978_v39, %v982_v41  ;;  %v1022_v39 = vld [vmem:[#allocation8 + $0x438] sm:$0xff] }
 0x357   :  { %8070 = vmatpush1.bf16.msra.mxu1 %v9172_v44  ;;  %7743 = vmatprep.subr.bf16.mxu0 %v9179_v45  ;;  %v9219_v44 = vcombine.high %v985_v37, %v989_v46  ;;  %v9221_v45 = vcombine.high %v986_v42, %v990_v13  ;;  %v1029_v37 = vld [vmem:[#allocation8 + $0x470] sm:$0xff] }
 0x358   :  { %8071 = vmatprep.subr.bf16.mxu1 %v9181_v50  ;;  %v993_v50 = vld [vmem:[#allocation8 + $0x350] sm:$0xff] }
 0x359   :  { %v9226_v7 = vcombine.low %v993_v50, %v997_v52 }
 0x35a   :  { %7744 = vmatpush1.bf16.msra.mxu0 %v9178_v56  ;;  %v9220_v56 = vcombine.low %v986_v42, %v990_v13  ;;  %v1026_v42 = vld [vmem:[#allocation8 + $0x458] sm:$0xff] }
 0x35b   :  { %8072 = vmatpush1.bf16.msra.mxu1 %v9180_v2  ;;  %7745 = vmatprep.subr.bf16.mxu0 %v9187_v60  ;;  %v9227_v2 = vcombine.high %v993_v50, %v997_v52  ;;  %v9229_v60 = vcombine.high %v994_v54, %v998_v11  ;;  %v1030_v13 = vld [vmem:[#allocation8 + $0x478] sm:$0xff] }
 0x35c   :  { %8073 = vmatprep.subr.bf16.mxu1 %v9189_v61  ;;  %v1001_v61 = vld [vmem:[#allocation8 + $0x390] sm:$0xff]  ;;  %v9261_v50 = vcombine.high %v1026_v42, %v1030_v13  ;;  %v1034_v52 = vld [vmem:[#allocation8 + $0x498] sm:$0xff] }
 0x35d   :  { %v9234_v18 = vcombine.low %v1001_v61, %v1005_v62 }
 0x35e   :  { %7746 = vmatpush1.bf16.msra.mxu0 %v9186_v58  ;;  %v9228_v58 = vcombine.low %v994_v54, %v998_v11  ;;  %v1038_v54 = vld [vmem:[#allocation8 + $0x4b8] sm:$0xff] }
 0x35f   :  { %8074 = vmatpush1.bf16.msra.mxu1 %v9188_v3  ;;  %7747 = vmatprep.subr.bf16.mxu0 %v9195_v8  ;;  %v9235_v3 = vcombine.high %v1001_v61, %v1005_v62  ;;  %v9237_v8 = vcombine.high %v1002_v26, %v1006_v25  ;;  %v1045_v61 = vld [vmem:[#allocation8 + $0x4f0] sm:$0xff]  ;;  %v1042_v62 = vld [vmem:[#allocation8 + $0x4d8] sm:$0xff] }
 0x360   :  { %8075 = vmatprep.subr.bf16.mxu1 %v9197_v10  ;;  %v1009_v10 = vld [vmem:[#allocation8 + $0x3d0] sm:$0xff] }
 0x361   :  { %v9242_v41 = vcombine.low %v1009_v10, %v1013_v24 }
 0x362   :  { %7748 = vmatpush1.bf16.msra.mxu0 %v9194_v20  ;;  %v9236_v20 = vcombine.low %v1002_v26, %v1006_v25  ;;  %v1046_v26 = vld [vmem:[#allocation8 + $0x4f8] sm:$0xff] }
 0x363   :  { %8076 = vmatpush1.bf16.msra.mxu1 %v9196_v19  ;;  %7749 = vmatprep.subr.bf16.mxu0 %v9203_v27  ;;  %v9243_v19 = vcombine.high %v1009_v10, %v1013_v24  ;;  %v9245_v27 = vcombine.high %v1010_v16, %v1014_v17  ;;  %v1050_v10 = vld [vmem:[#allocation8 + $0x518] sm:$0xff] }
 0x364   :  { %8077 = vmatprep.subr.bf16.mxu1 %v9205_v23  ;;  %v1017_v23 = vld [vmem:[#allocation8 + $0x410] sm:$0xff]  ;;  %v1054_v24 = vld [vmem:[#allocation8 + $0x538] sm:$0xff] }
 0x365   :  { %v9250_v46 = vcombine.low %v1017_v23, %v1021_v28 }
 0x366   :  { %7750 = vmatpush1.bf16.msra.mxu0 %v9202_v59  ;;  %v9244_v59 = vcombine.low %v1010_v16, %v1014_v17  ;;  %v9276_v16 = vcombine.low %v1042_v62, %v1046_v26 }
 0x367   :  { %8078 = vmatpush1.bf16.msra.mxu1 %v9204_v32  ;;  %7751 = vmatprep.subr.bf16.mxu0 %v9211_v33  ;;  %v9251_v32 = vcombine.high %v1017_v23, %v1021_v28  ;;  %v9253_v33 = vcombine.high %v1018_v29, %v1022_v39  ;;  %v1062_v23 = vld [vmem:[#allocation8 + $0x578] sm:$0xff] }
 0x368   :  { %8079 = vmatprep.subr.bf16.mxu1 %v9213_v36  ;;  %v1025_v36 = vld [vmem:[#allocation8 + $0x450] sm:$0xff] }
 0x369   :  { %v9258_v11 = vcombine.low %v1025_v36, %v1029_v37 }
 0x36a   :  { %7752 = vmatpush1.bf16.msra.mxu0 %v9210_v35  ;;  %v9252_v35 = vcombine.low %v1018_v29, %v1022_v39  ;;  %v9284_v29 = vcombine.low %v1050_v10, %v1054_v24 }
 0x36b   :  { %8080 = vmatpush1.bf16.msra.mxu1 %v9212_v43  ;;  %7753 = vmatprep.subr.bf16.mxu0 %v9219_v44  ;;  %v9259_v43 = vcombine.high %v1025_v36, %v1029_v37  ;;  %v1033_v44 = vld [vmem:[#allocation8 + $0x490] sm:$0xff]  ;;  %v1070_v36 = vld [vmem:[#allocation8 + $0x5b8] sm:$0xff] }
 0x36c   :  { %8081 = vmatprep.subr.bf16.mxu1 %v9221_v45  ;;  %v1037_v45 = vld [vmem:[#allocation8 + $0x4b0] sm:$0xff] }
 0x36d   :  { %v9266_v25 = vcombine.low %v1033_v44, %v1037_v45 }
 0x36e   :  { %7754 = vmatpush1.bf16.msra.mxu0 %v9218_v55  ;;  %v9260_v55 = vcombine.low %v1026_v42, %v1030_v13 }
 0x36f   :  { %8082 = vmatpush1.bf16.msra.mxu1 %v9220_v56  ;;  %7755 = vmatprep.subr.bf16.mxu0 %v9227_v2  ;;  %v9267_v56 = vcombine.high %v1033_v44, %v1037_v45  ;;  %v9269_v2 = vcombine.high %v1034_v52, %v1038_v54  ;;  %v1074_v44 = vld [vmem:[#allocation8 + $0x5d8] sm:$0xff] }
 0x370   :  { %8083 = vmatprep.subr.bf16.mxu1 %v9229_v60  ;;  %v1041_v60 = vld [vmem:[#allocation8 + $0x4d0] sm:$0xff]  ;;  %v1078_v45 = vld [vmem:[#allocation8 + $0x5f8] sm:$0xff] }
 0x372   :  { %7756 = vmatpush1.bf16.msra.mxu0 %v9226_v7  ;;  %v9275_v7 = vcombine.high %v1041_v60, %v1045_v61 }
 0x373   :  { %8084 = vmatpush1.bf16.msra.mxu1 %v9228_v58  ;;  %7757 = vmatprep.subr.bf16.mxu0 %v9235_v3  ;;  %v9277_v58 = vcombine.high %v1042_v62, %v1046_v26  ;;  %v1049_v3 = vld [vmem:[#allocation8 + $0x510] sm:$0xff]  ;;  %v9308_v62 = vcombine.low %v1074_v44, %v1078_v45 }
 0x374   :  { %8085 = vmatprep.subr.bf16.mxu1 %v9237_v8  ;;  %v1053_v8 = vld [vmem:[#allocation8 + $0x530] sm:$0xff] }
 0x375   :  { %v9283_v17 = vcombine.high %v1049_v3, %v1053_v8  ;;  %v9282_v28 = vcombine.low %v1049_v3, %v1053_v8  ;;  %v1094_v3 = vld [vmem:[#allocation8 + $0x678] sm:$0xff] }
 0x376   :  { %7758 = vmatpush1.bf16.msra.mxu0 %v9234_v18  ;;  %v9285_v18 = vcombine.high %v1050_v10, %v1054_v24 }
 0x377   :  { %8086 = vmatpush1.bf16.msra.mxu1 %v9236_v20  ;;  %7759 = vmatprep.subr.bf16.mxu0 %v9243_v19  ;;  %v1057_v20 = vld [vmem:[#allocation8 + $0x550] sm:$0xff] }
 0x378   :  { %8087 = vmatprep.subr.bf16.mxu1 %v9245_v27  ;;  %v1061_v19 = vld [vmem:[#allocation8 + $0x570] sm:$0xff]  ;;  %v1058_v27 = vld [vmem:[#allocation8 + $0x558] sm:$0xff] }
 0x379   :  { %v9291_v39 = vcombine.high %v1057_v20, %v1061_v19  ;;  %v9290_v37 = vcombine.low %v1057_v20, %v1061_v19  ;;  %v1102_v20 = vld [vmem:[#allocation8 + $0x6b8] sm:$0xff] }
 0x37a   :  { %7760 = vmatpush1.bf16.msra.mxu0 %v9242_v41  ;;  %v9293_v41 = vcombine.high %v1058_v27, %v1062_v23 }
 0x37b   :  { %8088 = vmatpush1.bf16.msra.mxu1 %v9244_v59  ;;  %7770 = vmatprep.subr.bf16.mxu0 %v9251_v32  ;;  %v1065_v59 = vld [vmem:[#allocation8 + $0x590] sm:$0xff] }
 0x37c   :  { %8098 = vmatprep.subr.bf16.mxu1 %v9253_v33  ;;  %v1069_v32 = vld [vmem:[#allocation8 + $0x5b0] sm:$0xff]  ;;  %v1066_v33 = vld [vmem:[#allocation8 + $0x598] sm:$0xff] }
 0x37d   :  { %7762 = vmatmul.mubr.bf16.vlgmr.msra.gmra.mrb[12].mxu0 %v10961_v4  ;;  %v9299_v42 = vcombine.high %v1065_v59, %v1069_v32  ;;  %v9301_v13 = vcombine.high %v1066_v33, %v1070_v36 }
 0x37e   :  { %8090 = vmatmul.mubr.bf16.vlgmr.msra.gmra.mrb[12].mxu1 %v10961_v4  ;;  %7771 = vmatpush1.bf16.msra.mxu0 %v9250_v46  ;;  %v9268_v4 = vcombine.low %v1034_v52, %v1038_v54  ;;  %v9292_v46 = vcombine.low %v1058_v27, %v1062_v23  ;;  %v9300_v52 = vcombine.low %v1066_v33, %v1070_v36 }
 0x37f   :  { %7802 = vmatprep.mubr.bf16.mxu0 %v10969_v12  ;;  %8099 = vmatpush1.bf16.msra.mxu1 %v9252_v35  ;;  %v1073_v35 = vld [vmem:[#allocation8 + $0x5d0] sm:$0xff] }
 0x380   :  { %8130 = vmatprep.mubr.bf16.mxu1 %v10969_v12  ;;  %7772 = vmatprep.subr.bf16.mxu0 %v9259_v43  ;;  %v9274_v12 = vcombine.low %v1041_v60, %v1045_v61  ;;  %v1077_v43 = vld [vmem:[#allocation8 + $0x5f0] sm:$0xff]  ;;  %v1086_v60 = vld [vmem:[#allocation8 + $0x638] sm:$0xff] }
 0x381   :  { %8100 = vmatprep.subr.bf16.mxu1 %v9261_v50  ;;  %v9298_v50 = vcombine.low %v1065_v59, %v1069_v32  ;;  %v9307_v54 = vcombine.high %v1073_v35, %v1077_v43  ;;  %v9306_v61 = vcombine.low %v1073_v35, %v1077_v43  ;;  %v1110_v59 = vld [vmem:[#allocation8 + $0x6f8] sm:$0xff] }
 0x382   :  { %7773 = vmatpush1.bf16.msra.mxu0 %v9258_v11  ;;  %v9309_v11 = vcombine.high %v1074_v44, %v1078_v45  ;;  %v1118_v35 = vld [vmem:[#allocation8 + $0x738] sm:$0xff] }
 0x383   :  { %8101 = vmatpush1.bf16.msra.mxu1 %v9260_v55  ;;  %7774 = vmatprep.subr.bf16.mxu0 %v9267_v56  ;;  %v1081_v55 = vld [vmem:[#allocation8 + $0x610] sm:$0xff] }
 0x384   :  { %8102 = vmatprep.subr.bf16.mxu1 %v9269_v2  ;;  %v1085_v56 = vld [vmem:[#allocation8 + $0x630] sm:$0xff]  ;;  %v1082_v2 = vld [vmem:[#allocation8 + $0x618] sm:$0xff] }
 0x385   :  { %v9315_v26 = vcombine.high %v1081_v55, %v1085_v56  ;;  %v9314_v8 = vcombine.low %v1081_v55, %v1085_v56  ;;  %v9316_v10 = vcombine.low %v1082_v2, %v1086_v60  ;;  %v1126_v55 = vld [vmem:[#allocation8 + $0x778] sm:$0xff] }
 0x386   :  { %7775 = vmatpush1.bf16.msra.mxu0 %v9266_v25  ;;  %v9317_v25 = vcombine.high %v1082_v2, %v1086_v60 }
 0x387   :  { %8103 = vmatpush1.bf16.msra.mxu1 %v9268_v4  ;;  %7776 = vmatprep.subr.bf16.mxu0 %v9275_v7  ;;  %v1089_v4 = vld [vmem:[#allocation8 + $0x650] sm:$0xff] }
 0x388   :  { %8104 = vmatprep.subr.bf16.mxu1 %v9277_v58  ;;  %v1093_v7 = vld [vmem:[#allocation8 + $0x670] sm:$0xff]  ;;  %v1090_v58 = vld [vmem:[#allocation8 + $0x658] sm:$0xff] }
 0x389   :  { %v9323_v24 = vcombine.high %v1089_v4, %v1093_v7  ;;  %v9322_v19 = vcombine.low %v1089_v4, %v1093_v7  ;;  %v9324_v27 = vcombine.low %v1090_v58, %v1094_v3  ;;  %v1134_v4 = vld [vmem:[#allocation8 + $0x7b8] sm:$0xff] }
 0x38a   :  { %7777 = vmatpush1.bf16.msra.mxu0 %v9274_v12  ;;  %v9325_v12 = vcombine.high %v1090_v58, %v1094_v3 }
 0x38b   :  { %8105 = vmatpush1.bf16.msra.mxu1 %v9276_v16  ;;  %7778 = vmatprep.subr.bf16.mxu0 %v9283_v17  ;;  %v1097_v16 = vld [vmem:[#allocation8 + $0x690] sm:$0xff] }
 0x38c   :  { %8106 = vmatprep.subr.bf16.mxu1 %v9285_v18  ;;  %v1101_v17 = vld [vmem:[#allocation8 + $0x6b0] sm:$0xff]  ;;  %v1098_v18 = vld [vmem:[#allocation8 + $0x698] sm:$0xff] }
 0x38d   :  { %v9331_v23 = vcombine.high %v1097_v16, %v1101_v17  ;;  %v9330_v32 = vcombine.low %v1097_v16, %v1101_v17  ;;  %v9332_v33 = vcombine.low %v1098_v18, %v1102_v20  ;;  %v1142_v16 = vld [vmem:[#allocation8 + $0x7f8] sm:$0xff] }
 0x38e   :  { %7779 = vmatpush1.bf16.msra.mxu0 %v9282_v28  ;;  %v9333_v28 = vcombine.high %v1098_v18, %v1102_v20 }
 0x38f   :  { %8107 = vmatpush1.bf16.msra.mxu1 %v9284_v29  ;;  %7780 = vmatprep.subr.bf16.mxu0 %v9291_v39  ;;  %v1105_v29 = vld [vmem:[#allocation8 + $0x6d0] sm:$0xff] }
 0x390   :  { %8108 = vmatprep.subr.bf16.mxu1 %v9293_v41  ;;  %v1109_v39 = vld [vmem:[#allocation8 + $0x6f0] sm:$0xff]  ;;  %v1106_v41 = vld [vmem:[#allocation8 + $0x6d8] sm:$0xff] }
 0x391   :  { %v9339_v36 = vcombine.high %v1105_v29, %v1109_v39  ;;  %v9338_v43 = vcombine.low %v1105_v29, %v1109_v39  ;;  %v9340_v44 = vcombine.low %v1106_v41, %v1110_v59  ;;  %v1150_v29 = vld [vmem:[#allocation8 + $0x838] sm:$0xff] }
 0x392   :  { %7781 = vmatpush1.bf16.msra.mxu0 %v9290_v37  ;;  %v9341_v37 = vcombine.high %v1106_v41, %v1110_v59 }
 0x393   :  { %8109 = vmatpush1.bf16.msra.mxu1 %v9292_v46  ;;  %7782 = vmatprep.subr.bf16.mxu0 %v9299_v42  ;;  %v1113_v46 = vld [vmem:[#allocation8 + $0x710] sm:$0xff] }
 0x394   :  { %8110 = vmatprep.subr.bf16.mxu1 %v9301_v13  ;;  %v1117_v42 = vld [vmem:[#allocation8 + $0x730] sm:$0xff]  ;;  %v1114_v13 = vld [vmem:[#allocation8 + $0x718] sm:$0xff] }
 0x395   :  { %v9347_v45 = vcombine.high %v1113_v46, %v1117_v42  ;;  %v9346_v56 = vcombine.low %v1113_v46, %v1117_v42  ;;  %v9348_v2 = vcombine.low %v1114_v13, %v1118_v35  ;;  %v1154_v46 = vld [vmem:[#allocation8 + $0x858] sm:$0xff] }
 0x396   :  { %7783 = vmatpush1.bf16.msra.mxu0 %v9298_v50  ;;  %v9349_v50 = vcombine.high %v1114_v13, %v1118_v35  ;;  %v1158_v42 = vld [vmem:[#allocation8 + $0x878] sm:$0xff] }
 0x397   :  { %8111 = vmatpush1.bf16.msra.mxu1 %v9300_v52  ;;  %7784 = vmatprep.subr.bf16.mxu0 %v9307_v54  ;;  %v1121_v52 = vld [vmem:[#allocation8 + $0x750] sm:$0xff] }
 0x398   :  { %8112 = vmatprep.subr.bf16.mxu1 %v9309_v11  ;;  %v1125_v54 = vld [vmem:[#allocation8 + $0x770] sm:$0xff]  ;;  %v1122_v11 = vld [vmem:[#allocation8 + $0x758] sm:$0xff] }
 0x399   :  { %v9355_v60 = vcombine.high %v1121_v52, %v1125_v54  ;;  %v9354_v7 = vcombine.low %v1121_v52, %v1125_v54  ;;  %v9356_v58 = vcombine.low %v1122_v11, %v1126_v55  ;;  %v1166_v52 = vld [vmem:[#allocation8 + $0x8b8] sm:$0xff] }
 0x39a   :  { %7785 = vmatpush1.bf16.msra.mxu0 %v9306_v61  ;;  %v9357_v61 = vcombine.high %v1122_v11, %v1126_v55  ;;  %v9388_v11 = vcombine.low %v1154_v46, %v1158_v42 }
 0x39b   :  { %8113 = vmatpush1.bf16.msra.mxu1 %v9308_v62  ;;  %7786 = vmatprep.subr.bf16.mxu0 %v9315_v26  ;;  %v1129_v62 = vld [vmem:[#allocation8 + $0x790] sm:$0xff] }
 0x39c   :  { %8114 = vmatprep.subr.bf16.mxu1 %v9317_v25  ;;  %v1133_v26 = vld [vmem:[#allocation8 + $0x7b0] sm:$0xff]  ;;  %v1130_v25 = vld [vmem:[#allocation8 + $0x798] sm:$0xff] }
 0x39d   :  { %v9363_v3 = vcombine.high %v1129_v62, %v1133_v26  ;;  %v9362_v17 = vcombine.low %v1129_v62, %v1133_v26  ;;  %v9364_v18 = vcombine.low %v1130_v25, %v1134_v4  ;;  %v1174_v62 = vld [vmem:[#allocation8 + $0x8f8] sm:$0xff] }
 0x39e   :  { %7787 = vmatpush1.bf16.msra.mxu0 %v9314_v8  ;;  %v9365_v8 = vcombine.high %v1130_v25, %v1134_v4 }
 0x39f   :  { %8115 = vmatpush1.bf16.msra.mxu1 %v9316_v10  ;;  %7788 = vmatprep.subr.bf16.mxu0 %v9323_v24  ;;  %v1137_v10 = vld [vmem:[#allocation8 + $0x7d0] sm:$0xff] }
 0x3a0   :  { %8116 = vmatprep.subr.bf16.mxu1 %v9325_v12  ;;  %v1141_v24 = vld [vmem:[#allocation8 + $0x7f0] sm:$0xff]  ;;  %v1138_v12 = vld [vmem:[#allocation8 + $0x7d8] sm:$0xff] }
 0x3a1   :  { %v9371_v20 = vcombine.high %v1137_v10, %v1141_v24  ;;  %v9370_v39 = vcombine.low %v1137_v10, %v1141_v24  ;;  %v9372_v41 = vcombine.low %v1138_v12, %v1142_v16 }
 0x3a2   :  { %7789 = vmatpush1.bf16.msra.mxu0 %v9322_v19  ;;  %v9373_v19 = vcombine.high %v1138_v12, %v1142_v16  ;;  %v1185_v16 = vld [vmem:[#allocation8 + $0x950] sm:$0xff] }
 0x3a3   :  { %8117 = vmatpush1.bf16.msra.mxu1 %v9324_v27  ;;  %7790 = vmatprep.subr.bf16.mxu0 %v9331_v23  ;;  %v1145_v27 = vld [vmem:[#allocation8 + $0x810] sm:$0xff] }
 0x3a4   :  { %8118 = vmatprep.subr.bf16.mxu1 %v9333_v28  ;;  %v1149_v23 = vld [vmem:[#allocation8 + $0x830] sm:$0xff]  ;;  %v1146_v28 = vld [vmem:[#allocation8 + $0x818] sm:$0xff] }
 0x3a5   :  { %v9379_v59 = vcombine.high %v1145_v27, %v1149_v23  ;;  %v9380_v13 = vcombine.low %v1146_v28, %v1150_v29 }
 0x3a6   :  { %7791 = vmatpush1.bf16.msra.mxu0 %v9330_v32  ;;  %v9381_v32 = vcombine.high %v1146_v28, %v1150_v29  ;;  %v1193_v29 = vld [vmem:[#allocation8 + $0x990] sm:$0xff] }
 0x3a7   :  { %8119 = vmatpush1.bf16.msra.mxu1 %v9332_v33  ;;  %7792 = vmatprep.subr.bf16.mxu0 %v9339_v36  ;;  %v1153_v33 = vld [vmem:[#allocation8 + $0x850] sm:$0xff] }
 0x3a8   :  { %8120 = vmatprep.subr.bf16.mxu1 %v9341_v37  ;;  %v1157_v36 = vld [vmem:[#allocation8 + $0x870] sm:$0xff]  ;;  %v9378_v37 = vcombine.low %v1145_v27, %v1149_v23 }
 0x3a9   :  { %v9387_v35 = vcombine.high %v1153_v33, %v1157_v36  ;;  %v9386_v54 = vcombine.low %v1153_v33, %v1157_v36 }
 0x3aa   :  { %7793 = vmatpush1.bf16.msra.mxu0 %v9338_v43  ;;  %v1161_v43 = vld [vmem:[#allocation8 + $0x890] sm:$0xff] }
 0x3ab   :  { %8121 = vmatpush1.bf16.msra.mxu1 %v9340_v44  ;;  %7794 = vmatprep.subr.bf16.mxu0 %v9347_v45  ;;  %v1165_v44 = vld [vmem:[#allocation8 + $0x8b0] sm:$0xff]  ;;  %v9389_v45 = vcombine.high %v1154_v46, %v1158_v42 }
 0x3ac   :  { %8122 = vmatprep.subr.bf16.mxu1 %v9349_v50  ;;  %v1162_v50 = vld [vmem:[#allocation8 + $0x898] sm:$0xff]  ;;  %v9395_v55 = vcombine.high %v1161_v43, %v1165_v44  ;;  %v9394_v26 = vcombine.low %v1161_v43, %v1165_v44  ;;  %v1201_v46 = vld [vmem:[#allocation8 + $0x9d0] sm:$0xff] }
 0x3ad   :  { %v1205_v42 = vld [vmem:[#allocation8 + $0x9f0] sm:$0xff] }
 0x3ae   :  { %7795 = vmatpush1.bf16.msra.mxu0 %v9346_v56  ;;  %v9397_v56 = vcombine.high %v1162_v50, %v1166_v52 }
 0x3af   :  { %8123 = vmatpush1.bf16.msra.mxu1 %v9348_v2  ;;  %7796 = vmatprep.subr.bf16.mxu0 %v9355_v60  ;;  %v1169_v2 = vld [vmem:[#allocation8 + $0x8d0] sm:$0xff] }
 0x3b0   :  { %8124 = vmatprep.subr.bf16.mxu1 %v9357_v61  ;;  %v1173_v60 = vld [vmem:[#allocation8 + $0x8f0] sm:$0xff]  ;;  %v1170_v61 = vld [vmem:[#allocation8 + $0x8d8] sm:$0xff] }
 0x3b1   :  { %v9403_v25 = vcombine.high %v1169_v2, %v1173_v60  ;;  %v9405_v4 = vcombine.high %v1170_v61, %v1174_v62  ;;  %v9404_v10 = vcombine.low %v1170_v61, %v1174_v62  ;;  %v1217_v62 = vld [vmem:[#allocation8 + $0xa50] sm:$0xff] }
 0x3b2   :  { %7797 = vmatpush1.bf16.msra.mxu0 %v9354_v7  ;;  %v1177_v7 = vld [vmem:[#allocation8 + $0x910] sm:$0xff] }
 0x3b3   :  { %8125 = vmatpush1.bf16.msra.mxu1 %v9356_v58  ;;  %7798 = vmatprep.subr.bf16.mxu0 %v9363_v3  ;;  %v1181_v58 = vld [vmem:[#allocation8 + $0x930] sm:$0xff]  ;;  %v1178_v3 = vld [vmem:[#allocation8 + $0x918] sm:$0xff] }
 0x3b4   :  { %8126 = vmatprep.subr.bf16.mxu1 %v9365_v8  ;;  %v1182_v8 = vld [vmem:[#allocation8 + $0x938] sm:$0xff]  ;;  %v9411_v24 = vcombine.high %v1177_v7, %v1181_v58 }
 0x3b5   :  { %v9413_v12 = vcombine.high %v1178_v3, %v1182_v8  ;;  %v9412_v27 = vcombine.low %v1178_v3, %v1182_v8  ;;  %v1225_v8 = vld [vmem:[#allocation8 + $0xa90] sm:$0xff] }
 0x3b6   :  { %7799 = vmatpush1.bf16.msra.mxu0 %v9362_v17  ;;  %v1189_v17 = vld [vmem:[#allocation8 + $0x970] sm:$0xff] }
 0x3b7   :  { %8127 = vmatpush1.bf16.msra.mxu1 %v9364_v18  ;;  %7800 = vmatprep.subr.bf16.mxu0 %v9371_v20  ;;  %v1186_v18 = vld [vmem:[#allocation8 + $0x958] sm:$0xff]  ;;  %v9419_v23 = vcombine.high %v1185_v16, %v1189_v17 }
 0x3b8   :  { %8128 = vmatprep.subr.bf16.mxu1 %v9373_v19  ;;  %v1190_v20 = vld [vmem:[#allocation8 + $0x978] sm:$0xff]  ;;  %v9410_v19 = vcombine.low %v1177_v7, %v1181_v58 }
 0x3b9   :  { %v9421_v28 = vcombine.high %v1186_v18, %v1190_v20  ;;  %v9420_v33 = vcombine.low %v1186_v18, %v1190_v20  ;;  %v1233_v20 = vld [vmem:[#allocation8 + $0xad0] sm:$0xff] }
 0x3ba   :  { %7801 = vmatpush1.bf16.msra.mxu0 %v9370_v39  ;;  %v1197_v39 = vld [vmem:[#allocation8 + $0x9b0] sm:$0xff] }
 0x3bb   :  { %8129 = vmatpush1.bf16.msra.mxu1 %v9372_v41  ;;  %7811 = vmatprep.subr.bf16.mxu0 %v9379_v59  ;;  %v1194_v41 = vld [vmem:[#allocation8 + $0x998] sm:$0xff]  ;;  %v9427_v36 = vcombine.high %v1193_v29, %v1197_v39  ;;  %v9426_v43 = vcombine.low %v1193_v29, %v1197_v39 }
 0x3bc   :  { %8139 = vmatprep.subr.bf16.mxu1 %v9381_v32  ;;  %v1198_v59 = vld [vmem:[#allocation8 + $0x9b8] sm:$0xff]  ;;  %v9418_v32 = vcombine.low %v1185_v16, %v1189_v17 }
 0x3bd   :  { %7803 = vmatmul.mubr.bf16.vlgmr.msra.gmra.mrb[12].mxu0 %v11022_v38  ;;  %v9428_v44 = vcombine.low %v1194_v41, %v1198_v59 }
 0x3be   :  { %8131 = vmatmul.mubr.bf16.vlgmr.msra.gmra.mrb[12].mxu1 %v11022_v38  ;;  %7812 = vmatpush1.bf16.msra.mxu0 %v9378_v37  ;;  %v9396_v38 = vcombine.low %v1162_v50, %v1166_v52  ;;  %v9429_v37 = vcombine.high %v1194_v41, %v1198_v59  ;;  %v1209_v52 = vld [vmem:[#allocation8 + $0xa10] sm:$0xff] }
 0x3bf   :  { %7843 = vmatprep.mubr.bf16.mxu0 %v11024_v1  ;;  %8140 = vmatpush1.bf16.msra.mxu1 %v9380_v13  ;;  %v1202_v13 = vld [vmem:[#allocation8 + $0x9d8] sm:$0xff]  ;;  %v1241_v59 = vld [vmem:[#allocation8 + $0xb10] sm:$0xff] }
 0x3c0   :  { %8171 = vmatprep.mubr.bf16.mxu1 %v11024_v1  ;;  %7813 = vmatprep.subr.bf16.mxu0 %v9387_v35  ;;  %v9402_v1 = vcombine.low %v1169_v2, %v1173_v60  ;;  %v1206_v35 = vld [vmem:[#allocation8 + $0x9f8] sm:$0xff] }
 0x3c1   :  { %8141 = vmatprep.subr.bf16.mxu1 %v9389_v45  ;;  %v9435_v45 = vcombine.high %v1201_v46, %v1205_v42  ;;  %v9437_v50 = vcombine.high %v1202_v13, %v1206_v35  ;;  %v9436_v2 = vcombine.low %v1202_v13, %v1206_v35  ;;  %v1249_v35 = vld [vmem:[#allocation8 + $0xb50] sm:$0xff] }
 0x3c2   :  { %7814 = vmatpush1.bf16.msra.mxu0 %v9386_v54  ;;  %v1213_v54 = vld [vmem:[#allocation8 + $0xa30] sm:$0xff] }
 0x3c3   :  { %8142 = vmatpush1.bf16.msra.mxu1 %v9388_v11  ;;  %7815 = vmatprep.subr.bf16.mxu0 %v9395_v55  ;;  %v1210_v11 = vld [vmem:[#allocation8 + $0xa18] sm:$0xff]  ;;  %v9443_v60 = vcombine.high %v1209_v52, %v1213_v54 }
 0x3c4   :  { %8143 = vmatprep.subr.bf16.mxu1 %v9397_v56  ;;  %v1214_v55 = vld [vmem:[#allocation8 + $0xa38] sm:$0xff]  ;;  %v9434_v56 = vcombine.low %v1201_v46, %v1205_v42 }
 0x3c5   :  { %v9445_v61 = vcombine.high %v1210_v11, %v1214_v55  ;;  %v9444_v7 = vcombine.low %v1210_v11, %v1214_v55  ;;  %v1257_v55 = vld [vmem:[#allocation8 + $0xb90] sm:$0xff] }
 0x3c6   :  { %7816 = vmatpush1.bf16.msra.mxu0 %v9394_v26  ;;  %v1221_v26 = vld [vmem:[#allocation8 + $0xa70] sm:$0xff] }
 0x3c7   :  { %8144 = vmatpush1.bf16.msra.mxu1 %v9396_v38  ;;  %7817 = vmatprep.subr.bf16.mxu0 %v9403_v25  ;;  %v1218_v38 = vld [vmem:[#allocation8 + $0xa58] sm:$0xff]  ;;  %v9451_v58 = vcombine.high %v1217_v62, %v1221_v26 }
 0x3c8   :  { %8145 = vmatprep.subr.bf16.mxu1 %v9405_v4  ;;  %v1222_v25 = vld [vmem:[#allocation8 + $0xa78] sm:$0xff]  ;;  %v9442_v4 = vcombine.low %v1209_v52, %v1213_v54 }
 0x3c9   :  { %v9453_v3 = vcombine.high %v1218_v38, %v1222_v25  ;;  %v9452_v16 = vcombine.low %v1218_v38, %v1222_v25  ;;  %v1265_v25 = vld [vmem:[#allocation8 + $0xbd0] sm:$0xff] }
 0x3ca   :  { %7818 = vmatpush1.bf16.msra.mxu0 %v9402_v1  ;;  %v1229_v1 = vld [vmem:[#allocation8 + $0xab0] sm:$0xff] }
 0x3cb   :  { %8146 = vmatpush1.bf16.msra.mxu1 %v9404_v10  ;;  %7819 = vmatprep.subr.bf16.mxu0 %v9411_v24  ;;  %v1226_v10 = vld [vmem:[#allocation8 + $0xa98] sm:$0xff]  ;;  %v9459_v17 = vcombine.high %v1225_v8, %v1229_v1 }
 0x3cc   :  { %8147 = vmatprep.subr.bf16.mxu1 %v9413_v12  ;;  %v1230_v24 = vld [vmem:[#allocation8 + $0xab8] sm:$0xff]  ;;  %v9450_v12 = vcombine.low %v1217_v62, %v1221_v26 }
 0x3cd   :  { %v9461_v18 = vcombine.high %v1226_v10, %v1230_v24  ;;  %v9460_v29 = vcombine.low %v1226_v10, %v1230_v24  ;;  %v1273_v24 = vld [vmem:[#allocation8 + $0xc10] sm:$0xff] }
 0x3ce   :  { %7820 = vmatpush1.bf16.msra.mxu0 %v9410_v19  ;;  %v1237_v19 = vld [vmem:[#allocation8 + $0xaf0] sm:$0xff] }
 0x3cf   :  { %8148 = vmatpush1.bf16.msra.mxu1 %v9412_v27  ;;  %7821 = vmatprep.subr.bf16.mxu0 %v9419_v23  ;;  %v1234_v27 = vld [vmem:[#allocation8 + $0xad8] sm:$0xff]  ;;  %v9467_v39 = vcombine.high %v1233_v20, %v1237_v19 }
 0x3d0   :  { %8149 = vmatprep.subr.bf16.mxu1 %v9421_v28  ;;  %v1238_v23 = vld [vmem:[#allocation8 + $0xaf8] sm:$0xff]  ;;  %v9458_v28 = vcombine.low %v1225_v8, %v1229_v1 }
 0x3d1   :  { %v9469_v41 = vcombine.high %v1234_v27, %v1238_v23  ;;  %v9468_v46 = vcombine.low %v1234_v27, %v1238_v23  ;;  %v1281_v23 = vld [vmem:[#allocation8 + $0xc50] sm:$0xff] }
 0x3d2   :  { %7822 = vmatpush1.bf16.msra.mxu0 %v9418_v32  ;;  %v1245_v32 = vld [vmem:[#allocation8 + $0xb30] sm:$0xff] }
 0x3d3   :  { %8150 = vmatpush1.bf16.msra.mxu1 %v9420_v33  ;;  %7823 = vmatprep.subr.bf16.mxu0 %v9427_v36  ;;  %v1242_v33 = vld [vmem:[#allocation8 + $0xb18] sm:$0xff]  ;;  %v9475_v42 = vcombine.high %v1241_v59, %v1245_v32 }
 0x3d4   :  { %8151 = vmatprep.subr.bf16.mxu1 %v9429_v37  ;;  %v1246_v36 = vld [vmem:[#allocation8 + $0xb38] sm:$0xff]  ;;  %v9466_v37 = vcombine.low %v1233_v20, %v1237_v19 }
 0x3d5   :  { %v9477_v13 = vcombine.high %v1242_v33, %v1246_v36  ;;  %v9476_v52 = vcombine.low %v1242_v33, %v1246_v36  ;;  %v1289_v33 = vld [vmem:[#allocation8 + $0xc90] sm:$0xff] }
 0x3d6   :  { %7824 = vmatpush1.bf16.msra.mxu0 %v9426_v43  ;;  %v1253_v43 = vld [vmem:[#allocation8 + $0xb70] sm:$0xff] }
 0x3d7   :  { %8152 = vmatpush1.bf16.msra.mxu1 %v9428_v44  ;;  %7825 = vmatprep.subr.bf16.mxu0 %v9435_v45  ;;  %v1250_v44 = vld [vmem:[#allocation8 + $0xb58] sm:$0xff]  ;;  %v9483_v54 = vcombine.high %v1249_v35, %v1253_v43  ;;  %v1293_v36 = vld [vmem:[#allocation8 + $0xcb0] sm:$0xff] }
 0x3d8   :  { %8153 = vmatprep.subr.bf16.mxu1 %v9437_v50  ;;  %v1254_v45 = vld [vmem:[#allocation8 + $0xb78] sm:$0xff]  ;;  %v9474_v50 = vcombine.low %v1241_v59, %v1245_v32 }
 0x3d9   :  { %v9485_v11 = vcombine.high %v1250_v44, %v1254_v45  ;;  %v9484_v62 = vcombine.low %v1250_v44, %v1254_v45  ;;  %v1297_v45 = vld [vmem:[#allocation8 + $0xcd0] sm:$0xff] }
 0x3da   :  { %7826 = vmatpush1.bf16.msra.mxu0 %v9434_v56  ;;  %v1261_v56 = vld [vmem:[#allocation8 + $0xbb0] sm:$0xff] }
 0x3db   :  { %8154 = vmatpush1.bf16.msra.mxu1 %v9436_v2  ;;  %7827 = vmatprep.subr.bf16.mxu0 %v9443_v60  ;;  %v1258_v2 = vld [vmem:[#allocation8 + $0xb98] sm:$0xff]  ;;  %v9491_v26 = vcombine.high %v1257_v55, %v1261_v56 }
 0x3dc   :  { %8155 = vmatprep.subr.bf16.mxu1 %v9445_v61  ;;  %v1262_v60 = vld [vmem:[#allocation8 + $0xbb8] sm:$0xff]  ;;  %v9482_v61 = vcombine.low %v1249_v35, %v1253_v43  ;;  %v9523_v43 = vcombine.high %v1289_v33, %v1293_v36 }
 0x3dd   :  { %v9493_v38 = vcombine.high %v1258_v2, %v1262_v60  ;;  %v9492_v8 = vcombine.low %v1258_v2, %v1262_v60  ;;  %v1305_v2 = vld [vmem:[#allocation8 + $0xd10] sm:$0xff] }
 0x3de   :  { %7828 = vmatpush1.bf16.msra.mxu0 %v9442_v4  ;;  %v1269_v4 = vld [vmem:[#allocation8 + $0xbf0] sm:$0xff] }
 0x3df   :  { %8156 = vmatpush1.bf16.msra.mxu1 %v9444_v7  ;;  %7829 = vmatprep.subr.bf16.mxu0 %v9451_v58  ;;  %v1266_v7 = vld [vmem:[#allocation8 + $0xbd8] sm:$0xff]  ;;  %v9499_v1 = vcombine.high %v1265_v25, %v1269_v4  ;;  %v1309_v60 = vld [vmem:[#allocation8 + $0xd30] sm:$0xff] }
 0x3e0   :  { %8157 = vmatprep.subr.bf16.mxu1 %v9453_v3  ;;  %v1270_v58 = vld [vmem:[#allocation8 + $0xbf8] sm:$0xff]  ;;  %v9490_v3 = vcombine.low %v1257_v55, %v1261_v56 }
 0x3e1   :  { %v9501_v10 = vcombine.high %v1266_v7, %v1270_v58  ;;  %v9500_v20 = vcombine.low %v1266_v7, %v1270_v58  ;;  %v1317_v7 = vld [vmem:[#allocation8 + $0xd70] sm:$0xff]  ;;  %v1314_v58 = vld [vmem:[#allocation8 + $0xd58] sm:$0xff] }
 0x3e2   :  { %7830 = vmatpush1.bf16.msra.mxu0 %v9450_v12  ;;  %v1277_v12 = vld [vmem:[#allocation8 + $0xc30] sm:$0xff] }
 0x3e3   :  { %8158 = vmatpush1.bf16.msra.mxu1 %v9452_v16  ;;  %7831 = vmatprep.subr.bf16.mxu0 %v9459_v17  ;;  %v1274_v16 = vld [vmem:[#allocation8 + $0xc18] sm:$0xff]  ;;  %v9507_v19 = vcombine.high %v1273_v24, %v1277_v12 }
 0x3e4   :  { %8159 = vmatprep.subr.bf16.mxu1 %v9461_v18  ;;  %v1278_v17 = vld [vmem:[#allocation8 + $0xc38] sm:$0xff]  ;;  %v9498_v18 = vcombine.low %v1265_v25, %v1269_v4  ;;  %v1313_v4 = vld [vmem:[#allocation8 + $0xd50] sm:$0xff] }
 0x3e5   :  { %v9509_v27 = vcombine.high %v1274_v16, %v1278_v17  ;;  %v9508_v59 = vcombine.low %v1274_v16, %v1278_v17  ;;  %v1325_v16 = vld [vmem:[#allocation8 + $0xdb0] sm:$0xff]  ;;  %v1322_v17 = vld [vmem:[#allocation8 + $0xd98] sm:$0xff] }
 0x3e6   :  { %7832 = vmatpush1.bf16.msra.mxu0 %v9458_v28  ;;  %v1285_v28 = vld [vmem:[#allocation8 + $0xc70] sm:$0xff] }
 0x3e7   :  { %8160 = vmatpush1.bf16.msra.mxu1 %v9460_v29  ;;  %7833 = vmatprep.subr.bf16.mxu0 %v9467_v39  ;;  %v9506_v29 = vcombine.low %v1273_v24, %v1277_v12  ;;  %v1282_v39 = vld [vmem:[#allocation8 + $0xc58] sm:$0xff]  ;;  %v9515_v32 = vcombine.high %v1281_v23, %v1285_v28  ;;  %v1321_v12 = vld [vmem:[#allocation8 + $0xd90] sm:$0xff] }
 0x3e8   :  { %8161 = vmatprep.subr.bf16.mxu1 %v9469_v41  ;;  %v1286_v41 = vld [vmem:[#allocation8 + $0xc78] sm:$0xff] }
 0x3e9   :  { %v9516_v35 = vcombine.low %v1282_v39, %v1286_v41 }
 0x3ea   :  { %7834 = vmatpush1.bf16.msra.mxu0 %v9466_v37  ;;  %v9517_v37 = vcombine.high %v1282_v39, %v1286_v41  ;;  %v1333_v39 = vld [vmem:[#allocation8 + $0xdf0] sm:$0xff] }
 0x3eb   :  { %8162 = vmatpush1.bf16.msra.mxu1 %v9468_v46  ;;  %7835 = vmatprep.subr.bf16.mxu0 %v9475_v42  ;;  %v1290_v46 = vld [vmem:[#allocation8 + $0xc98] sm:$0xff] }
 0x3ec   :  { %8163 = vmatprep.subr.bf16.mxu1 %v9477_v13  ;;  %v1294_v42 = vld [vmem:[#allocation8 + $0xcb8] sm:$0xff]  ;;  %v9514_v13 = vcombine.low %v1281_v23, %v1285_v28 }
 0x3ed   :  { %v9525_v44 = vcombine.high %v1290_v46, %v1294_v42 }
 0x3ee   :  { %7836 = vmatpush1.bf16.msra.mxu0 %v9474_v50  ;;  %v1301_v50 = vld [vmem:[#allocation8 + $0xcf0] sm:$0xff] }
 0x3ef   :  { %8164 = vmatpush1.bf16.msra.mxu1 %v9476_v52  ;;  %7837 = vmatprep.subr.bf16.mxu0 %v9483_v54  ;;  %v1298_v52 = vld [vmem:[#allocation8 + $0xcd8] sm:$0xff]  ;;  %v9531_v55 = vcombine.high %v1297_v45, %v1301_v50 }
 0x3f0   :  { %8165 = vmatprep.subr.bf16.mxu1 %v9485_v11  ;;  %v1302_v54 = vld [vmem:[#allocation8 + $0xcf8] sm:$0xff]  ;;  %v9522_v11 = vcombine.low %v1289_v33, %v1293_v36 }
 0x3f1   :  { %v9533_v56 = vcombine.high %v1298_v52, %v1302_v54  ;;  %v1334_v33 = vld [vmem:[#allocation8 + $0xdf8] sm:$0xff] }
 0x3f2   :  { %7838 = vmatpush1.bf16.msra.mxu0 %v9482_v61  ;;  %v1306_v61 = vld [vmem:[#allocation8 + $0xd18] sm:$0xff] }
 0x3f3   :  { %8166 = vmatpush1.bf16.msra.mxu1 %v9484_v62  ;;  %7839 = vmatprep.subr.bf16.mxu0 %v9491_v26  ;;  %v1310_v62 = vld [vmem:[#allocation8 + $0xd38] sm:$0xff]  ;;  %v9532_v26 = vcombine.low %v1298_v52, %v1302_v54  ;;  %v1341_v52 = vld [vmem:[#allocation8 + $0xe30] sm:$0xff] }
 0x3f4   :  { %8167 = vmatprep.subr.bf16.mxu1 %v9493_v38  ;;  %v9539_v38 = vcombine.high %v1305_v2, %v1309_v60  ;;  %v9541_v25 = vcombine.high %v1306_v61, %v1310_v62  ;;  %v1338_v54 = vld [vmem:[#allocation8 + $0xe18] sm:$0xff] }
 0x3f6   :  { %7840 = vmatpush1.bf16.msra.mxu0 %v9490_v3  ;;  %v1318_v3 = vld [vmem:[#allocation8 + $0xd78] sm:$0xff] }
 0x3f7   :  { %8168 = vmatpush1.bf16.msra.mxu1 %v9492_v8  ;;  %7841 = vmatprep.subr.bf16.mxu0 %v9499_v1  ;;  %v9538_v8 = vcombine.low %v1305_v2, %v1309_v60  ;;  %v9540_v1 = vcombine.low %v1306_v61, %v1310_v62  ;;  %v9549_v24 = vcombine.high %v1314_v58, %v1318_v3  ;;  %v1345_v60 = vld [vmem:[#allocation8 + $0xe50] sm:$0xff]  ;;  %v1346_v62 = vld [vmem:[#allocation8 + $0xe58] sm:$0xff] }
 0x3f8   :  { %8169 = vmatprep.subr.bf16.mxu1 %v9501_v10  ;;  %v9547_v10 = vcombine.high %v1313_v4, %v1317_v7  ;;  %v1349_v61 = vld [vmem:[#allocation8 + $0xe70] sm:$0xff] }
 0x3fa   :  { %7842 = vmatpush1.bf16.msra.mxu0 %v9498_v18  ;;  %v1326_v18 = vld [vmem:[#allocation8 + $0xdb8] sm:$0xff] }
 0x3fb   :  { %8170 = vmatpush1.bf16.msra.mxu1 %v9500_v20  ;;  %7852 = vmatprep.subr.bf16.mxu0 %v9507_v19  ;;  %v9546_v20 = vcombine.low %v1313_v4, %v1317_v7  ;;  %v9548_v19 = vcombine.low %v1314_v58, %v1318_v3  ;;  %v9557_v28 = vcombine.high %v1322_v17, %v1326_v18  ;;  %v1353_v7 = vld [vmem:[#allocation8 + $0xe90] sm:$0xff]  ;;  %v1354_v3 = vld [vmem:[#allocation8 + $0xe98] sm:$0xff] }
 0x3fc   :  { %8180 = vmatprep.subr.bf16.mxu1 %v9509_v27  ;;  %v9555_v27 = vcombine.high %v1321_v12, %v1325_v16  ;;  %v1357_v58 = vld [vmem:[#allocation8 + $0xeb0] sm:$0xff] }
 0x3fd   :  { %7844 = vmatmul.mubr.bf16.vlgmr.msra.gmra.mrb[12].mxu0 %v11036_v5 }
 0x3fe   :  { %8172 = vmatmul.mubr.bf16.vlgmr.msra.gmra.mrb[12].mxu1 %v11036_v5  ;;  %7853 = vmatpush1.bf16.msra.mxu0 %v9506_v29  ;;  %v9524_v5 = vcombine.low %v1290_v46, %v1294_v42  ;;  %v1329_v29 = vld [vmem:[#allocation8 + $0xdd0] sm:$0xff]  ;;  %v9554_v46 = vcombine.low %v1321_v12, %v1325_v16 }
 0x3ff   :  { %7884 = vmatprep.mubr.bf16.mxu0 %v11038_v9  ;;  %8181 = vmatpush1.bf16.msra.mxu1 %v9508_v59  ;;  %v1361_v16 = vld [vmem:[#allocation8 + $0xed0] sm:$0xff] }
 0x400   :  { %8212 = vmatprep.mubr.bf16.mxu1 %v11038_v9  ;;  %7854 = vmatprep.subr.bf16.mxu0 %v9515_v32  ;;  %v9530_v9 = vcombine.low %v1297_v45, %v1301_v50  ;;  %v1330_v32 = vld [vmem:[#allocation8 + $0xdd8] sm:$0xff]  ;;  %v1337_v50 = vld [vmem:[#allocation8 + $0xe10] sm:$0xff] }
 0x401   :  { %8182 = vmatprep.subr.bf16.mxu1 %v9517_v37  ;;  %v9565_v45 = vcombine.high %v1330_v32, %v1334_v33 }
 0x402   :  { %7855 = vmatpush1.bf16.msra.mxu0 %v9514_v13 }
 0x403   :  { %8183 = vmatpush1.bf16.msra.mxu1 %v9516_v35  ;;  %7856 = vmatprep.subr.bf16.mxu0 %v9523_v43  ;;  %v9556_v35 = vcombine.low %v1322_v17, %v1326_v18  ;;  %v9563_v43 = vcombine.high %v1329_v29, %v1333_v39  ;;  %v1365_v17 = vld [vmem:[#allocation8 + $0xef0] sm:$0xff]  ;;  %v1362_v18 = vld [vmem:[#allocation8 + $0xed8] sm:$0xff] }
 0x404   :  { %8184 = vmatprep.subr.bf16.mxu1 %v9525_v44 }
 0x406   :  { %7857 = vmatpush1.bf16.msra.mxu0 %v9522_v11  ;;  %v1342_v11 = vld [vmem:[#allocation8 + $0xe38] sm:$0xff] }
 0x407   :  { %8185 = vmatpush1.bf16.msra.mxu1 %v9524_v5  ;;  %7858 = vmatprep.subr.bf16.mxu0 %v9531_v55  ;;  %v9562_v5 = vcombine.low %v1329_v29, %v1333_v39  ;;  %v9564_v55 = vcombine.low %v1330_v32, %v1334_v33  ;;  %v9573_v2 = vcombine.high %v1338_v54, %v1342_v11  ;;  %v1369_v39 = vld [vmem:[#allocation8 + $0xf10] sm:$0xff]  ;;  %v1370_v33 = vld [vmem:[#allocation8 + $0xf18] sm:$0xff] }
 0x408   :  { %8186 = vmatprep.subr.bf16.mxu1 %v9533_v56  ;;  %v9571_v56 = vcombine.high %v1337_v50, %v1341_v52  ;;  %v1373_v32 = vld [vmem:[#allocation8 + $0xf30] sm:$0xff] }
 0x40a   :  { %7859 = vmatpush1.bf16.msra.mxu0 %v9530_v9  ;;  %v1350_v9 = vld [vmem:[#allocation8 + $0xe78] sm:$0xff] }
 0x40b   :  { %8187 = vmatpush1.bf16.msra.mxu1 %v9532_v26  ;;  %7860 = vmatprep.subr.bf16.mxu0 %v9539_v38  ;;  %v9570_v26 = vcombine.low %v1337_v50, %v1341_v52  ;;  %v9572_v38 = vcombine.low %v1338_v54, %v1342_v11  ;;  %v9581_v4 = vcombine.high %v1346_v62, %v1350_v9  ;;  %v1382_v50 = vld [vmem:[#allocation8 + $0xf78] sm:$0xff] }
 0x40c   :  { %8188 = vmatprep.subr.bf16.mxu1 %v9541_v25  ;;  %v9579_v25 = vcombine.high %v1345_v60, %v1349_v61  ;;  %v9602_v52 = vcombine.low %v1369_v39, %v1373_v32 }
 0x40e   :  { %7861 = vmatpush1.bf16.msra.mxu0 %v9538_v8  ;;  %v1358_v8 = vld [vmem:[#allocation8 + $0xeb8] sm:$0xff] }
 0x40f   :  { %8189 = vmatpush1.bf16.msra.mxu1 %v9540_v1  ;;  %7862 = vmatprep.subr.bf16.mxu0 %v9547_v10  ;;  %v9578_v1 = vcombine.low %v1345_v60, %v1349_v61  ;;  %v9580_v10 = vcombine.low %v1346_v62, %v1350_v9  ;;  %v9589_v12 = vcombine.high %v1354_v3, %v1358_v8  ;;  %v1390_v60 = vld [vmem:[#allocation8 + $0xfb8] sm:$0xff] }
 0x410   :  { %v11110_v23 = vpop.f32.mrb[8].mxu0  ;;  %8190 = vmatprep.subr.bf16.mxu1 %v9549_v24  ;;  %v9587_v24 = vcombine.high %v1353_v7, %v1357_v58 }
 0x411   :  { %v11112_v41 = vpop.f32.mrb[8].mxu1  ;;  %v11114_v59 = vpop.f32.mrb[9].mxu0 }
 0x412   :  { %v11116_v36 = vpop.f32.mrb[9].mxu1  ;;  %v7398_v37 = vpop.f32.mrb[10].mxu0  ;;  %7863 = vmatpush1.bf16.msra.mxu0 %v9546_v20  ;;  %v1366_v20 = vld [vmem:[#allocation8 + $0xef8] sm:$0xff] }
 0x413   :  { %v7726_v42 = vpop.f32.mrb[10].mxu1  ;;  %8191 = vmatpush1.bf16.msra.mxu1 %v9548_v19  ;;  %v7399_v13 = vpop.f32.mrb[11].mxu0  ;;  %7864 = vmatprep.subr.bf16.mxu0 %v9555_v27  ;;  %v9586_v19 = vcombine.low %v1353_v7, %v1357_v58  ;;  %v9588_v27 = vcombine.low %v1354_v3, %v1358_v8  ;;  %v9597_v29 = vcombine.high %v1362_v18, %v1366_v20  ;;  %v1374_v37 = vld [vmem:[#allocation8 + $0xf38] sm:$0xff] }
 0x414   :  { %v7727_v44 = vpop.f32.mrb[11].mxu1  ;;  %8192 = vmatprep.subr.bf16.mxu1 %v9557_v28  ;;  %v9595_v28 = vcombine.high %v1361_v16, %v1365_v17  ;;  %v9596_v42 = vcombine.low %v1362_v18, %v1366_v20  ;;  %v9603_v13 = vcombine.high %v1369_v39, %v1373_v32  ;;  %v9604_v54 = vcombine.low %v1370_v33, %v1374_v37  ;;  %v1398_v7 = vld [vmem:[#allocation8 + $0xff8] sm:$0xff] }
 0x415   :  { %v1381_v44 = vld [vmem:[#allocation8 + $0xf70] sm:$0xff]  ;;  %v1410_v39 = vld [vmem:[#allocation8 + $0x1058] sm:$0xff] }
 0x416   :  { %7865 = vmatpush1.bf16.msra.mxu0 %v9554_v46  ;;  %v9594_v46 = vcombine.low %v1361_v16, %v1365_v17  ;;  %v1406_v16 = vld [vmem:[#allocation8 + $0x1038] sm:$0xff] }
 0x417   :  { %8193 = vmatpush1.bf16.msra.mxu1 %v9556_v35  ;;  %7866 = vmatprep.subr.bf16.mxu0 %v9563_v43  ;;  %v9605_v35 = vcombine.high %v1370_v33, %v1374_v37  ;;  %v1377_v43 = vld [vmem:[#allocation8 + $0xf50] sm:$0xff]  ;;  %v1414_v32 = vld [vmem:[#allocation8 + $0x1078] sm:$0xff] }
 0x418   :  { %8194 = vmatprep.subr.bf16.mxu1 %v9565_v45  ;;  %v1378_v45 = vld [vmem:[#allocation8 + $0xf58] sm:$0xff]  ;;  %v9611_v11 = vcombine.high %v1377_v43, %v1381_v44  ;;  %v9610_v61 = vcombine.low %v1377_v43, %v1381_v44 }
 0x419   :  { %v9612_v62 = vcombine.low %v1378_v45, %v1382_v50  ;;  %v1422_v43 = vld [vmem:[#allocation8 + $0x10b8] sm:$0xff] }
 0x41a   :  { %7867 = vmatpush1.bf16.msra.mxu0 %v9562_v5  ;;  %v9613_v5 = vcombine.high %v1378_v45, %v1382_v50  ;;  %v9644_v45 = vcombine.low %v1410_v39, %v1414_v32 }
 0x41b   :  { %8195 = vmatpush1.bf16.msra.mxu1 %v9564_v55  ;;  %7868 = vmatprep.subr.bf16.mxu0 %v9571_v56  ;;  %v1385_v55 = vld [vmem:[#allocation8 + $0xf90] sm:$0xff] }
 0x41c   :  { %8196 = vmatprep.subr.bf16.mxu1 %v9573_v2  ;;  %v1389_v56 = vld [vmem:[#allocation8 + $0xfb0] sm:$0xff]  ;;  %v1386_v2 = vld [vmem:[#allocation8 + $0xf98] sm:$0xff] }
 0x41d   :  { %v9619_v9 = vcombine.high %v1385_v55, %v1389_v56  ;;  %v9618_v58 = vcombine.low %v1385_v55, %v1389_v56  ;;  %v9620_v3 = vcombine.low %v1386_v2, %v1390_v60  ;;  %v1430_v55 = vld [vmem:[#allocation8 + $0x10f8] sm:$0xff] }
 0x41e   :  { %7869 = vmatpush1.bf16.msra.mxu0 %v9570_v26  ;;  %v9621_v26 = vcombine.high %v1386_v2, %v1390_v60 }
 0x41f   :  { %8197 = vmatpush1.bf16.msra.mxu1 %v9572_v38  ;;  %7870 = vmatprep.subr.bf16.mxu0 %v9579_v25  ;;  %v1393_v38 = vld [vmem:[#allocation8 + $0xfd0] sm:$0xff] }
 0x420   :  { %8198 = vmatprep.subr.bf16.mxu1 %v9581_v4  ;;  %v1397_v25 = vld [vmem:[#allocation8 + $0xff0] sm:$0xff]  ;;  %v1394_v4 = vld [vmem:[#allocation8 + $0xfd8] sm:$0xff] }
 0x421   :  { %v9627_v8 = vcombine.high %v1393_v38, %v1397_v25  ;;  %v9626_v17 = vcombine.low %v1393_v38, %v1397_v25  ;;  %v9628_v18 = vcombine.low %v1394_v4, %v1398_v7 }
 0x422   :  { %7871 = vmatpush1.bf16.msra.mxu0 %v9578_v1  ;;  %v9629_v1 = vcombine.high %v1394_v4, %v1398_v7  ;;  %v1441_v7 = vld [vmem:[#allocation8 + $0x1150] sm:$0xff] }
 0x423   :  { %8199 = vmatpush1.bf16.msra.mxu1 %v9580_v10  ;;  %7872 = vmatprep.subr.bf16.mxu0 %v9587_v24  ;;  %v1401_v10 = vld [vmem:[#allocation8 + $0x1010] sm:$0xff] }
 0x424   :  { %8200 = vmatprep.subr.bf16.mxu1 %v9589_v12  ;;  %v1405_v24 = vld [vmem:[#allocation8 + $0x1030] sm:$0xff]  ;;  %v1402_v12 = vld [vmem:[#allocation8 + $0x1018] sm:$0xff] }
 0x425   :  { %v9635_v20 = vcombine.high %v1401_v10, %v1405_v24  ;;  %v9636_v33 = vcombine.low %v1402_v12, %v1406_v16 }
 0x426   :  { %7873 = vmatpush1.bf16.msra.mxu0 %v9586_v19  ;;  %v9637_v19 = vcombine.high %v1402_v12, %v1406_v16  ;;  %v1449_v16 = vld [vmem:[#allocation8 + $0x1190] sm:$0xff] }
 0x427   :  { %8201 = vmatpush1.bf16.msra.mxu1 %v9588_v27  ;;  %7874 = vmatprep.subr.bf16.mxu0 %v9595_v28  ;;  %v1409_v27 = vld [vmem:[#allocation8 + $0x1050] sm:$0xff] }
 0x428   :  { %8202 = vmatprep.subr.bf16.mxu1 %v9597_v29  ;;  %v1413_v28 = vld [vmem:[#allocation8 + $0x1070] sm:$0xff]  ;;  %v9634_v29 = vcombine.low %v1401_v10, %v1405_v24 }
 0x429   :  { %v9643_v37 = vcombine.high %v1409_v27, %v1413_v28  ;;  %v9642_v44 = vcombine.low %v1409_v27, %v1413_v28 }
 0x42a   :  { %7875 = vmatpush1.bf16.msra.mxu0 %v9594_v46  ;;  %v1417_v46 = vld [vmem:[#allocation8 + $0x1090] sm:$0xff] }
 0x42b   :  { %8203 = vmatpush1.bf16.msra.mxu1 %v9596_v42  ;;  %7876 = vmatprep.subr.bf16.mxu0 %v9603_v13  ;;  %v1421_v42 = vld [vmem:[#allocation8 + $0x10b0] sm:$0xff]  ;;  %v9645_v13 = vcombine.high %v1410_v39, %v1414_v32 }
 0x42c   :  { %8204 = vmatprep.subr.bf16.mxu1 %v9605_v35  ;;  %v1418_v35 = vld [vmem:[#allocation8 + $0x1098] sm:$0xff]  ;;  %v9651_v50 = vcombine.high %v1417_v46, %v1421_v42  ;;  %v9650_v56 = vcombine.low %v1417_v46, %v1421_v42  ;;  %v1457_v39 = vld [vmem:[#allocation8 + $0x11d0] sm:$0xff] }
 0x42d   :  { %v1461_v32 = vld [vmem:[#allocation8 + $0x11f0] sm:$0xff] }
 0x42e   :  { %7877 = vmatpush1.bf16.msra.mxu0 %v9602_v52  ;;  %v9653_v52 = vcombine.high %v1418_v35, %v1422_v43 }
 0x42f   :  { %8205 = vmatpush1.bf16.msra.mxu1 %v9604_v54  ;;  %7878 = vmatprep.subr.bf16.mxu0 %v9611_v11  ;;  %v1425_v54 = vld [vmem:[#allocation8 + $0x10d0] sm:$0xff] }
 0x430   :  { %8206 = vmatprep.subr.bf16.mxu1 %v9613_v5  ;;  %v1429_v11 = vld [vmem:[#allocation8 + $0x10f0] sm:$0xff]  ;;  %v1426_v5 = vld [vmem:[#allocation8 + $0x10d8] sm:$0xff] }
 0x431   :  { %v9659_v2 = vcombine.high %v1425_v54, %v1429_v11  ;;  %v9661_v60 = vcombine.high %v1426_v5, %v1430_v55  ;;  %v9660_v38 = vcombine.low %v1426_v5, %v1430_v55  ;;  %v1473_v55 = vld [vmem:[#allocation8 + $0x1250] sm:$0xff] }
 0x432   :  { %7879 = vmatpush1.bf16.msra.mxu0 %v9610_v61  ;;  %v1433_v61 = vld [vmem:[#allocation8 + $0x1110] sm:$0xff] }
 0x433   :  { %8207 = vmatpush1.bf16.msra.mxu1 %v9612_v62  ;;  %7880 = vmatprep.subr.bf16.mxu0 %v9619_v9  ;;  %v1437_v62 = vld [vmem:[#allocation8 + $0x1130] sm:$0xff]  ;;  %v1434_v9 = vld [vmem:[#allocation8 + $0x1118] sm:$0xff] }
 0x434   :  { %8208 = vmatprep.subr.bf16.mxu1 %v9621_v26  ;;  %v1438_v26 = vld [vmem:[#allocation8 + $0x1138] sm:$0xff]  ;;  %v9667_v25 = vcombine.high %v1433_v61, %v1437_v62 }
 0x435   :  { %v9669_v4 = vcombine.high %v1434_v9, %v1438_v26  ;;  %v9668_v10 = vcombine.low %v1434_v9, %v1438_v26  ;;  %v1481_v26 = vld [vmem:[#allocation8 + $0x1290] sm:$0xff] }
 0x436   :  { %7881 = vmatpush1.bf16.msra.mxu0 %v9618_v58  ;;  %v1445_v58 = vld [vmem:[#allocation8 + $0x1170] sm:$0xff] }
 0x437   :  { %8209 = vmatpush1.bf16.msra.mxu1 %v9620_v3  ;;  %7882 = vmatprep.subr.bf16.mxu0 %v9627_v8  ;;  %v1442_v3 = vld [vmem:[#allocation8 + $0x1158] sm:$0xff]  ;;  %v9675_v24 = vcombine.high %v1441_v7, %v1445_v58 }
 0x438   :  { %8210 = vmatprep.subr.bf16.mxu1 %v9629_v1  ;;  %v1446_v8 = vld [vmem:[#allocation8 + $0x1178] sm:$0xff]  ;;  %v9666_v1 = vcombine.low %v1433_v61, %v1437_v62 }
 0x439   :  { %v9677_v12 = vcombine.high %v1442_v3, %v1446_v8  ;;  %v9676_v27 = vcombine.low %v1442_v3, %v1446_v8  ;;  %v1489_v8 = vld [vmem:[#allocation8 + $0x12d0] sm:$0xff] }
 0x43a   :  { %7883 = vmatpush1.bf16.msra.mxu0 %v9626_v17  ;;  %v1453_v17 = vld [vmem:[#allocation8 + $0x11b0] sm:$0xff] }
 0x43b   :  { %8211 = vmatpush1.bf16.msra.mxu1 %v9628_v18  ;;  %7893 = vmatprep.subr.bf16.mxu0 %v9635_v20  ;;  %v1450_v18 = vld [vmem:[#allocation8 + $0x1198] sm:$0xff]  ;;  %v9683_v28 = vcombine.high %v1449_v16, %v1453_v17  ;;  %v9682_v46 = vcombine.low %v1449_v16, %v1453_v17 }
 0x43c   :  { %8221 = vmatprep.subr.bf16.mxu1 %v9637_v19  ;;  %v1454_v20 = vld [vmem:[#allocation8 + $0x11b8] sm:$0xff]  ;;  %v9674_v19 = vcombine.low %v1441_v7, %v1445_v58 }
 0x43d   :  { %7885 = vmatmul.mubr.bf16.vlgmr.msra.gmra.mrb[12].mxu0 %v11051_v30  ;;  %v9684_v42 = vcombine.low %v1450_v18, %v1454_v20 }
 0x43e   :  { %8213 = vmatmul.mubr.bf16.vlgmr.msra.gmra.mrb[12].mxu1 %v11051_v30  ;;  %7894 = vmatpush1.bf16.msra.mxu0 %v9634_v29  ;;  %v9652_v30 = vcombine.low %v1418_v35, %v1422_v43  ;;  %v9685_v29 = vcombine.high %v1450_v18, %v1454_v20  ;;  %v1465_v43 = vld [vmem:[#allocation8 + $0x1210] sm:$0xff] }
 0x43f   :  { %7925 = vmatprep.mubr.bf16.mxu0 %v11053_v31  ;;  %8222 = vmatpush1.bf16.msra.mxu1 %v9636_v33  ;;  %v1458_v33 = vld [vmem:[#allocation8 + $0x11d8] sm:$0xff]  ;;  %v1497_v20 = vld [vmem:[#allocation8 + $0x1310] sm:$0xff] }
 0x440   :  { %8253 = vmatprep.mubr.bf16.mxu1 %v11053_v31  ;;  %7895 = vmatprep.subr.bf16.mxu0 %v9643_v37  ;;  %v9658_v31 = vcombine.low %v1425_v54, %v1429_v11  ;;  %v1462_v37 = vld [vmem:[#allocation8 + $0x11f8] sm:$0xff] }
 0x441   :  { %8223 = vmatprep.subr.bf16.mxu1 %v9645_v13  ;;  %v9691_v13 = vcombine.high %v1457_v39, %v1461_v32  ;;  %v9693_v35 = vcombine.high %v1458_v33, %v1462_v37  ;;  %v9692_v54 = vcombine.low %v1458_v33, %v1462_v37  ;;  %v1505_v37 = vld [vmem:[#allocation8 + $0x1350] sm:$0xff] }
 0x442   :  { %7896 = vmatpush1.bf16.msra.mxu0 %v9642_v44  ;;  %v1469_v44 = vld [vmem:[#allocation8 + $0x1230] sm:$0xff] }
 0x443   :  { %8224 = vmatpush1.bf16.msra.mxu1 %v9644_v45  ;;  %7897 = vmatprep.subr.bf16.mxu0 %v9651_v50  ;;  %v1466_v45 = vld [vmem:[#allocation8 + $0x1218] sm:$0xff]  ;;  %v9699_v11 = vcombine.high %v1465_v43, %v1469_v44 }
 0x444   :  { %8225 = vmatprep.subr.bf16.mxu1 %v9653_v52  ;;  %v1470_v50 = vld [vmem:[#allocation8 + $0x1238] sm:$0xff]  ;;  %v9690_v52 = vcombine.low %v1457_v39, %v1461_v32 }
 0x445   :  { %v9701_v5 = vcombine.high %v1466_v45, %v1470_v50  ;;  %v9700_v61 = vcombine.low %v1466_v45, %v1470_v50  ;;  %v1513_v50 = vld [vmem:[#allocation8 + $0x1390] sm:$0xff] }
 0x446   :  { %7898 = vmatpush1.bf16.msra.mxu0 %v9650_v56  ;;  %v1477_v56 = vld [vmem:[#allocation8 + $0x1270] sm:$0xff] }
 0x447   :  { %8226 = vmatpush1.bf16.msra.mxu1 %v9652_v30  ;;  %7899 = vmatprep.subr.bf16.mxu0 %v9659_v2  ;;  %v1474_v30 = vld [vmem:[#allocation8 + $0x1258] sm:$0xff]  ;;  %v9707_v62 = vcombine.high %v1473_v55, %v1477_v56 }
 0x448   :  { %8227 = vmatprep.subr.bf16.mxu1 %v9661_v60  ;;  %v1478_v2 = vld [vmem:[#allocation8 + $0x1278] sm:$0xff]  ;;  %v9698_v60 = vcombine.low %v1465_v43, %v1469_v44 }
 0x449   :  { %v9709_v9 = vcombine.high %v1474_v30, %v1478_v2  ;;  %v9708_v7 = vcombine.low %v1474_v30, %v1478_v2  ;;  %v1521_v2 = vld [vmem:[#allocation8 + $0x13d0] sm:$0xff] }
 0x44a   :  { %7900 = vmatpush1.bf16.msra.mxu0 %v9658_v31  ;;  %v1485_v31 = vld [vmem:[#allocation8 + $0x12b0] sm:$0xff] }
 0x44b   :  { %8228 = vmatpush1.bf16.msra.mxu1 %v9660_v38  ;;  %7901 = vmatprep.subr.bf16.mxu0 %v9667_v25  ;;  %v1482_v38 = vld [vmem:[#allocation8 + $0x1298] sm:$0xff]  ;;  %v9715_v58 = vcombine.high %v1481_v26, %v1485_v31 }
 0x44c   :  { %8229 = vmatprep.subr.bf16.mxu1 %v9669_v4  ;;  %v1486_v25 = vld [vmem:[#allocation8 + $0x12b8] sm:$0xff]  ;;  %v9706_v4 = vcombine.low %v1473_v55, %v1477_v56 }
 0x44d   :  { %v9717_v3 = vcombine.high %v1482_v38, %v1486_v25  ;;  %v9716_v16 = vcombine.low %v1482_v38, %v1486_v25  ;;  %v1529_v25 = vld [vmem:[#allocation8 + $0x1410] sm:$0xff] }
 0x44e   :  { %7902 = vmatpush1.bf16.msra.mxu0 %v9666_v1  ;;  %v1493_v1 = vld [vmem:[#allocation8 + $0x12f0] sm:$0xff] }
 0x44f   :  { %8230 = vmatpush1.bf16.msra.mxu1 %v9668_v10  ;;  %7903 = vmatprep.subr.bf16.mxu0 %v9675_v24  ;;  %v1490_v10 = vld [vmem:[#allocation8 + $0x12d8] sm:$0xff]  ;;  %v9723_v17 = vcombine.high %v1489_v8, %v1493_v1 }
 0x450   :  { %8231 = vmatprep.subr.bf16.mxu1 %v9677_v12  ;;  %v1494_v24 = vld [vmem:[#allocation8 + $0x12f8] sm:$0xff]  ;;  %v9714_v12 = vcombine.low %v1481_v26, %v1485_v31 }
 0x451   :  { %v9725_v18 = vcombine.high %v1490_v10, %v1494_v24  ;;  %v9724_v39 = vcombine.low %v1490_v10, %v1494_v24  ;;  %v1537_v24 = vld [vmem:[#allocation8 + $0x1450] sm:$0xff] }
 0x452   :  { %7904 = vmatpush1.bf16.msra.mxu0 %v9674_v19  ;;  %v1501_v19 = vld [vmem:[#allocation8 + $0x1330] sm:$0xff] }
 0x453   :  { %8232 = vmatpush1.bf16.msra.mxu1 %v9676_v27  ;;  %7905 = vmatprep.subr.bf16.mxu0 %v9683_v28  ;;  %v1498_v27 = vld [vmem:[#allocation8 + $0x1318] sm:$0xff]  ;;  %v9731_v32 = vcombine.high %v1497_v20, %v1501_v19 }
 0x454   :  { %8233 = vmatprep.subr.bf16.mxu1 %v9685_v29  ;;  %v1502_v28 = vld [vmem:[#allocation8 + $0x1338] sm:$0xff]  ;;  %v9722_v29 = vcombine.low %v1489_v8, %v1493_v1 }
 0x455   :  { %v9733_v33 = vcombine.high %v1498_v27, %v1502_v28  ;;  %v9732_v43 = vcombine.low %v1498_v27, %v1502_v28  ;;  %v1545_v27 = vld [vmem:[#allocation8 + $0x1490] sm:$0xff] }
 0x456   :  { %7906 = vmatpush1.bf16.msra.mxu0 %v9682_v46  ;;  %v1509_v46 = vld [vmem:[#allocation8 + $0x1370] sm:$0xff] }
 0x457   :  { %8234 = vmatpush1.bf16.msra.mxu1 %v9684_v42  ;;  %7907 = vmatprep.subr.bf16.mxu0 %v9691_v13  ;;  %v1506_v42 = vld [vmem:[#allocation8 + $0x1358] sm:$0xff]  ;;  %v9739_v44 = vcombine.high %v1505_v37, %v1509_v46  ;;  %v1549_v28 = vld [vmem:[#allocation8 + $0x14b0] sm:$0xff] }
 0x458   :  { %8235 = vmatprep.subr.bf16.mxu1 %v9693_v35  ;;  %v1510_v13 = vld [vmem:[#allocation8 + $0x1378] sm:$0xff]  ;;  %v9730_v35 = vcombine.low %v1497_v20, %v1501_v19 }
 0x459   :  { %v9741_v45 = vcombine.high %v1506_v42, %v1510_v13  ;;  %v9740_v55 = vcombine.low %v1506_v42, %v1510_v13  ;;  %v1553_v13 = vld [vmem:[#allocation8 + $0x14d0] sm:$0xff] }
 0x45a   :  { %7908 = vmatpush1.bf16.msra.mxu0 %v9690_v52  ;;  %v1517_v52 = vld [vmem:[#allocation8 + $0x13b0] sm:$0xff] }
 0x45b   :  { %8236 = vmatpush1.bf16.msra.mxu1 %v9692_v54  ;;  %7909 = vmatprep.subr.bf16.mxu0 %v9699_v11  ;;  %v1514_v54 = vld [vmem:[#allocation8 + $0x1398] sm:$0xff]  ;;  %v9747_v56 = vcombine.high %v1513_v50, %v1517_v52 }
 0x45c   :  { %8237 = vmatprep.subr.bf16.mxu1 %v9701_v5  ;;  %v1518_v11 = vld [vmem:[#allocation8 + $0x13b8] sm:$0xff]  ;;  %v9738_v5 = vcombine.low %v1505_v37, %v1509_v46  ;;  %v9779_v46 = vcombine.high %v1545_v27, %v1549_v28 }
 0x45d   :  { %v9749_v30 = vcombine.high %v1514_v54, %v1518_v11  ;;  %v9748_v26 = vcombine.low %v1514_v54, %v1518_v11  ;;  %v1561_v54 = vld [vmem:[#allocation8 + $0x1510] sm:$0xff] }
 0x45e   :  { %7910 = vmatpush1.bf16.msra.mxu0 %v9698_v60  ;;  %v1525_v60 = vld [vmem:[#allocation8 + $0x13f0] sm:$0xff] }
 0x45f   :  { %8238 = vmatpush1.bf16.msra.mxu1 %v9700_v61  ;;  %7911 = vmatprep.subr.bf16.mxu0 %v9707_v62  ;;  %v1522_v61 = vld [vmem:[#allocation8 + $0x13d8] sm:$0xff]  ;;  %v9755_v31 = vcombine.high %v1521_v2, %v1525_v60  ;;  %v1565_v11 = vld [vmem:[#allocation8 + $0x1530] sm:$0xff] }
 0x460   :  { %8239 = vmatprep.subr.bf16.mxu1 %v9709_v9  ;;  %v1526_v62 = vld [vmem:[#allocation8 + $0x13f8] sm:$0xff]  ;;  %v9746_v9 = vcombine.low %v1513_v50, %v1517_v52 }
 0x461   :  { %v9757_v38 = vcombine.high %v1522_v61, %v1526_v62  ;;  %v9756_v8 = vcombine.low %v1522_v61, %v1526_v62  ;;  %v1573_v61 = vld [vmem:[#allocation8 + $0x1570] sm:$0xff]  ;;  %v1570_v62 = vld [vmem:[#allocation8 + $0x1558] sm:$0xff] }
 0x462   :  { %7912 = vmatpush1.bf16.msra.mxu0 %v9706_v4  ;;  %v1533_v4 = vld [vmem:[#allocation8 + $0x1430] sm:$0xff] }
 0x463   :  { %8240 = vmatpush1.bf16.msra.mxu1 %v9708_v7  ;;  %7913 = vmatprep.subr.bf16.mxu0 %v9715_v58  ;;  %v1530_v7 = vld [vmem:[#allocation8 + $0x1418] sm:$0xff]  ;;  %v9763_v1 = vcombine.high %v1529_v25, %v1533_v4 }
 0x464   :  { %8241 = vmatprep.subr.bf16.mxu1 %v9717_v3  ;;  %v1534_v58 = vld [vmem:[#allocation8 + $0x1438] sm:$0xff]  ;;  %v9754_v3 = vcombine.low %v1521_v2, %v1525_v60  ;;  %v1569_v60 = vld [vmem:[#allocation8 + $0x1550] sm:$0xff] }
 0x465   :  { %v9765_v10 = vcombine.high %v1530_v7, %v1534_v58  ;;  %v9764_v20 = vcombine.low %v1530_v7, %v1534_v58  ;;  %v1581_v7 = vld [vmem:[#allocation8 + $0x15b0] sm:$0xff]  ;;  %v1578_v58 = vld [vmem:[#allocation8 + $0x1598] sm:$0xff] }
 0x466   :  { %7914 = vmatpush1.bf16.msra.mxu0 %v9714_v12  ;;  %v1541_v12 = vld [vmem:[#allocation8 + $0x1470] sm:$0xff] }
 0x467   :  { %8242 = vmatpush1.bf16.msra.mxu1 %v9716_v16  ;;  %7915 = vmatprep.subr.bf16.mxu0 %v9723_v17  ;;  %v9762_v16 = vcombine.low %v1529_v25, %v1533_v4  ;;  %v1538_v17 = vld [vmem:[#allocation8 + $0x1458] sm:$0xff]  ;;  %v9771_v19 = vcombine.high %v1537_v24, %v1541_v12  ;;  %v1577_v4 = vld [vmem:[#allocation8 + $0x1590] sm:$0xff] }
 0x468   :  { %8243 = vmatprep.subr.bf16.mxu1 %v9725_v18  ;;  %v1542_v18 = vld [vmem:[#allocation8 + $0x1478] sm:$0xff] }
 0x469   :  { %v9772_v37 = vcombine.low %v1538_v17, %v1542_v18 }
 0x46a   :  { %7916 = vmatpush1.bf16.msra.mxu0 %v9722_v29  ;;  %v9773_v29 = vcombine.high %v1538_v17, %v1542_v18  ;;  %v1586_v17 = vld [vmem:[#allocation8 + $0x15d8] sm:$0xff] }
 0x46b   :  { %8244 = vmatpush1.bf16.msra.mxu1 %v9724_v39  ;;  %7917 = vmatprep.subr.bf16.mxu0 %v9731_v32  ;;  %v1546_v39 = vld [vmem:[#allocation8 + $0x1498] sm:$0xff] }
 0x46c   :  { %8245 = vmatprep.subr.bf16.mxu1 %v9733_v33  ;;  %v1550_v32 = vld [vmem:[#allocation8 + $0x14b8] sm:$0xff]  ;;  %v9770_v33 = vcombine.low %v1537_v24, %v1541_v12  ;;  %v1585_v12 = vld [vmem:[#allocation8 + $0x15d0] sm:$0xff] }
 0x46d   :  { %v9781_v42 = vcombine.high %v1546_v39, %v1550_v32  ;;  %v1590_v18 = vld [vmem:[#allocation8 + $0x15f8] sm:$0xff] }
 0x46e   :  { %7918 = vmatpush1.bf16.msra.mxu0 %v9730_v35  ;;  %v1557_v35 = vld [vmem:[#allocation8 + $0x14f0] sm:$0xff] }
 0x46f   :  { %8246 = vmatpush1.bf16.msra.mxu1 %v9732_v43  ;;  %7919 = vmatprep.subr.bf16.mxu0 %v9739_v44  ;;  %v1554_v43 = vld [vmem:[#allocation8 + $0x14d8] sm:$0xff]  ;;  %v9787_v50 = vcombine.high %v1553_v13, %v1557_v35 }
 0x470   :  { %8247 = vmatprep.subr.bf16.mxu1 %v9741_v45  ;;  %v1558_v44 = vld [vmem:[#allocation8 + $0x14f8] sm:$0xff]  ;;  %v9778_v45 = vcombine.low %v1545_v27, %v1549_v28  ;;  %v9821_v28 = vcombine.high %v1586_v17, %v1590_v18 }
 0x471   :  { %v9789_v52 = vcombine.high %v1554_v43, %v1558_v44 }
 0x472   :  { %7920 = vmatpush1.bf16.msra.mxu0 %v9738_v5  ;;  %v1562_v5 = vld [vmem:[#allocation8 + $0x1518] sm:$0xff] }
 0x473   :  { %8248 = vmatpush1.bf16.msra.mxu1 %v9740_v55  ;;  %7921 = vmatprep.subr.bf16.mxu0 %v9747_v56  ;;  %v1566_v55 = vld [vmem:[#allocation8 + $0x1538] sm:$0xff]  ;;  %v9788_v56 = vcombine.low %v1554_v43, %v1558_v44  ;;  %v1605_v43 = vld [vmem:[#allocation8 + $0x1670] sm:$0xff] }
 0x474   :  { %8249 = vmatprep.subr.bf16.mxu1 %v9749_v30  ;;  %v9795_v30 = vcombine.high %v1561_v54, %v1565_v11  ;;  %v9797_v2 = vcombine.high %v1562_v5, %v1566_v55  ;;  %v1602_v44 = vld [vmem:[#allocation8 + $0x1658] sm:$0xff] }
 0x476   :  { %7922 = vmatpush1.bf16.msra.mxu0 %v9746_v9  ;;  %v1574_v9 = vld [vmem:[#allocation8 + $0x1578] sm:$0xff] }
 0x477   :  { %8250 = vmatpush1.bf16.msra.mxu1 %v9748_v26  ;;  %7923 = vmatprep.subr.bf16.mxu0 %v9755_v31  ;;  %v9794_v26 = vcombine.low %v1561_v54, %v1565_v11  ;;  %v9796_v31 = vcombine.low %v1562_v5, %v1566_v55  ;;  %v9805_v25 = vcombine.high %v1570_v62, %v1574_v9  ;;  %v1609_v11 = vld [vmem:[#allocation8 + $0x1690] sm:$0xff]  ;;  %v1610_v55 = vld [vmem:[#allocation8 + $0x1698] sm:$0xff] }
 0x478   :  { %8251 = vmatprep.subr.bf16.mxu1 %v9757_v38  ;;  %v9803_v38 = vcombine.high %v1569_v60, %v1573_v61  ;;  %v1613_v5 = vld [vmem:[#allocation8 + $0x16b0] sm:$0xff] }
 0x47a   :  { %7924 = vmatpush1.bf16.msra.mxu0 %v9754_v3  ;;  %v1582_v3 = vld [vmem:[#allocation8 + $0x15b8] sm:$0xff] }
 0x47b   :  { %8252 = vmatpush1.bf16.msra.mxu1 %v9756_v8  ;;  %7934 = vmatprep.subr.bf16.mxu0 %v9763_v1  ;;  %v9802_v8 = vcombine.low %v1569_v60, %v1573_v61  ;;  %v9804_v1 = vcombine.low %v1570_v62, %v1574_v9  ;;  %v9813_v24 = vcombine.high %v1578_v58, %v1582_v3  ;;  %v1617_v61 = vld [vmem:[#allocation8 + $0x16d0] sm:$0xff]  ;;  %v1618_v9 = vld [vmem:[#allocation8 + $0x16d8] sm:$0xff] }
 0x47c   :  { %8262 = vmatprep.subr.bf16.mxu1 %v9765_v10  ;;  %v9811_v10 = vcombine.high %v1577_v4, %v1581_v7  ;;  %v1621_v62 = vld [vmem:[#allocation8 + $0x16f0] sm:$0xff] }
 0x47d   :  { %7926 = vmatmul.mubr.bf16.vlgmr.msra.gmra.mrb[12].mxu0 %v11063_v53 }
 0x47e   :  { %8254 = vmatmul.mubr.bf16.vlgmr.msra.gmra.mrb[12].mxu1 %v11063_v53  ;;  %7935 = vmatpush1.bf16.msra.mxu0 %v9762_v16  ;;  %v9780_v53 = vcombine.low %v1546_v39, %v1550_v32  ;;  %v1589_v16 = vld [vmem:[#allocation8 + $0x15f0] sm:$0xff]  ;;  %v1594_v32 = vld [vmem:[#allocation8 + $0x1618] sm:$0xff] }
 0x47f   :  { %7966 = vmatprep.mubr.bf16.mxu0 %v11065_v57  ;;  %8263 = vmatpush1.bf16.msra.mxu1 %v9764_v20  ;;  %v9810_v20 = vcombine.low %v1577_v4, %v1581_v7  ;;  %v9819_v27 = vcombine.high %v1585_v12, %v1589_v16  ;;  %v1597_v39 = vld [vmem:[#allocation8 + $0x1630] sm:$0xff] }
 0x480   :  { %8294 = vmatprep.mubr.bf16.mxu1 %v11065_v57  ;;  %7936 = vmatprep.subr.bf16.mxu0 %v9771_v19  ;;  %v9786_v57 = vcombine.low %v1553_v13, %v1557_v35  ;;  %v9812_v19 = vcombine.low %v1578_v58, %v1582_v3  ;;  %v1601_v35 = vld [vmem:[#allocation8 + $0x1650] sm:$0xff]  ;;  %v1626_v3 = vld [vmem:[#allocation8 + $0x1718] sm:$0xff] }
 0x481   :  { %8264 = vmatprep.subr.bf16.mxu1 %v9773_v29  ;;  %v1593_v29 = vld [vmem:[#allocation8 + $0x1610] sm:$0xff] }
 0x482   :  { %7937 = vmatpush1.bf16.msra.mxu0 %v9770_v33  ;;  %v1598_v33 = vld [vmem:[#allocation8 + $0x1638] sm:$0xff]  ;;  %v1625_v7 = vld [vmem:[#allocation8 + $0x1710] sm:$0xff] }
 0x483   :  { %8265 = vmatpush1.bf16.msra.mxu1 %v9772_v37  ;;  %7938 = vmatprep.subr.bf16.mxu0 %v9779_v46  ;;  %v9818_v37 = vcombine.low %v1585_v12, %v1589_v16  ;;  %v9820_v46 = vcombine.low %v1586_v17, %v1590_v18  ;;  %v9829_v13 = vcombine.high %v1594_v32, %v1598_v33  ;;  %v1629_v58 = vld [vmem:[#allocation8 + $0x1730] sm:$0xff]  ;;  %v1634_v18 = vld [vmem:[#allocation8 + $0x1758] sm:$0xff] }
 0x484   :  { %8266 = vmatprep.subr.bf16.mxu1 %v9781_v42  ;;  %v9827_v42 = vcombine.high %v1593_v29, %v1597_v39  ;;  %v1633_v16 = vld [vmem:[#allocation8 + $0x1750] sm:$0xff] }
 0x485   :  { %v1637_v17 = vld [vmem:[#allocation8 + $0x1770] sm:$0xff] }
 0x486   :  { %7939 = vmatpush1.bf16.msra.mxu0 %v9778_v45  ;;  %v1606_v45 = vld [vmem:[#allocation8 + $0x1678] sm:$0xff] }
 0x487   :  { %8267 = vmatpush1.bf16.msra.mxu1 %v9780_v53  ;;  %7940 = vmatprep.subr.bf16.mxu0 %v9787_v50  ;;  %v9826_v53 = vcombine.low %v1593_v29, %v1597_v39  ;;  %v9828_v50 = vcombine.low %v1594_v32, %v1598_v33  ;;  %v9837_v54 = vcombine.high %v1602_v44, %v1606_v45  ;;  %v1641_v39 = vld [vmem:[#allocation8 + $0x1790] sm:$0xff]  ;;  %v1642_v33 = vld [vmem:[#allocation8 + $0x1798] sm:$0xff] }
 0x488   :  { %8268 = vmatprep.subr.bf16.mxu1 %v9789_v52  ;;  %v9835_v52 = vcombine.high %v1601_v35, %v1605_v43  ;;  %v1645_v32 = vld [vmem:[#allocation8 + $0x17b0] sm:$0xff] }
 0x48a   :  { %7941 = vmatpush1.bf16.msra.mxu0 %v9786_v57  ;;  %v1614_v57 = vld [vmem:[#allocation8 + $0x16b8] sm:$0xff] }
 0x48b   :  { %8269 = vmatpush1.bf16.msra.mxu1 %v9788_v56  ;;  %7942 = vmatprep.subr.bf16.mxu0 %v9795_v30  ;;  %v9834_v56 = vcombine.low %v1601_v35, %v1605_v43  ;;  %v9836_v30 = vcombine.low %v1602_v44, %v1606_v45  ;;  %v9845_v60 = vcombine.high %v1610_v55, %v1614_v57  ;;  %v1649_v43 = vld [vmem:[#allocation8 + $0x17d0] sm:$0xff]  ;;  %v1650_v45 = vld [vmem:[#allocation8 + $0x17d8] sm:$0xff] }
 0x48c   :  { %8270 = vmatprep.subr.bf16.mxu1 %v9797_v2  ;;  %v9843_v2 = vcombine.high %v1609_v11, %v1613_v5  ;;  %v1653_v44 = vld [vmem:[#allocation8 + $0x17f0] sm:$0xff] }
 0x48e   :  { %7943 = vmatpush1.bf16.msra.mxu0 %v9794_v26  ;;  %v1622_v26 = vld [vmem:[#allocation8 + $0x16f8] sm:$0xff] }
 0x48f   :  { %8271 = vmatpush1.bf16.msra.mxu1 %v9796_v31  ;;  %7944 = vmatprep.subr.bf16.mxu0 %v9803_v38  ;;  %v9842_v31 = vcombine.low %v1609_v11, %v1613_v5  ;;  %v9844_v38 = vcombine.low %v1610_v55, %v1614_v57  ;;  %v9853_v4 = vcombine.high %v1618_v9, %v1622_v26  ;;  %v1657_v5 = vld [vmem:[#allocation8 + $0x1810] sm:$0xff]  ;;  %v1658_v57 = vld [vmem:[#allocation8 + $0x1818] sm:$0xff] }
 0x490   :  { %8272 = vmatprep.subr.bf16.mxu1 %v9805_v25  ;;  %v9851_v25 = vcombine.high %v1617_v61, %v1621_v62  ;;  %v1661_v55 = vld [vmem:[#allocation8 + $0x1830] sm:$0xff] }
 0x492   :  { %7945 = vmatpush1.bf16.msra.mxu0 %v9802_v8  ;;  %v1630_v8 = vld [vmem:[#allocation8 + $0x1738] sm:$0xff] }
 0x493   :  { %8273 = vmatpush1.bf16.msra.mxu1 %v9804_v1  ;;  %7946 = vmatprep.subr.bf16.mxu0 %v9811_v10  ;;  %v9850_v1 = vcombine.low %v1617_v61, %v1621_v62  ;;  %v9852_v10 = vcombine.low %v1618_v9, %v1622_v26  ;;  %v9861_v12 = vcombine.high %v1626_v3, %v1630_v8  ;;  %v1665_v62 = vld [vmem:[#allocation8 + $0x1850] sm:$0xff] }
 0x494   :  { %8274 = vmatprep.subr.bf16.mxu1 %v9813_v24  ;;  %v9859_v24 = vcombine.high %v1625_v7, %v1629_v58  ;;  %v1669_v9 = vld [vmem:[#allocation8 + $0x1870] sm:$0xff]  ;;  %v9890_v26 = vcombine.low %v1657_v5, %v1661_v55 }
 0x496   :  { %7947 = vmatpush1.bf16.msra.mxu0 %v9810_v20  ;;  %v1638_v20 = vld [vmem:[#allocation8 + $0x1778] sm:$0xff] }
 0x497   :  { %8275 = vmatpush1.bf16.msra.mxu1 %v9812_v19  ;;  %7948 = vmatprep.subr.bf16.mxu0 %v9819_v27  ;;  %v9858_v19 = vcombine.low %v1625_v7, %v1629_v58  ;;  %v9860_v27 = vcombine.low %v1626_v3, %v1630_v8  ;;  %v9869_v29 = vcombine.high %v1634_v18, %v1638_v20  ;;  %v1673_v7 = vld [vmem:[#allocation8 + $0x1890] sm:$0xff]  ;;  %v1674_v8 = vld [vmem:[#allocation8 + $0x1898] sm:$0xff] }
 0x498   :  { %8276 = vmatprep.subr.bf16.mxu1 %v9821_v28  ;;  %v9867_v28 = vcombine.high %v1633_v16, %v1637_v17  ;;  %v1677_v58 = vld [vmem:[#allocation8 + $0x18b0] sm:$0xff] }
 0x49a   :  { %7949 = vmatpush1.bf16.msra.mxu0 %v9818_v37  ;;  %v1646_v37 = vld [vmem:[#allocation8 + $0x17b8] sm:$0xff] }
 0x49b   :  { %8277 = vmatpush1.bf16.msra.mxu1 %v9820_v46  ;;  %7950 = vmatprep.subr.bf16.mxu0 %v9827_v42  ;;  %v9866_v46 = vcombine.low %v1633_v16, %v1637_v17  ;;  %v9868_v42 = vcombine.low %v1634_v18, %v1638_v20  ;;  %v9877_v35 = vcombine.high %v1642_v33, %v1646_v37  ;;  %v1681_v17 = vld [vmem:[#allocation8 + $0x18d0] sm:$0xff]  ;;  %v1682_v20 = vld [vmem:[#allocation8 + $0x18d8] sm:$0xff] }
 0x49c   :  { %8278 = vmatprep.subr.bf16.mxu1 %v9829_v13  ;;  %v9875_v13 = vcombine.high %v1641_v39, %v1645_v32  ;;  %v1685_v18 = vld [vmem:[#allocation8 + $0x18f0] sm:$0xff] }
 0x49e   :  { %7951 = vmatpush1.bf16.msra.mxu0 %v9826_v53  ;;  %v1654_v53 = vld [vmem:[#allocation8 + $0x17f8] sm:$0xff] }
 0x49f   :  { %8279 = vmatpush1.bf16.msra.mxu1 %v9828_v50  ;;  %7952 = vmatprep.subr.bf16.mxu0 %v9835_v52  ;;  %v9874_v50 = vcombine.low %v1641_v39, %v1645_v32  ;;  %v9876_v52 = vcombine.low %v1642_v33, %v1646_v37  ;;  %v9885_v11 = vcombine.high %v1650_v45, %v1654_v53  ;;  %v1689_v39 = vld [vmem:[#allocation8 + $0x1910] sm:$0xff]  ;;  %v1690_v33 = vld [vmem:[#allocation8 + $0x1918] sm:$0xff] }
 0x4a0   :  { %8280 = vmatprep.subr.bf16.mxu1 %v9837_v54  ;;  %v9883_v54 = vcombine.high %v1649_v43, %v1653_v44  ;;  %v1693_v32 = vld [vmem:[#allocation8 + $0x1930] sm:$0xff]  ;;  %v1694_v37 = vld [vmem:[#allocation8 + $0x1938] sm:$0xff] }
 0x4a2   :  { %7953 = vmatpush1.bf16.msra.mxu0 %v9834_v56  ;;  %v1662_v56 = vld [vmem:[#allocation8 + $0x1838] sm:$0xff] }
 0x4a3   :  { %8281 = vmatpush1.bf16.msra.mxu1 %v9836_v30  ;;  %7954 = vmatprep.subr.bf16.mxu0 %v9843_v2  ;;  %v9882_v30 = vcombine.low %v1649_v43, %v1653_v44  ;;  %v9884_v2 = vcombine.low %v1650_v45, %v1654_v53  ;;  %v9893_v61 = vcombine.high %v1658_v57, %v1662_v56  ;;  %v1701_v43 = vld [vmem:[#allocation8 + $0x1970] sm:$0xff]  ;;  %v1698_v44 = vld [vmem:[#allocation8 + $0x1958] sm:$0xff] }
 0x4a4   :  { %8282 = vmatprep.subr.bf16.mxu1 %v9845_v60  ;;  %v9891_v60 = vcombine.high %v1657_v5, %v1661_v55  ;;  %v1702_v45 = vld [vmem:[#allocation8 + $0x1978] sm:$0xff]  ;;  %v9922_v53 = vcombine.low %v1689_v39, %v1693_v32  ;;  %v1709_v5 = vld [vmem:[#allocation8 + $0x19b0] sm:$0xff] }
 0x4a5   :  { %v1706_v55 = vld [vmem:[#allocation8 + $0x1998] sm:$0xff] }
 0x4a6   :  { %7955 = vmatpush1.bf16.msra.mxu0 %v9842_v31  ;;  %v1666_v31 = vld [vmem:[#allocation8 + $0x1858] sm:$0xff] }
 0x4a7   :  { %8283 = vmatpush1.bf16.msra.mxu1 %v9844_v38  ;;  %7956 = vmatprep.subr.bf16.mxu0 %v9851_v25  ;;  %v1670_v38 = vld [vmem:[#allocation8 + $0x1878] sm:$0xff]  ;;  %v9892_v25 = vcombine.low %v1658_v57, %v1662_v56 }
 0x4a8   :  { %8284 = vmatprep.subr.bf16.mxu1 %v9853_v4  ;;  %v9899_v4 = vcombine.high %v1665_v62, %v1669_v9  ;;  %v9901_v3 = vcombine.high %v1666_v31, %v1670_v38  ;;  %v1710_v57 = vld [vmem:[#allocation8 + $0x19b8] sm:$0xff] }
 0x4aa   :  { %7957 = vmatpush1.bf16.msra.mxu0 %v9850_v1  ;;  %v1678_v1 = vld [vmem:[#allocation8 + $0x18b8] sm:$0xff] }
 0x4ab   :  { %8285 = vmatpush1.bf16.msra.mxu1 %v9852_v10  ;;  %7958 = vmatprep.subr.bf16.mxu0 %v9859_v24  ;;  %v9898_v10 = vcombine.low %v1665_v62, %v1669_v9  ;;  %v9900_v24 = vcombine.low %v1666_v31, %v1670_v38  ;;  %v9909_v16 = vcombine.high %v1674_v8, %v1678_v1  ;;  %v1717_v62 = vld [vmem:[#allocation8 + $0x19f0] sm:$0xff]  ;;  %v1714_v9 = vld [vmem:[#allocation8 + $0x19d8] sm:$0xff] }
 0x4ac   :  { %8286 = vmatprep.subr.bf16.mxu1 %v9861_v12  ;;  %v9907_v12 = vcombine.high %v1673_v7, %v1677_v58  ;;  %v9940_v38 = vcombine.low %v1706_v55, %v1710_v57 }
 0x4ae   :  { %7959 = vmatpush1.bf16.msra.mxu0 %v9858_v19  ;;  %v1686_v19 = vld [vmem:[#allocation8 + $0x18f8] sm:$0xff] }
 0x4af   :  { %8287 = vmatpush1.bf16.msra.mxu1 %v9860_v27  ;;  %7960 = vmatprep.subr.bf16.mxu0 %v9867_v28  ;;  %v9906_v27 = vcombine.low %v1673_v7, %v1677_v58  ;;  %v9915_v28 = vcombine.high %v1681_v17, %v1685_v18  ;;  %v1721_v7 = vld [vmem:[#allocation8 + $0x1a10] sm:$0xff] }
 0x4b0   :  { %8288 = vmatprep.subr.bf16.mxu1 %v9869_v29  ;;  %v9917_v29 = vcombine.high %v1682_v20, %v1686_v19  ;;  %v1725_v58 = vld [vmem:[#allocation8 + $0x1a30] sm:$0xff] }
 0x4b2   :  { %7961 = vmatpush1.bf16.msra.mxu0 %v9866_v46  ;;  %v9916_v46 = vcombine.low %v1682_v20, %v1686_v19  ;;  %v1734_v20 = vld [vmem:[#allocation8 + $0x1a78] sm:$0xff]  ;;  %v9954_v19 = vcombine.low %v1721_v7, %v1725_v58 }
 0x4b3   :  { %8289 = vmatpush1.bf16.msra.mxu1 %v9868_v42  ;;  %7962 = vmatprep.subr.bf16.mxu0 %v9875_v13  ;;  %v9923_v42 = vcombine.high %v1689_v39, %v1693_v32  ;;  %v9925_v13 = vcombine.high %v1690_v33, %v1694_v37  ;;  %v1741_v39 = vld [vmem:[#allocation8 + $0x1ab0] sm:$0xff]  ;;  %v1738_v32 = vld [vmem:[#allocation8 + $0x1a98] sm:$0xff] }
 0x4b4   :  { %8290 = vmatprep.subr.bf16.mxu1 %v9877_v35  ;;  %v1697_v35 = vld [vmem:[#allocation8 + $0x1950] sm:$0xff] }
 0x4b5   :  { %v9930_v56 = vcombine.low %v1697_v35, %v1701_v43 }
 0x4b6   :  { %7963 = vmatpush1.bf16.msra.mxu0 %v9874_v50  ;;  %v9924_v50 = vcombine.low %v1690_v33, %v1694_v37  ;;  %v1742_v33 = vld [vmem:[#allocation8 + $0x1ab8] sm:$0xff] }
 0x4b7   :  { %8291 = vmatpush1.bf16.msra.mxu1 %v9876_v52  ;;  %7964 = vmatprep.subr.bf16.mxu0 %v9883_v54  ;;  %v9931_v52 = vcombine.high %v1697_v35, %v1701_v43  ;;  %v9933_v54 = vcombine.high %v1698_v44, %v1702_v45  ;;  %v1749_v35 = vld [vmem:[#allocation8 + $0x1af0] sm:$0xff]  ;;  %v1746_v43 = vld [vmem:[#allocation8 + $0x1ad8] sm:$0xff] }
 0x4b8   :  { %8292 = vmatprep.subr.bf16.mxu1 %v9885_v11  ;;  %v1705_v11 = vld [vmem:[#allocation8 + $0x1990] sm:$0xff] }
 0x4b9   :  { %v9938_v31 = vcombine.low %v1705_v11, %v1709_v5 }
 0x4ba   :  { %7965 = vmatpush1.bf16.msra.mxu0 %v9882_v30  ;;  %v9932_v30 = vcombine.low %v1698_v44, %v1702_v45  ;;  %v1750_v44 = vld [vmem:[#allocation8 + $0x1af8] sm:$0xff] }
 0x4bb   :  { %8293 = vmatpush1.bf16.msra.mxu1 %v9884_v2  ;;  %7975 = vmatprep.subr.bf16.mxu0 %v9891_v60  ;;  %v9939_v2 = vcombine.high %v1705_v11, %v1709_v5  ;;  %v9941_v60 = vcombine.high %v1706_v55, %v1710_v57  ;;  %v1757_v11 = vld [vmem:[#allocation8 + $0x1b30] sm:$0xff]  ;;  %v1754_v5 = vld [vmem:[#allocation8 + $0x1b18] sm:$0xff] }
 0x4bc   :  { %8303 = vmatprep.subr.bf16.mxu1 %v9893_v61  ;;  %v1713_v61 = vld [vmem:[#allocation8 + $0x19d0] sm:$0xff]  ;;  %v1758_v55 = vld [vmem:[#allocation8 + $0x1b38] sm:$0xff] }
 0x4bd   :  { %7967 = vmatmul.mubr.bf16.vlgmr.msra.gmra.mrb[12].mxu0 %v11073_v6 }
 0x4be   :  { %8295 = vmatmul.mubr.bf16.vlgmr.msra.gmra.mrb[12].mxu1 %v11073_v6  ;;  %7976 = vmatpush1.bf16.msra.mxu0 %v9890_v26  ;;  %v9908_v6 = vcombine.low %v1674_v8, %v1678_v1  ;;  %v1718_v26 = vld [vmem:[#allocation8 + $0x19f8] sm:$0xff]  ;;  %v9946_v1 = vcombine.low %v1713_v61, %v1717_v62 }
 0x4bf   :  { %8007 = vmatprep.mubr.bf16.mxu0 %v11075_v14  ;;  %8304 = vmatpush1.bf16.msra.mxu1 %v9892_v25  ;;  %v9947_v25 = vcombine.high %v1713_v61, %v1717_v62  ;;  %v1726_v8 = vld [vmem:[#allocation8 + $0x1a38] sm:$0xff]  ;;  %v1765_v61 = vld [vmem:[#allocation8 + $0x1b70] sm:$0xff] }
 0x4c0   :  { %8335 = vmatprep.mubr.bf16.mxu1 %v11075_v14  ;;  %7977 = vmatprep.subr.bf16.mxu0 %v9899_v4  ;;  %v9914_v14 = vcombine.low %v1681_v17, %v1685_v18  ;;  %v9949_v4 = vcombine.high %v1714_v9, %v1718_v26  ;;  %v1733_v17 = vld [vmem:[#allocation8 + $0x1a70] sm:$0xff]  ;;  %v1730_v18 = vld [vmem:[#allocation8 + $0x1a58] sm:$0xff] }
 0x4c1   :  { %8305 = vmatprep.subr.bf16.mxu1 %v9901_v3  ;;  %v1722_v3 = vld [vmem:[#allocation8 + $0x1a18] sm:$0xff] }
 0x4c2   :  { %7978 = vmatpush1.bf16.msra.mxu0 %v9898_v10  ;;  %v9948_v10 = vcombine.low %v1714_v9, %v1718_v26  ;;  %v1762_v62 = vld [vmem:[#allocation8 + $0x1b58] sm:$0xff] }
 0x4c3   :  { %8306 = vmatpush1.bf16.msra.mxu1 %v9900_v24  ;;  %7979 = vmatprep.subr.bf16.mxu0 %v9907_v12  ;;  %v9955_v24 = vcombine.high %v1721_v7, %v1725_v58  ;;  %v9957_v12 = vcombine.high %v1722_v3, %v1726_v8  ;;  %v1766_v9 = vld [vmem:[#allocation8 + $0x1b78] sm:$0xff]  ;;  %v1773_v7 = vld [vmem:[#allocation8 + $0x1bb0] sm:$0xff] }
 0x4c4   :  { %8307 = vmatprep.subr.bf16.mxu1 %v9909_v16  ;;  %v1729_v16 = vld [vmem:[#allocation8 + $0x1a50] sm:$0xff]  ;;  %v1770_v58 = vld [vmem:[#allocation8 + $0x1b98] sm:$0xff] }
 0x4c5   :  { %v9962_v37 = vcombine.low %v1729_v16, %v1733_v17 }
 0x4c6   :  { %7980 = vmatpush1.bf16.msra.mxu0 %v9906_v27  ;;  %v9956_v27 = vcombine.low %v1722_v3, %v1726_v8  ;;  %v1774_v3 = vld [vmem:[#allocation8 + $0x1bb8] sm:$0xff] }
 0x4c7   :  { %8308 = vmatpush1.bf16.msra.mxu1 %v9908_v6  ;;  %7981 = vmatprep.subr.bf16.mxu0 %v9915_v28  ;;  %v9963_v6 = vcombine.high %v1729_v16, %v1733_v17  ;;  %v9965_v28 = vcombine.high %v1730_v18, %v1734_v20  ;;  %v1781_v16 = vld [vmem:[#allocation8 + $0x1bf0] sm:$0xff]  ;;  %v1778_v17 = vld [vmem:[#allocation8 + $0x1bd8] sm:$0xff] }
 0x4c8   :  { %8309 = vmatprep.subr.bf16.mxu1 %v9917_v29  ;;  %v1737_v29 = vld [vmem:[#allocation8 + $0x1a90] sm:$0xff] }
 0x4c9   :  { %v9970_v45 = vcombine.low %v1737_v29, %v1741_v39 }
 0x4ca   :  { %7982 = vmatpush1.bf16.msra.mxu0 %v9914_v14  ;;  %v9964_v14 = vcombine.low %v1730_v18, %v1734_v20  ;;  %v1782_v18 = vld [vmem:[#allocation8 + $0x1bf8] sm:$0xff] }
 0x4cb   :  { %8310 = vmatpush1.bf16.msra.mxu1 %v9916_v46  ;;  %7983 = vmatprep.subr.bf16.mxu0 %v9923_v42  ;;  %v9971_v46 = vcombine.high %v1737_v29, %v1741_v39  ;;  %v9973_v42 = vcombine.high %v1738_v32, %v1742_v33  ;;  %v1789_v29 = vld [vmem:[#allocation8 + $0x1c30] sm:$0xff]  ;;  %v1786_v39 = vld [vmem:[#allocation8 + $0x1c18] sm:$0xff] }
 0x4cc   :  { %8311 = vmatprep.subr.bf16.mxu1 %v9925_v13  ;;  %v1745_v13 = vld [vmem:[#allocation8 + $0x1ad0] sm:$0xff] }
 0x4cd   :  { %v9978_v57 = vcombine.low %v1745_v13, %v1749_v35 }
 0x4ce   :  { %7984 = vmatpush1.bf16.msra.mxu0 %v9922_v53  ;;  %v9972_v53 = vcombine.low %v1738_v32, %v1742_v33  ;;  %v1790_v32 = vld [vmem:[#allocation8 + $0x1c38] sm:$0xff] }
 0x4cf   :  { %8312 = vmatpush1.bf16.msra.mxu1 %v9924_v50  ;;  %7985 = vmatprep.subr.bf16.mxu0 %v9931_v52  ;;  %v9979_v50 = vcombine.high %v1745_v13, %v1749_v35  ;;  %v9981_v52 = vcombine.high %v1746_v43, %v1750_v44  ;;  %v1797_v13 = vld [vmem:[#allocation8 + $0x1c70] sm:$0xff] }
 0x4d0   :  { %8313 = vmatprep.subr.bf16.mxu1 %v9933_v54  ;;  %v1753_v54 = vld [vmem:[#allocation8 + $0x1b10] sm:$0xff] }
 0x4d1   :  { %v9986_v26 = vcombine.low %v1753_v54, %v1757_v11 }
 0x4d2   :  { %7986 = vmatpush1.bf16.msra.mxu0 %v9930_v56  ;;  %v9980_v56 = vcombine.low %v1746_v43, %v1750_v44  ;;  %v1794_v43 = vld [vmem:[#allocation8 + $0x1c58] sm:$0xff] }
 0x4d3   :  { %8314 = vmatpush1.bf16.msra.mxu1 %v9932_v30  ;;  %7987 = vmatprep.subr.bf16.mxu0 %v9939_v2  ;;  %v9987_v30 = vcombine.high %v1753_v54, %v1757_v11  ;;  %v9989_v2 = vcombine.high %v1754_v5, %v1758_v55  ;;  %v1798_v44 = vld [vmem:[#allocation8 + $0x1c78] sm:$0xff] }
 0x4d4   :  { %8315 = vmatprep.subr.bf16.mxu1 %v9941_v60  ;;  %v1761_v60 = vld [vmem:[#allocation8 + $0x1b50] sm:$0xff]  ;;  %v10029_v54 = vcombine.high %v1794_v43, %v1798_v44  ;;  %v1802_v11 = vld [vmem:[#allocation8 + $0x1c98] sm:$0xff] }
 0x4d5   :  { %v9994_v8 = vcombine.low %v1761_v60, %v1765_v61 }
 0x4d6   :  { %7988 = vmatpush1.bf16.msra.mxu0 %v9938_v31  ;;  %v9988_v31 = vcombine.low %v1754_v5, %v1758_v55  ;;  %v1806_v5 = vld [vmem:[#allocation8 + $0x1cb8] sm:$0xff] }
 0x4d7   :  { %8316 = vmatpush1.bf16.msra.mxu1 %v9940_v38  ;;  %7989 = vmatprep.subr.bf16.mxu0 %v9947_v25  ;;  %v9995_v38 = vcombine.high %v1761_v60, %v1765_v61  ;;  %v9997_v25 = vcombine.high %v1762_v62, %v1766_v9  ;;  %v1813_v60 = vld [vmem:[#allocation8 + $0x1cf0] sm:$0xff]  ;;  %v1810_v61 = vld [vmem:[#allocation8 + $0x1cd8] sm:$0xff] }
 0x4d8   :  { %8317 = vmatprep.subr.bf16.mxu1 %v9949_v4  ;;  %v1769_v4 = vld [vmem:[#allocation8 + $0x1b90] sm:$0xff] }
 0x4d9   :  { %v10002_v20 = vcombine.low %v1769_v4, %v1773_v7 }
 0x4da   :  { %7990 = vmatpush1.bf16.msra.mxu0 %v9946_v1  ;;  %v9996_v1 = vcombine.low %v1762_v62, %v1766_v9  ;;  %v1814_v62 = vld [vmem:[#allocation8 + $0x1cf8] sm:$0xff] }
 0x4db   :  { %8318 = vmatpush1.bf16.msra.mxu1 %v9948_v10  ;;  %7991 = vmatprep.subr.bf16.mxu0 %v9955_v24  ;;  %v10003_v10 = vcombine.high %v1769_v4, %v1773_v7  ;;  %v10005_v24 = vcombine.high %v1770_v58, %v1774_v3  ;;  %v1818_v4 = vld [vmem:[#allocation8 + $0x1d18] sm:$0xff] }
 0x4dc   :  { %8319 = vmatprep.subr.bf16.mxu1 %v9957_v12  ;;  %v1777_v12 = vld [vmem:[#allocation8 + $0x1bd0] sm:$0xff]  ;;  %v1822_v7 = vld [vmem:[#allocation8 + $0x1d38] sm:$0xff] }
 0x4dd   :  { %v10010_v33 = vcombine.low %v1777_v12, %v1781_v16 }
 0x4de   :  { %7992 = vmatpush1.bf16.msra.mxu0 %v9954_v19  ;;  %v10004_v19 = vcombine.low %v1770_v58, %v1774_v3  ;;  %v10044_v58 = vcombine.low %v1810_v61, %v1814_v62 }
 0x4df   :  { %8320 = vmatpush1.bf16.msra.mxu1 %v9956_v27  ;;  %7993 = vmatprep.subr.bf16.mxu0 %v9963_v6  ;;  %v10011_v27 = vcombine.high %v1777_v12, %v1781_v16  ;;  %v10013_v6 = vcombine.high %v1778_v17, %v1782_v18  ;;  %v1830_v12 = vld [vmem:[#allocation8 + $0x1d78] sm:$0xff] }
 0x4e0   :  { %8321 = vmatprep.subr.bf16.mxu1 %v9965_v28  ;;  %v1785_v28 = vld [vmem:[#allocation8 + $0x1c10] sm:$0xff] }
 0x4e1   :  { %v10018_v35 = vcombine.low %v1785_v28, %v1789_v29 }
 0x4e2   :  { %7994 = vmatpush1.bf16.msra.mxu0 %v9962_v37  ;;  %v10012_v37 = vcombine.low %v1778_v17, %v1782_v18  ;;  %v10052_v17 = vcombine.low %v1818_v4, %v1822_v7 }
 0x4e3   :  { %8322 = vmatpush1.bf16.msra.mxu1 %v9964_v14  ;;  %7995 = vmatprep.subr.bf16.mxu0 %v9971_v46  ;;  %v10019_v14 = vcombine.high %v1785_v28, %v1789_v29  ;;  %v10021_v46 = vcombine.high %v1786_v39, %v1790_v32  ;;  %v1838_v28 = vld [vmem:[#allocation8 + $0x1db8] sm:$0xff] }
 0x4e4   :  { %8323 = vmatprep.subr.bf16.mxu1 %v9973_v42  ;;  %v1793_v42 = vld [vmem:[#allocation8 + $0x1c50] sm:$0xff] }
 0x4e5   :  { %v10026_v55 = vcombine.low %v1793_v42, %v1797_v13 }
 0x4e6   :  { %7996 = vmatpush1.bf16.msra.mxu0 %v9970_v45  ;;  %v10020_v45 = vcombine.low %v1786_v39, %v1790_v32 }
 0x4e7   :  { %8324 = vmatpush1.bf16.msra.mxu1 %v9972_v53  ;;  %7997 = vmatprep.subr.bf16.mxu0 %v9979_v50  ;;  %v10027_v53 = vcombine.high %v1793_v42, %v1797_v13  ;;  %v1801_v50 = vld [vmem:[#allocation8 + $0x1c90] sm:$0xff]  ;;  %v1846_v42 = vld [vmem:[#allocation8 + $0x1df8] sm:$0xff] }
 0x4e8   :  { %8325 = vmatprep.subr.bf16.mxu1 %v9981_v52  ;;  %v1805_v52 = vld [vmem:[#allocation8 + $0x1cb0] sm:$0xff] }
 0x4e9   :  { %v10034_v9 = vcombine.low %v1801_v50, %v1805_v52 }
 0x4ea   :  { %7998 = vmatpush1.bf16.msra.mxu0 %v9978_v57  ;;  %v10028_v57 = vcombine.low %v1794_v43, %v1798_v44 }
 0x4eb   :  { %8326 = vmatpush1.bf16.msra.mxu1 %v9980_v56  ;;  %7999 = vmatprep.subr.bf16.mxu0 %v9987_v30  ;;  %v10035_v56 = vcombine.high %v1801_v50, %v1805_v52  ;;  %v10037_v30 = vcombine.high %v1802_v11, %v1806_v5  ;;  %v1850_v50 = vld [vmem:[#allocation8 + $0x1e18] sm:$0xff] }
 0x4ec   :  { %8327 = vmatprep.subr.bf16.mxu1 %v9989_v2  ;;  %v1809_v2 = vld [vmem:[#allocation8 + $0x1cd0] sm:$0xff]  ;;  %v1854_v52 = vld [vmem:[#allocation8 + $0x1e38] sm:$0xff] }
 0x4ee   :  { %8000 = vmatpush1.bf16.msra.mxu0 %v9986_v26  ;;  %v10043_v26 = vcombine.high %v1809_v2, %v1813_v60 }
 0x4ef   :  { %8328 = vmatpush1.bf16.msra.mxu1 %v9988_v31  ;;  %8001 = vmatprep.subr.bf16.mxu0 %v9995_v38  ;;  %v10045_v31 = vcombine.high %v1810_v61, %v1814_v62  ;;  %v1817_v38 = vld [vmem:[#allocation8 + $0x1d10] sm:$0xff]  ;;  %v10084_v61 = vcombine.low %v1850_v50, %v1854_v52 }
 0x4f0   :  { %8329 = vmatprep.subr.bf16.mxu1 %v9997_v25  ;;  %v1821_v25 = vld [vmem:[#allocation8 + $0x1d30] sm:$0xff] }
 0x4f1   :  { %v10051_v3 = vcombine.high %v1817_v38, %v1821_v25  ;;  %v10050_v16 = vcombine.low %v1817_v38, %v1821_v25  ;;  %v1870_v38 = vld [vmem:[#allocation8 + $0x1eb8] sm:$0xff] }
 0x4f2   :  { %8002 = vmatpush1.bf16.msra.mxu0 %v9994_v8  ;;  %v10053_v8 = vcombine.high %v1818_v4, %v1822_v7 }
 0x4f3   :  { %8330 = vmatpush1.bf16.msra.mxu1 %v9996_v1  ;;  %8003 = vmatprep.subr.bf16.mxu0 %v10003_v10  ;;  %v1825_v1 = vld [vmem:[#allocation8 + $0x1d50] sm:$0xff] }
 0x4f4   :  { %8331 = vmatprep.subr.bf16.mxu1 %v10005_v24  ;;  %v1829_v10 = vld [vmem:[#allocation8 + $0x1d70] sm:$0xff]  ;;  %v1826_v24 = vld [vmem:[#allocation8 + $0x1d58] sm:$0xff] }
 0x4f5   :  { %v10059_v18 = vcombine.high %v1825_v1, %v1829_v10  ;;  %v10058_v29 = vcombine.low %v1825_v1, %v1829_v10  ;;  %v10060_v39 = vcombine.low %v1826_v24, %v1830_v12  ;;  %v1878_v1 = vld [vmem:[#allocation8 + $0x1ef8] sm:$0xff] }
 0x4f6   :  { %8004 = vmatpush1.bf16.msra.mxu0 %v10002_v20  ;;  %v10061_v20 = vcombine.high %v1826_v24, %v1830_v12 }
 0x4f7   :  { %8332 = vmatpush1.bf16.msra.mxu1 %v10004_v19  ;;  %8005 = vmatprep.subr.bf16.mxu0 %v10011_v27  ;;  %v1833_v19 = vld [vmem:[#allocation8 + $0x1d90] sm:$0xff] }
 0x4f8   :  { %8333 = vmatprep.subr.bf16.mxu1 %v10013_v6  ;;  %v1837_v27 = vld [vmem:[#allocation8 + $0x1db0] sm:$0xff]  ;;  %v1834_v6 = vld [vmem:[#allocation8 + $0x1d98] sm:$0xff] }
 0x4f9   :  { %v10067_v32 = vcombine.high %v1833_v19, %v1837_v27  ;;  %v10066_v13 = vcombine.low %v1833_v19, %v1837_v27  ;;  %v1886_v19 = vld [vmem:[#allocation8 + $0x1f38] sm:$0xff] }
 0x4fa   :  { %8006 = vmatpush1.bf16.msra.mxu0 %v10010_v33  ;;  %v10069_v33 = vcombine.high %v1834_v6, %v1838_v28 }
 0x4fb   :  { %8334 = vmatpush1.bf16.msra.mxu1 %v10012_v37  ;;  %8016 = vmatprep.subr.bf16.mxu0 %v10019_v14  ;;  %v1841_v37 = vld [vmem:[#allocation8 + $0x1dd0] sm:$0xff] }
 0x4fc   :  { %8344 = vmatprep.subr.bf16.mxu1 %v10021_v46  ;;  %v1845_v14 = vld [vmem:[#allocation8 + $0x1df0] sm:$0xff]  ;;  %v1842_v46 = vld [vmem:[#allocation8 + $0x1dd8] sm:$0xff] }
 0x4fd   :  { %8008 = vmatmul.mubr.bf16.vlgmr.msra.gmra.mrb[12].mxu0 %v11083_v21  ;;  %v10075_v43 = vcombine.high %v1841_v37, %v1845_v14  ;;  %v10077_v44 = vcombine.high %v1842_v46, %v1846_v42 }
 0x4fe   :  { %8336 = vmatmul.mubr.bf16.vlgmr.msra.gmra.mrb[12].mxu1 %v11083_v21  ;;  %8017 = vmatpush1.bf16.msra.mxu0 %v10018_v35  ;;  %v10036_v21 = vcombine.low %v1802_v11, %v1806_v5  ;;  %v10068_v35 = vcombine.low %v1834_v6, %v1838_v28  ;;  %v10076_v11 = vcombine.low %v1842_v46, %v1846_v42 }
 0x4ff   :  { %8048 = vmatprep.mubr.bf16.mxu0 %v11085_v48  ;;  %8345 = vmatpush1.bf16.msra.mxu1 %v10020_v45  ;;  %v1849_v45 = vld [vmem:[#allocation8 + $0x1e10] sm:$0xff] }
 0x500   :  { %8376 = vmatprep.mubr.bf16.mxu1 %v11085_v48  ;;  %8018 = vmatprep.subr.bf16.mxu0 %v10027_v53  ;;  %v10042_v48 = vcombine.low %v1809_v2, %v1813_v60  ;;  %v1853_v53 = vld [vmem:[#allocation8 + $0x1e30] sm:$0xff]  ;;  %v1862_v2 = vld [vmem:[#allocation8 + $0x1e78] sm:$0xff] }
 0x501   :  { %8346 = vmatprep.subr.bf16.mxu1 %v10029_v54  ;;  %v10074_v54 = vcombine.low %v1841_v37, %v1845_v14  ;;  %v10083_v5 = vcombine.high %v1849_v45, %v1853_v53  ;;  %v10082_v60 = vcombine.low %v1849_v45, %v1853_v53  ;;  %v1894_v37 = vld [vmem:[#allocation8 + $0x1f78] sm:$0xff]  ;;  %v11134_v53 = vld [vmem:[#allocation10] sm:$0xff] }
 0x502   :  { %8019 = vmatpush1.bf16.msra.mxu0 %v10026_v55  ;;  %v10085_v55 = vcombine.high %v1850_v50, %v1854_v52  ;;  %v1902_v45 = vld [vmem:[#allocation8 + $0x1fb8] sm:$0xff] }
 0x503   :  { %8347 = vmatpush1.bf16.msra.mxu1 %v10028_v57  ;;  %8020 = vmatprep.subr.bf16.mxu0 %v10035_v56  ;;  %v1857_v57 = vld [vmem:[#allocation8 + $0x1e50] sm:$0xff] }
 0x504   :  { %8348 = vmatprep.subr.bf16.mxu1 %v10037_v30  ;;  %v1861_v56 = vld [vmem:[#allocation8 + $0x1e70] sm:$0xff]  ;;  %v1858_v30 = vld [vmem:[#allocation8 + $0x1e58] sm:$0xff] }
 0x505   :  { %v10091_v62 = vcombine.high %v1857_v57, %v1861_v56  ;;  %v10090_v25 = vcombine.low %v1857_v57, %v1861_v56  ;;  %v10092_v4 = vcombine.low %v1858_v30, %v1862_v2  ;;  %v1920_v57 = vrot.slane %v11134_v53, %v10946_v49  ;;  %v1906_v56 = vld [vmem:[#allocation8 + $0x1fd8] sm:$0xff] }
 0x506   :  { %8021 = vmatpush1.bf16.msra.mxu0 %v10034_v9  ;;  %v10093_v9 = vcombine.high %v1858_v30, %v1862_v2  ;;  %v1910_v30 = vld [vmem:[#allocation8 + $0x1ff8] sm:$0xff]  ;;  %v1928_v2 = vrot.slane %v11134_v53, %v10951_v51  ;;  %v10497_v51 = vld [vmem:[#allocation11 + $0xc0] sm:$0xff]  }
 0x507   :  { %8349 = vmatpush1.bf16.msra.mxu1 %v10036_v21  ;;  %8022 = vmatprep.subr.bf16.mxu0 %v10043_v26  ;;  %v1865_v21 = vld [vmem:[#allocation8 + $0x1e90] sm:$0xff]  ;;  %v10140_v49 = vcombine.low %v1906_v56, %v1910_v30 }
 0x508   :  { %8350 = vmatprep.subr.bf16.mxu1 %v10045_v31  ;;  %v1869_v26 = vld [vmem:[#allocation8 + $0x1eb0] sm:$0xff]  ;;  %v1866_v31 = vld [vmem:[#allocation8 + $0x1e98] sm:$0xff] }
 0x509   :  { %v10099_v7 = vcombine.high %v1865_v21, %v1869_v26  ;;  %v10098_v10 = vcombine.low %v1865_v21, %v1869_v26  ;;  %v10100_v24 = vcombine.low %v1866_v31, %v1870_v38  ;;  %v10362_v21 = vadd.f32 %v11114_v59, %v1920_v57  ;;  %v10531_v57 = vld [vmem:[#allocation11 + $0x180] sm:$0xff]  }
 0x50a   :  { %8023 = vmatpush1.bf16.msra.mxu0 %v10042_v48  ;;  %v10101_v48 = vcombine.high %v1866_v31, %v1870_v38  ;;  %v10364_v26 = vadd.f32 %v11116_v36, %v1928_v2  ;;  %v10496_v38 = vld [vmem:[#allocation11 + $0x40] sm:$0xff]   ;;  %v10501_v36 = vld [vmem:[#allocation11 + $0xc8] sm:$0xff]  }
 0x50b   :  { %8351 = vmatpush1.bf16.msra.mxu1 %v10044_v58  ;;  %8024 = vmatprep.subr.bf16.mxu0 %v10051_v3  ;;  %v1873_v58 = vld [vmem:[#allocation8 + $0x1ed0] sm:$0xff] }
 0x50c   :  { %8352 = vmatprep.subr.bf16.mxu1 %v10053_v8  ;;  %v1877_v3 = vld [vmem:[#allocation8 + $0x1ef0] sm:$0xff]  ;;  %v1874_v8 = vld [vmem:[#allocation8 + $0x1ed8] sm:$0xff] }
 0x50d   :  { %v10107_v12 = vcombine.high %v1873_v58, %v1877_v3  ;;  %v10106_v27 = vcombine.low %v1873_v58, %v1877_v3  ;;  %v10108_v6 = vcombine.low %v1874_v8, %v1878_v1  ;;  %v10500_v58 = vld [vmem:[#allocation11 + $0x48] sm:$0xff]  }
 0x50e   :  { %8025 = vmatpush1.bf16.msra.mxu0 %v10050_v16  ;;  %v10109_v16 = vcombine.high %v1874_v8, %v1878_v1  ;;  %v10502_v8 = vld [vmem:[#allocation11 + $0x8] sm:$0xff]  }
 0x50f   :  { %8353 = vmatpush1.bf16.msra.mxu1 %v10052_v17  ;;  %8026 = vmatprep.subr.bf16.mxu0 %v10059_v18  ;;  %v1881_v17 = vld [vmem:[#allocation8 + $0x1f10] sm:$0xff] }
 0x510   :  { %8354 = vmatprep.subr.bf16.mxu1 %v10061_v20  ;;  %v1885_v18 = vld [vmem:[#allocation8 + $0x1f30] sm:$0xff]  ;;  %v1882_v20 = vld [vmem:[#allocation8 + $0x1f18] sm:$0xff] }
 0x511   :  { %v10115_v28 = vcombine.high %v1881_v17, %v1885_v18  ;;  %v10114_v14 = vcombine.low %v1881_v17, %v1885_v18  ;;  %v10116_v46 = vcombine.low %v1882_v20, %v1886_v19  ;;  %v10503_v1 = vld [vmem:[#allocation11 + $0x88] sm:$0xff]   ;;  %v10508_v17 = vld [vmem:[#allocation11 + $0x58] sm:$0xff]  }
 0x512   :  { %8027 = vmatpush1.bf16.msra.mxu0 %v10058_v29  ;;  %v10117_v29 = vcombine.high %v1882_v20, %v1886_v19  ;;  %v10509_v18 = vld [vmem:[#allocation11 + $0xd8] sm:$0xff]   ;;  %v10512_v19 = vld [vmem:[#allocation11 + $0x60] sm:$0xff]   ;;  %v10534_v2 = vld [vmem:[#allocation11 + $0x108] sm:$0xff]  }
 0x513   :  { %8355 = vmatpush1.bf16.msra.mxu1 %v10060_v39  ;;  %8028 = vmatprep.subr.bf16.mxu0 %v10067_v32  ;;  %v1889_v39 = vld [vmem:[#allocation8 + $0x1f50] sm:$0xff]  ;;  %v10511_v20 = vld [vmem:[#allocation11 + $0x98] sm:$0xff]  }
 0x514   :  { %8356 = vmatprep.subr.bf16.mxu1 %v10069_v33  ;;  %v1893_v32 = vld [vmem:[#allocation8 + $0x1f70] sm:$0xff]  ;;  %v1890_v33 = vld [vmem:[#allocation8 + $0x1f58] sm:$0xff] }
 0x515   :  { %v10123_v42 = vcombine.high %v1889_v39, %v1893_v32  ;;  %v10122_v50 = vcombine.low %v1889_v39, %v1893_v32  ;;  %v10124_v52 = vcombine.low %v1890_v33, %v1894_v37  ;;  %v10517_v39 = vld [vmem:[#allocation11 + $0xe8] sm:$0xff]  }
 0x516   :  { %8029 = vmatpush1.bf16.msra.mxu0 %v10066_v13  ;;  %v10125_v13 = vcombine.high %v1890_v33, %v1894_v37  ;;  %v10518_v32 = vld [vmem:[#allocation11 + $0x28] sm:$0xff]   ;;  %v1916_v33 = vrot.slane %v11134_v53, %v10941_v47  ;;  %v10525_v47 = vld [vmem:[#allocation11 + $0xf8] sm:$0xff]  }
 0x517   :  { %8357 = vmatpush1.bf16.msra.mxu1 %v10068_v35  ;;  %8030 = vmatprep.subr.bf16.mxu0 %v10075_v43  ;;  %v1897_v35 = vld [vmem:[#allocation8 + $0x1f90] sm:$0xff] }
 0x518   :  { %8358 = vmatprep.subr.bf16.mxu1 %v10077_v44  ;;  %v1901_v43 = vld [vmem:[#allocation8 + $0x1fb0] sm:$0xff]  ;;  %v1898_v44 = vld [vmem:[#allocation8 + $0x1f98] sm:$0xff] }
 0x519   :  { %v10519_v37 = vld [vmem:[#allocation11 + $0xa8] sm:$0xff]  }
 0x51a   :  { %8031 = vmatpush1.bf16.msra.mxu0 %v10074_v54  ;;  %v10131_v54 = vcombine.high %v1897_v35, %v1901_v43 }
 0x51b   :  { %8359 = vmatpush1.bf16.msra.mxu1 %v10076_v11  ;;  %8032 = vmatprep.subr.bf16.mxu0 %v10083_v5  ;;  %v10133_v11 = vcombine.high %v1898_v44, %v1902_v45  ;;  %v1905_v5 = vld [vmem:[#allocation8 + $0x1fd0] sm:$0xff] }
 0x51c   :  { %8360 = vmatprep.subr.bf16.mxu1 %v10085_v55  ;;  %v1909_v55 = vld [vmem:[#allocation8 + $0x1ff0] sm:$0xff] }
 0x51d   :  { %v10138_v31 = vcombine.low %v1905_v5, %v1909_v55 }
 0x51e   :  { %8033 = vmatpush1.bf16.msra.mxu0 %v10082_v60  ;;  %v10130_v60 = vcombine.low %v1897_v35, %v1901_v43  ;;  %v10361_v35 = vadd.f32 %v11110_v23, %v1916_v33  ;;  %v10523_v43 = vld [vmem:[#allocation11 + $0xb0] sm:$0xff]   ;;  %v10530_v23 = vld [vmem:[#allocation11 + $0x100] sm:$0xff]  }
 0x51f   :  { %8361 = vmatpush1.bf16.msra.mxu1 %v10084_v61  ;;  %8034 = vmatprep.subr.bf16.mxu0 %v10091_v62  ;;  %v10132_v61 = vcombine.low %v1898_v44, %v1902_v45  ;;  %v10139_v62 = vcombine.high %v1905_v5, %v1909_v55  ;;  %v10524_v44 = vld [vmem:[#allocation11 + $0x78] sm:$0xff]   ;;  %v10529_v5 = vld [vmem:[#allocation11 + $0x1c0] sm:$0xff]  }
 0x520   :  { %8362 = vmatprep.subr.bf16.mxu1 %v10093_v9  ;;  %v10141_v9 = vcombine.high %v1906_v56, %v1910_v30  ;;  %v10532_v56 = vld [vmem:[#allocation11 + $0x148] sm:$0xff]  }
 0x521   :  { %v10533_v30 = vld [vmem:[#allocation11 + $0x1c8] sm:$0xff]  }
 0x522   :  { %8035 = vmatpush1.bf16.msra.mxu0 %v10090_v25  ;;  %v8386_v25 = vmax.f32 %v10362_v21, 0.0  ;;  %v10539_v21 = vld [vmem:[#allocation11 + $0x190] sm:$0xff]  }
 0x523   :  { %8363 = vmatpush1.bf16.msra.mxu1 %v10092_v4  ;;  %8036 = vmatprep.subr.bf16.mxu0 %v10099_v7  ;;  %v8388_v4 = vmax.f32 %v10364_v26, 0.0  ;;  %v10498_v7 = vld [vmem:[#allocation11] sm:$0xff]   ;;  %v10540_v26 = vld [vmem:[#allocation11 + $0x158] sm:$0xff]  }
 0x524   :  { %8364 = vmatprep.subr.bf16.mxu1 %v10101_v48  ;;  %v10499_v48 = vld [vmem:[#allocation11 + $0x80] sm:$0xff]   ;;  %v8394_v59 = vpack.c.bf16 %v8386_v25, %v8386_v25 }
 0x525   :  { %v8396_v3 = vpack.c.bf16 %v8388_v4, %v8388_v4  ;;  %v10545_v25 = vld [vmem:[#allocation11 + $0x1e0] sm:$0xff]  }
 0x526   :  { %8037 = vmatpush1.bf16.msra.mxu0 %v10098_v10  ;;  %v10504_v10 = vld [vmem:[#allocation11 + $0x50] sm:$0xff]   ;;  %v10546_v4 = vld [vmem:[#allocation11 + $0x120] sm:$0xff]  }
 0x527   :  { %8365 = vmatpush1.bf16.msra.mxu1 %v10100_v24  ;;  %8038 = vmatprep.subr.bf16.mxu0 %v10107_v12  ;;  %v10505_v24 = vld [vmem:[#allocation11 + $0xd0] sm:$0xff]  }
 0x528   :  { %8366 = vmatprep.subr.bf16.mxu1 %v10109_v16  ;;  %v10506_v12 = vld [vmem:[#allocation11 + $0x10] sm:$0xff]  }
 0x529   :  { %v10507_v16 = vld [vmem:[#allocation11 + $0x90] sm:$0xff]  }
 0x52a   :  { %8039 = vmatpush1.bf16.msra.mxu0 %v10106_v27  ;;  %v10513_v27 = vld [vmem:[#allocation11 + $0xe0] sm:$0xff]  }
 0x52b   :  { %8367 = vmatpush1.bf16.msra.mxu1 %v10108_v6  ;;  %8040 = vmatprep.subr.bf16.mxu0 %v10115_v28  ;;  %v10514_v6 = vld [vmem:[#allocation11 + $0x20] sm:$0xff]  }
 0x52c   :  { %8368 = vmatprep.subr.bf16.mxu1 %v10117_v29  ;;  %v10515_v28 = vld [vmem:[#allocation11 + $0xa0] sm:$0xff]   ;;  %v10516_v29 = vld [vmem:[#allocation11 + $0x68] sm:$0xff]  }
 0x52e   :  { %8041 = vmatpush1.bf16.msra.mxu0 %v10114_v14  ;;  %v10520_v14 = vld [vmem:[#allocation11 + $0x70] sm:$0xff]  }
 0x52f   :  { %8369 = vmatpush1.bf16.msra.mxu1 %v10116_v46  ;;  %8042 = vmatprep.subr.bf16.mxu0 %v10123_v42  ;;  %v1924_v46 = vrot.slane %v11134_v53, %v10982_v40  ;;  %v10521_v42 = vld [vmem:[#allocation11 + $0xf0] sm:$0xff]   ;;  %v10527_v40 = vld [vmem:[#allocation11 + $0xb8] sm:$0xff]  }
 0x530   :  { %8370 = vmatprep.subr.bf16.mxu1 %v10125_v13  ;;  %v10522_v13 = vld [vmem:[#allocation11 + $0x30] sm:$0xff]  }
 0x531   :  { %v10363_v45 = vadd.f32 %v11112_v41, %v1924_v46 }
 0x532   :  { %8043 = vmatpush1.bf16.msra.mxu0 %v10122_v50  ;;  %v10526_v50 = vld [vmem:[#allocation11 + $0x38] sm:$0xff]  }
 0x533   :  { %8371 = vmatpush1.bf16.msra.mxu1 %v10124_v52  ;;  %8044 = vmatprep.subr.bf16.mxu0 %v10131_v54  ;;  %v8385_v52 = vmax.f32 %v10361_v35, 0.0  ;;  %v10528_v54 = vld [vmem:[#allocation11 + $0x140] sm:$0xff]  }
 0x534   :  { %8372 = vmatprep.subr.bf16.mxu1 %v10133_v11  ;;  %v8387_v11 = vmax.f32 %v10363_v45, 0.0 }
 0x535   :  { %v8393_v55 = vpack.c.bf16 %v8385_v52, %v8385_v52 }
 0x536   :  { %8045 = vmatpush1.bf16.msra.mxu0 %v10130_v60  ;;  %v8395_v41 = vpack.c.bf16 %v8387_v11, %v8387_v11  ;;  %v10535_v60 = vld [vmem:[#allocation11 + $0x188] sm:$0xff]  }
 0x537   :  { %8373 = vmatpush1.bf16.msra.mxu1 %v10132_v61  ;;  %8046 = vmatprep.subr.bf16.mxu0 %v10139_v62  ;;  %v10536_v61 = vld [vmem:[#allocation11 + $0x150] sm:$0xff]  }
 0x538   :  { %8374 = vmatprep.subr.bf16.mxu1 %v10141_v9  ;;  %v10537_v62 = vld [vmem:[#allocation11 + $0x1d0] sm:$0xff]  }
 0x539   :  { %v10538_v9 = vld [vmem:[#allocation11 + $0x110] sm:$0xff]  }
 0x53a   :  { %8047 = vmatpush1.bf16.msra.mxu0 %v10138_v31  ;;  %v10541_v31 = vld [vmem:[#allocation11 + $0x1d8] sm:$0xff]  }
 0x53b   :  { %8375 = vmatpush1.bf16.msra.mxu1 %v10140_v49  ;;  %10209 = vmatprep.subr.bf16.mxu0 %v10496_v38  ;;  %v10542_v49 = vld [vmem:[#allocation11 + $0x118] sm:$0xff]  }
 0x53c   :  { %10231 = vmatprep.subr.bf16.mxu1 %v10497_v51  ;;  %v10543_v38 = vld [vmem:[#allocation11 + $0x198] sm:$0xff]   ;;  %v10544_v51 = vld [vmem:[#allocation11 + $0x160] sm:$0xff]  }
 0x53d   :  { %8049 = vmatmul.mubr.bf16.vlgmr.msra.gmra.mrb[12].mxu0 %v11092_v34 }
 0x53e   :  { %8377 = vmatmul.mubr.bf16.vlgmr.msra.gmra.mrb[12].mxu1 %v11092_v34  ;;  %10210 = vmatpush3.bf16.msra.mxu0 %v10498_v7  ;;  %v10510_v34 = vld [vmem:[#allocation11 + $0x18] sm:$0xff]   ;;  %v10547_v7 = vld [vmem:[#allocation11 + $0x1a0] sm:$0xff]  }
 0x53f   :  { %8952 = vmatprep.mubr.bf16.mxu0 %v8394_v59  ;;  %10232 = vmatpush3.bf16.msra.mxu1 %v10499_v48  ;;  %v10548_v48 = vld [vmem:[#allocation11 + $0x168] sm:$0xff]  }
 0x540   :  { %8992 = vmatprep.mubr.bf16.mxu1 %v8396_v3  ;;  %10211 = vmatprep.subr.bf16.mxu0 %v10500_v58  ;;  %v10549_v58 = vld [vmem:[#allocation11 + $0x1e8] sm:$0xff]   ;;  %v10552_v3 = vld [vmem:[#allocation11 + $0x170] sm:$0xff]  }
 0x541   :  { %10233 = vmatprep.subr.bf16.mxu1 %v10501_v36  ;;  %v10550_v59 = vld [vmem:[#allocation11 + $0x128] sm:$0xff]  }
 0x542   :  { %10212 = vmatpush3.bf16.msra.mxu0 %v10502_v8  ;;  %v10551_v36 = vld [vmem:[#allocation11 + $0x1a8] sm:$0xff]   ;;  %v10553_v8 = vld [vmem:[#allocation11 + $0x1f0] sm:$0xff]  }
 0x543   :  { %10234 = vmatpush3.bf16.msra.mxu1 %v10503_v1  ;;  %10213 = vmatprep.subr.bf16.mxu0 %v10504_v10  ;;  %v10554_v1 = vld [vmem:[#allocation11 + $0x130] sm:$0xff]  }
 0x544   :  { %10235 = vmatprep.subr.bf16.mxu1 %v10505_v24  ;;  %v10555_v10 = vld [vmem:[#allocation11 + $0x1b0] sm:$0xff]   ;;  %v10556_v24 = vld [vmem:[#allocation11 + $0x178] sm:$0xff]  }
 0x546   :  { %10214 = vmatpush3.bf16.msra.mxu0 %v10506_v12  ;;  %v10557_v12 = vld [vmem:[#allocation11 + $0x1f8] sm:$0xff]  }
 0x547   :  { %10236 = vmatpush3.bf16.msra.mxu1 %v10507_v16  ;;  %10215 = vmatprep.subr.bf16.mxu0 %v10508_v17  ;;  %v10558_v16 = vld [vmem:[#allocation11 + $0x138] sm:$0xff]  }
 0x548   :  { %10237 = vmatprep.subr.bf16.mxu1 %v10509_v18  ;;  %v10559_v17 = vld [vmem:[#allocation11 + $0x1b8] sm:$0xff]   ;;  %v1932_v18 = vrot.slane %v11134_v53, %v10991_v63 }
 0x54a   :  { %10216 = vmatpush3.bf16.msra.mxu0 %v10510_v34  ;;  %v1940_v34 = vrot.slane %v11134_v53, %v11001_v15 }
 0x54b   :  { %10238 = vmatpush3.bf16.msra.mxu1 %v10511_v20  ;;  %10217 = vmatprep.subr.bf16.mxu0 %v10512_v19  ;;  %v1936_v20 = vrot.slane %v11134_v53, %v10994_v0  ;;  %v1944_v19 = vrot.slane %v11134_v53, %v11004_v22 }
 0x54c   :  { %10239 = vmatprep.subr.bf16.mxu1 %v10513_v27 }
 0x54e   :  { %10218 = vmatpush3.bf16.msra.mxu0 %v10514_v6 }
 0x54f   :  { %10240 = vmatpush3.bf16.msra.mxu1 %v10515_v28  ;;  %10219 = vmatprep.subr.bf16.mxu0 %v10516_v29 }
 0x550   :  { %10241 = vmatprep.subr.bf16.mxu1 %v10517_v39 }
 0x552   :  { %10220 = vmatpush3.bf16.msra.mxu0 %v10518_v32 }
 0x553   :  { %10242 = vmatpush3.bf16.msra.mxu1 %v10519_v37  ;;  %10221 = vmatprep.subr.bf16.mxu0 %v10520_v14 }
 0x554   :  { %10243 = vmatprep.subr.bf16.mxu1 %v10521_v42 }
 0x556   :  { %10222 = vmatpush3.bf16.msra.mxu0 %v10522_v13 }
 0x557   :  { %10244 = vmatpush3.bf16.msra.mxu1 %v10523_v43  ;;  %10223 = vmatprep.subr.bf16.mxu0 %v10524_v44 }
 0x558   :  { %10245 = vmatprep.subr.bf16.mxu1 %v10525_v47 }
 0x55a   :  { %10224 = vmatpush3.bf16.msra.mxu0 %v10526_v50  ;;  %v10142_v50 = vld [vmem:[#allocation13] ss:$0 sm:$0xff] }
 0x55b   :  { %10246 = vmatpush3.bf16.msra.mxu1 %v10527_v40  ;;  %10253 = vmatprep.subr.bf16.mxu0 %v10528_v54 }
 0x55c   :  { %10275 = vmatprep.subr.bf16.mxu1 %v10529_v5 }
 0x55d   :  { %8953 = vmatmul.mubr.bf16.vlgmr.msra.gmra.mrb[16].mxu0 %v8393_v55 }
 0x55e   :  { %8993 = vmatmul.mubr.bf16.vlgmr.msra.gmra.mrb[16].mxu1 %v8395_v41  ;;  %10254 = vmatpush3.bf16.msra.mxu0 %v10530_v23 }
 0x55f   :  { %10276 = vmatpush3.bf16.msra.mxu1 %v10531_v57  ;;  %10255 = vmatprep.subr.bf16.mxu0 %v10532_v56 }
 0x560   :  { %10277 = vmatprep.subr.bf16.mxu1 %v10533_v30 }
 0x562   :  { %10256 = vmatpush3.bf16.msra.mxu0 %v10534_v2 }
 0x563   :  { %10278 = vmatpush3.bf16.msra.mxu1 %v10535_v60  ;;  %10257 = vmatprep.subr.bf16.mxu0 %v10536_v61 }
 0x564   :  { %10279 = vmatprep.subr.bf16.mxu1 %v10537_v62 }
 0x566   :  { %10258 = vmatpush3.bf16.msra.mxu0 %v10538_v9 }
 0x567   :  { %10280 = vmatpush3.bf16.msra.mxu1 %v10539_v21  ;;  %10259 = vmatprep.subr.bf16.mxu0 %v10540_v26 }
 0x568   :  { %10281 = vmatprep.subr.bf16.mxu1 %v10541_v31 }
 0x56a   :  { %10260 = vmatpush3.bf16.msra.mxu0 %v10542_v49 }
 0x56b   :  { %10282 = vmatpush3.bf16.msra.mxu1 %v10543_v38  ;;  %10261 = vmatprep.subr.bf16.mxu0 %v10544_v51 }
 0x56c   :  { %10283 = vmatprep.subr.bf16.mxu1 %v10545_v25  ;;  %v10207_v25 = vld [vmem:[#allocation14] ss:$0 sm:$0xff] }
 0x56e   :  { %10262 = vmatpush3.bf16.msra.mxu0 %v10546_v4 }
 0x56f   :  { %10284 = vmatpush3.bf16.msra.mxu1 %v10547_v7  ;;  %10263 = vmatprep.subr.bf16.mxu0 %v10548_v48  ;;  %v10208_v48 = vld [vmem:[#allocation2] ss:$0 sm:$0xff] }
 0x570   :  { %10285 = vmatprep.subr.bf16.mxu1 %v10549_v58 }
 0x572   :  { %10264 = vmatpush3.bf16.msra.mxu0 %v10550_v59 }
 0x573   :  { %10286 = vmatpush3.bf16.msra.mxu1 %v10551_v36  ;;  %10265 = vmatprep.subr.bf16.mxu0 %v10552_v3 }
 0x574   :  { %10287 = vmatprep.subr.bf16.mxu1 %v10553_v8 }
 0x576   :  { %10266 = vmatpush3.bf16.msra.mxu0 %v10554_v1 }
 0x577   :  { %10288 = vmatpush3.bf16.msra.mxu1 %v10555_v10  ;;  %10267 = vmatprep.subr.bf16.mxu0 %v10556_v24 }
 0x578   :  { %10289 = vmatprep.subr.bf16.mxu1 %v10557_v12 }
 0x57a   :  { %10268 = vmatpush3.bf16.msra.mxu0 %v10558_v16 }
 0x57b   :  { %10290 = vmatpush3.bf16.msra.mxu1 %v10559_v17 }
 0x610   :  { %v8050_v27 = vpop.f32.mrb[12].mxu0 }
 0x611   :  { %v10365_v6 = vadd.f32 %v8050_v27, %v1932_v18  ;;  %v8378_v28 = vpop.f32.mrb[12].mxu1  ;;  %v8052_v29 = vpop.f32.mrb[13].mxu0 }
 0x612   :  { %v10367_v39 = vadd.f32 %v8378_v28, %v1940_v34  ;;  %v10366_v32 = vadd.f32 %v8052_v29, %v1936_v20  ;;  %v8380_v33 = vpop.f32.mrb[13].mxu1  ;;  %v8054_v37 = vpop.f32.mrb[14].mxu0 }
 0x613   :  { %v8389_v14 = vmax.f32 %v10365_v6, 0.0  ;;  %v10368_v46 = vadd.f32 %v8380_v33, %v1944_v19  ;;  %v8382_v63 = vpop.f32.mrb[14].mxu1  ;;  %v8055_v42 = vpop.f32.mrb[15].mxu0 }
 0x614   :  { %v8391_v13 = vmax.f32 %v10367_v39, 0.0  ;;  %v8390_v15 = vmax.f32 %v10366_v32, 0.0  ;;  %v8383_v35 = vpop.f32.mrb[15].mxu1 }
 0x615   :  { %v8392_v43 = vmax.f32 %v10368_v46, 0.0  ;;  %v8397_v44 = vpack.c.bf16 %v8389_v14, %v8389_v14 }
 0x616   :  { %v8398_v0 = vpack.c.bf16 %v8390_v15, %v8390_v15  ;;  %v8399_v22 = vpack.c.bf16 %v8391_v13, %v8391_v13 }
 0x617   :  { %v8400_v45 = vpack.c.bf16 %v8392_v43, %v8392_v43 }
 0x618   :  { %9032 = vmatprep.mubr.bf16.mxu0 %v8398_v0 }
 0x619   :  { %9072 = vmatprep.mubr.bf16.mxu1 %v8400_v45  ;;  %9033 = vmatmul.mubr.bf16.vlgmr.msra.gmra.mrb[20].mxu0 %v8397_v44 }
 0x61a   :  { %9073 = vmatmul.mubr.bf16.vlgmr.msra.gmra.mrb[20].mxu1 %v8399_v22 }
 0x630   :  { %v10225_v53 = vpop.f32.mrb[16].mxu0 }
 0x631   :  { %v10247_v47 = vpop.f32.mrb[16].mxu1  ;;  %v10226_v52 = vpop.f32.mrb[17].mxu0 }
 0x632   :  { %v10227_v40 = vadd.f32 %v10226_v52, %v10225_v53  ;;  %v10248_v54 = vpop.f32.mrb[17].mxu1  ;;  %v10228_v11 = vpop.f32.mrb[18].mxu0 }
 0x633   :  { %v10249_v5 = vadd.f32 %v10248_v54, %v10247_v47  ;;  %v10250_v23 = vpop.f32.mrb[18].mxu1  ;;  %v10229_v55 = vpop.f32.mrb[19].mxu0 }
 0x634   :  { %v8955_v57 = vadd.f32 %v10227_v40, %v10142_v50  ;;  %v10251_v56 = vpop.f32.mrb[19].mxu1 }
 0x636   :  { %v8995_v41 = vadd.f32 %v10249_v5, %v8955_v57 }
 0x6ec   :  { %v10269_v30 = vpop.f32.mrb[20].mxu0 }
 0x6ed   :  { %v10291_v2 = vpop.f32.mrb[20].mxu1  ;;  %v10270_v60 = vpop.f32.mrb[21].mxu0 }
 0x6ee   :  { %v10271_v61 = vadd.f32 %v10270_v60, %v10269_v30  ;;  %v10292_v62 = vpop.f32.mrb[21].mxu1  ;;  %v10272_v9 = vpop.f32.mrb[22].mxu0 }
 0x6ef   :  { %v10293_v21 = vadd.f32 %v10292_v62, %v10291_v2  ;;  %v10294_v26 = vpop.f32.mrb[22].mxu1  ;;  %v10273_v31 = vpop.f32.mrb[23].mxu0 }
 0x6f0   :  { %v9035_v49 = vadd.f32 %v10271_v61, %v8995_v41  ;;  %v10295_v38 = vpop.f32.mrb[23].mxu1 }
 0x6f2   :  { %v9075_v51 = vadd.f32 %v10293_v21, %v9035_v49 }
 0x6f4   :  { %v9080_v4 = vmax.f32 %v9075_v51, 0.0 }
 0x6f6   :  { %v9088_v7 = vmul.f32 %v10207_v25, %v9080_v4 }
 0x6f8   :  { %9089 = vadd.xlane.f32.xlu0 %v9088_v7 }
 0x785   :  { %v9090_v58 = vpop.xlane.xlu0 %9089 }
 0x786   :  { %v9098_v59 = vadd.f32 %v10208_v48, %v9090_v58 }
 0x788   :  { %9100 = vst.msk [vmem:[%s11170_s9] sm:$0xff] %vm9099_vm1, %v9098_v59 }
 0x789   :  { %9105 = vsyncpa [#allocation4], 1 }
 0x78a   :  { %9106 = vsyncpa [#allocation6], 1 }
 0x78b   :  { %9107 = vsyncpa [#allocation9], 1 }
 0x78c   :  { %9108 = vsyncpa [#allocation12], 1 }
 0x78d   :  { %9109 = vsyncpa [#allocation15], 1 }

</bundles_post_ra>
